<compile_context>
chip_gen: v6e
topology: v6e:2x2x1
jax: 0.10.0
libtpu: 0.0.40
codegen_flags: <defaults>
</compile_context>

<pallas_src>
import functools

import numpy as np
import jax
import jax.numpy as jnp
from jax import lax
from jax.experimental import pallas as pl
from jax.experimental.pallas import tpu as pltpu

_VMEM = pl.BlockSpec(memory_space=pltpu.MemorySpace.VMEM)
_SMEM = pl.BlockSpec(memory_space=pltpu.MemorySpace.SMEM)


def _round8(x):
  return (int(x) + 7) // 8 * 8


# ----------------------------------------------------------------------------
# The fused Pallas kernel (single invocation, no grid: all arrays are one tile)
# ----------------------------------------------------------------------------
def _moco_fused_kernel(ptr_ref, x_ref, w_ref, queue_ref, out_ref, *,
                       lay, out_lay, ns, nq, hw, use_mlp, inv_t):
  f32 = jnp.float32
  kmem, dim = queue_ref.shape
  ncls = lay["fc_wa"][2]
  lm_r0, lb_r0, tc_r, met_r, q_r0 = out_lay

  def W(name):                       # static slice of the packed weight slab
    r0, h, w = lay[name]
    return w_ref[r0:r0 + h, 0:w]

  def mm(a, b):
    return jnp.dot(a, b, preferred_element_type=f32)

  def mm_nt(a, b):                   # A @ B.T without materializing a transpose
    return lax.dot_general(a, b, dimension_numbers=(((1,), (1,)), ((), ())),
                           preferred_element_type=f32)

  def l2norm(x):                     # F.normalize(x, dim=1) via EUP rsqrt
    ss = jnp.sum(x * x, axis=1, keepdims=True)
    return x * lax.rsqrt(jnp.maximum(ss, 1e-24))

  def encode(x, wname, bname, n_img):
    # conv3x3(SAME) = ONE fused matmul over pre-built im2col patches; ReLU;
    # per-image global average pool via tile-preserving reshape + mean.
    y = jnp.maximum(mm(x, W(wname)) + W(bname), 0.0)            # (n_img*hw, F)
    return jnp.mean(y.reshape(n_img, hw, y.shape[-1]), axis=1)  # (n_img, F)

  def tasker(feats, p):              # p in {"a", "b"}
    seq_out = jnp.tanh(mm(feats, W("seq_w" + p)) + W("seq_b" + p))
    pooled = jnp.mean(seq_out, axis=0, keepdims=True)
    if use_mlp:
      h = jnp.maximum(mm(pooled, W("mlp_w" + p)) + W("mlp_b" + p), 0.0)
    else:
      h = pooled
    feat_task = mm(h, W("task_w" + p)) + W("task_b" + p)
    return feat_task, seq_out

  na = (ns + nq) * hw
  nb = ns * hw

  out_ref[...] = jnp.zeros(out_ref.shape, out_ref.dtype)

  # ---- query branch: merged support_A + query_A encoder (shared weights) ----
  pooled_a = encode(x_ref[0:na, :], "cwa", "cba", ns + nq)      # (ns+nq, F)
  feat_support_a = pooled_a[0:ns]
  feat_query_a = pooled_a[ns:ns + nq]

  feat_task_a, seq_out_a = tasker(feat_support_a, "a")
  feat_task_a = l2norm(feat_task_a)                              # (1, dim)
  feat_support_an = l2norm(feat_support_a)                       # (ns, F)

  out_ref[lm_r0:lm_r0 + nq, 0:ns] = mm_nt(feat_query_a, feat_support_an)

  # per-query tasker seq output depends only on that element -> one projection
  blstm_query = jnp.tanh(mm(feat_query_a, W("seq_wa")) + W("seq_ba"))
  out_ref[lb_r0:lb_r0 + nq, 0:ns] = mm_nt(blstm_query, seq_out_a)

  # fc consumes the L2-normalized task feature (matches the torch source order)
  out_ref[tc_r:tc_r + 1, 0:ncls] = mm(feat_task_a, W("fc_wa")) + W("fc_ba")

  # ---- key branch (encoder_B / tasker_B; torch no_grad, same forward math) --
  feat_support_b = encode(x_ref[na:na + nb, :], "cwb", "cbb", ns)
  feat_task_b, _ = tasker(feat_support_b, "b")
  feat_task_b = l2norm(feat_task_b)                              # (1, dim)

  # metrics = [dot(A, B), A @ queue.T] / T   (queue BEFORE enqueue)
  out_ref[met_r:met_r + 1, 0:1] = (
      jnp.sum(feat_task_a * feat_task_b, axis=1, keepdims=True) * inv_t)
  out_ref[met_r:met_r + 1, 1:1 + kmem] = mm_nt(feat_task_a, queue_ref[...]) * inv_t

  # fused _dequeue_and_enqueue: copy queue through, overwrite row `ptr`
  out_ref[q_r0:q_r0 + kmem, 0:dim] = queue_ref[...]
  ptr = ptr_ref[0]
  out_ref[pl.ds(q_r0 + ptr, 1), 0:dim] = feat_task_b


# ----------------------------------------------------------------------------
# Host/XLA-side layout helpers
# ----------------------------------------------------------------------------
def _out_layout(nq, kmem):
  """Row offsets inside the single (rows, 128) output slab."""
  lm_r0 = 0
  lb_r0 = _round8(nq)
  tc_r = lb_r0 + _round8(nq)
  met_r = tc_r + 1
  q_r0 = _round8(met_r + 1)
  rows = _round8(q_r0 + kmem)
  return (lm_r0, lb_r0, tc_r, met_r, q_r0), rows


def _im2col_pad(x, kpad):
  """NCHW -> (N*H*W, kpad) SAME-conv 3x3 patches (tap-major, then C)."""
  n, c, h, w = x.shape
  xt = jnp.transpose(x, (0, 2, 3, 1))                       # NHWC
  xp = jnp.pad(xt, ((0, 0), (1, 1), (1, 1), (0, 0)))
  cols = [xp[:, ki:ki + h, kj:kj + w, :] for ki in range(3) for kj in range(3)]
  patches = jnp.concatenate(cols, axis=-1).reshape(n * h * w, 9 * c)
  return jnp.pad(patches, ((0, 0), (0, kpad - 9 * c)))


def _pack_conv_w(w, kpad):
  """torch conv weight (F, C, 3, 3) -> (kpad, F), matching _im2col_pad order."""
  f, c, kh, kw = w.shape
  wt = jnp.transpose(w, (2, 3, 1, 0)).reshape(kh * kw * c, f)
  return jnp.pad(wt, ((0, kpad - kh * kw * c), (0, 0)))


def _pack_param_slab(entries):
  """Pack small 2D params into one (rows, width) slab with 8-aligned row starts."""
  width = max(int(a.shape[1]) for _, a in entries)
  lay, r = {}, 0
  for name, a in entries:
    h, w = int(a.shape[0]), int(a.shape[1])
    lay[name] = (r, h, w)
    r = _round8(r + h)
  slab = jnp.zeros((max(r, 8), width), jnp.float32)
  for name, a in entries:
    r0, h, w = lay[name]
    slab = slab.at[r0:r0 + h, 0:w].set(a.astype(jnp.float32))
  return slab, lay


# ----------------------------------------------------------------------------
# Jitted device forward: one fused pallas_call per MoCo forward
# ----------------------------------------------------------------------------
@functools.partial(jax.jit, static_argnames=("use_mlp", "inv_t"))
def _moco_device_forward(dev_params, queue, ptr, support_A, query_A, support_B,
                         *, use_mlp, inv_t):
  enc_a, enc_b = dev_params["encoder"], dev_params["encoder_B"]
  ta, tb = dev_params["tasker_A"], dev_params["tasker_B"]

  ns, c, h, w = support_A.shape
  nq = query_A.shape[0]
  hw = h * w
  kpad = _round8(9 * c)

  # One pixel slab: [support_A ; query_A ; support_B] im2col patches.
  x_all = jnp.concatenate([_im2col_pad(support_A, kpad),
                           _im2col_pad(query_A, kpad),
                           _im2col_pad(support_B, kpad)], axis=0)

  def row(v):
    return v.reshape(1, -1)

  entries = [
      ("cwa", _pack_conv_w(enc_a["conv_w"], kpad)), ("cba", row(enc_a["conv_b"])),
      ("cwb", _pack_conv_w(enc_b["conv_w"], kpad)), ("cbb", row(enc_b["conv_b"])),
      ("seq_wa", ta["seq_w"]), ("seq_ba", row(ta["seq_b"])),
      ("mlp_wa", ta["mlp_w"]), ("mlp_ba", row(ta["mlp_b"])),
      ("task_wa", ta["task_w"]), ("task_ba", row(ta["task_b"])),
      ("fc_wa", ta["fc_w"]), ("fc_ba", row(ta["fc_b"])),
      ("seq_wb", tb["seq_w"]), ("seq_bb", row(tb["seq_b"])),
      ("mlp_wb", tb["mlp_w"]), ("mlp_bb", row(tb["mlp_b"])),
      ("task_wb", tb["task_w"]), ("task_bb", row(tb["task_b"])),
  ]
  w_slab, lay = _pack_param_slab(entries)

  kmem, dim = queue.shape
  ncls = ta["fc_w"].shape[1]
  assert max(ns, ncls, kmem + 1, dim) <= 128
  out_lay, out_rows = _out_layout(nq, kmem)

  kernel = functools.partial(_moco_fused_kernel, lay=lay, out_lay=out_lay,
                             ns=ns, nq=nq, hw=hw, use_mlp=use_mlp, inv_t=inv_t)

  out = pl.pallas_call(
      kernel,
      out_shape=jax.ShapeDtypeStruct((out_rows, 128), jnp.float32),
      in_specs=[_SMEM, _VMEM, _VMEM, _VMEM],
      out_specs=_VMEM,
  )(ptr, x_all, w_slab, queue)

  lm_r0, lb_r0, tc_r, met_r, q_r0 = out_lay
  logits_meta = out[lm_r0:lm_r0 + nq, 0:ns]
  logits_blstm = out[lb_r0:lb_r0 + nq, 0:ns]
  logits_taskcls = out[tc_r, 0:ncls]
  metrics = out[met_r, 0:kmem + 1]
  new_queue = out[q_r0:q_r0 + kmem, 0:dim]
  return logits_meta, logits_blstm, logits_taskcls, metrics, new_queue


# ----------------------------------------------------------------------------
# MoCo forward (mirrors MoCo.forward in moco.py)
# ----------------------------------------------------------------------------
def moco_forward(params, state, support_A, query_A, support_B, key_cls, T,
                 training=True):
  use_mlp = params["use_mlp"]
  dev_params = {k: v for k, v in params.items() if k != "use_mlp"}
  queue = state["queue"]
  ptr = state["queue_ptr"]                      # host Python int
  ptr_arr = jnp.asarray([ptr], dtype=jnp.int32)

  (logits_meta, logits_blstm_meta, logits_taskcls, metrics,
   new_queue) = _moco_device_forward(dev_params, queue, ptr_arr, support_A,
                                     query_A, support_B, use_mlp=use_mlp,
                                     inv_t=float(1.0 / T))

  ns, nq = support_A.shape[0], query_A.shape[0]
  # NOTE: like the torch source, this assumes nq is an exact multiple of ns.
  labels_meta = jnp.tile(jnp.arange(ns, dtype=jnp.int32), nq // ns)

  if not training:
    return (logits_meta, labels_meta, logits_blstm_meta), state

  # sims / pure_index: pure host-side numpy bookkeeping (classes and key_cls are
  # host data) -- runs concurrently with the async device work, no device sync.
  classes = state["classes"]
  k_mem = queue.shape[0]
  sims, pure_index = [1], [0]
  for i in range(k_mem):
    inter = len(np.intersect1d(classes[i, :], key_cls))
    sims.append(inter / 5.0)
    if not inter:
      pure_index.append(i + 1)

  # queue enqueue already happened inside the kernel (row `ptr` <- key feature).
  new_classes = classes.copy()
  new_classes[ptr] = np.asarray(key_cls)
  new_state = {"queue": new_queue, "classes": new_classes,
               "queue_ptr": (ptr + 1) % k_mem}

  return (logits_meta, labels_meta, logits_taskcls, metrics, sims, pure_index,
          logits_blstm_meta), new_state


# ----------------------------------------------------------------------------
# Deterministic parameter / buffer initialization
# ----------------------------------------------------------------------------
def init_params(key, C=4, feat_dim=32, blstm_dim=64, dim=16, mlp_hidden=32,
                n_cls=10, use_mlp=True):
  ks = jax.random.split(key, 6)

  def lin(k, fan_in, shape):
    return jax.random.normal(k, shape, jnp.float32) * (1.0 / np.sqrt(fan_in))

  encoder = {
      "conv_w": lin(ks[0], C * 9, (feat_dim, C, 3, 3)),   # torch (F, C, 3, 3)
      "conv_b": jnp.zeros((feat_dim,), jnp.float32),
  }
  tasker = {
      "seq_w": lin(ks[1], feat_dim, (feat_dim, blstm_dim)),
      "seq_b": jnp.zeros((blstm_dim,), jnp.float32),
      "mlp_w": lin(ks[2], blstm_dim, (blstm_dim, mlp_hidden)),
      "mlp_b": jnp.zeros((mlp_hidden,), jnp.float32),
      "task_w": lin(ks[3], mlp_hidden if use_mlp else blstm_dim,
                    ((mlp_hidden if use_mlp else blstm_dim), dim)),
      "task_b": jnp.zeros((dim,), jnp.float32),
      "fc_w": lin(ks[4], dim, (dim, n_cls)),
      "fc_b": jnp.zeros((n_cls,), jnp.float32),
  }
  # key encoder/tasker initialized as exact copies (as in MoCo.__init__)
  return {
      "encoder": encoder,
      "encoder_B": jax.tree_util.tree_map(lambda x: x, encoder),
      "tasker_A": tasker,
      "tasker_B": jax.tree_util.tree_map(lambda x: x, tasker),
      "use_mlp": use_mlp,
  }


def init_state(key, K=8, dim=16):
  queue = jax.random.normal(key, (K, dim), jnp.float32)
  queue = queue * lax.rsqrt(jnp.maximum(                   # F.normalize(queue, dim=1)
      jnp.sum(queue * queue, axis=1, keepdims=True), 1e-24))
  classes = np.ones((K, 5), dtype=int) * 1000
  # queue_ptr kept as a host Python int -> never forces a device sync.
  return {"queue": queue, "classes": classes, "queue_ptr": 0}


if __name__ == "__main__":
  key = jax.random.PRNGKey(0)
  k_param, k_state, k_sa, k_qa, k_sb = jax.random.split(key, 5)

  n_way, n_query_per = 5, 3                 # support=5, query=15 (repeat factor 3)
  C, H, W = 4, 8, 8
  K_mem, dim = 8, 16
  T = 0.07

  params = init_params(k_param, C=C, dim=dim)
  state = init_state(k_state, K=K_mem, dim=dim)

  support_A = jax.random.normal(k_sa, (n_way, C, H, W), jnp.float32)
  query_A = jax.random.normal(k_qa, (n_way * n_query_per, C, H, W), jnp.float32)
  support_B = jax.random.normal(k_sb, (n_way, C, H, W), jnp.float32)
  key_cls = np.array([3, 7, 12, 21, 42], dtype=int)

  outs, new_state = moco_forward(params, state, support_A, query_A, support_B,
                                 key_cls, T, training=True)
  (logits_meta, labels_meta, logits_taskcls, metrics, sims, pure_index,
   logits_blstm_meta) = outs

  jax.block_until_ready((logits_meta, labels_meta, logits_taskcls, metrics,
                         logits_blstm_meta, new_state["queue"]))

  assert logits_meta.shape == (n_way * n_query_per, n_way)
  assert labels_meta.shape == (n_way * n_query_per,)
  assert logits_blstm_meta.shape == (n_way * n_query_per, n_way)
  assert logits_taskcls.shape == (10,)
  assert metrics.shape == (K_mem + 1,)
  assert new_state["queue"].shape == (K_mem, dim)
  assert len(sims) == K_mem + 1 and pure_index[0] == 0
  assert new_state["queue_ptr"] == 1
  print("KERNEL_OK")
</pallas_src>

<mosaic_0001>
module attributes {stable_mosaic.version = 11 : i64} {
  func.func @_moco_fused_kernel(%arg0: memref<1xi32, #tpu.memory_space<smem>>, %arg1: memref<1600x40xf32, #tpu.memory_space<vmem>>, %arg2: memref<424x64xf32, #tpu.memory_space<vmem>>, %arg3: memref<8x16xf32, #tpu.memory_space<vmem>>, %arg4: memref<48x128xf32, #tpu.memory_space<vmem>>) attributes {dimension_semantics = [], scalar_prefetch = 0 : i64, scratch_operands = 0 : i64, tpu.core_type = #tpu.core_type<tc>} {
    %cst = arith.constant 0.000000e+00 : f32
    %0 = vector.broadcast %cst : f32 to vector<48x128xf32>
    %c0 = arith.constant 0 : index
    %c0_0 = arith.constant 0 : index
    %1 = vector.load %arg4[%c0, %c0_0] : memref<48x128xf32, #tpu.memory_space<vmem>>, vector<48x128xf32>
    tpu.vector_store %arg4[%c0, %c0_0], %0 {strides = array<i32>} : memref<48x128xf32, #tpu.memory_space<vmem>>, vector<48x128xf32>,
    %c0_1 = arith.constant 0 : index
    %c0_2 = arith.constant 0 : index
    %2 = vector.load %arg1[%c0_1, %c0_2] : memref<1600x40xf32, #tpu.memory_space<vmem>>, vector<1280x40xf32>
    %c0_3 = arith.constant 0 : index
    %c0_4 = arith.constant 0 : index
    %3 = vector.load %arg2[%c0_3, %c0_4] : memref<424x64xf32, #tpu.memory_space<vmem>>, vector<40x32xf32>
    %cst_5 = arith.constant dense<0.000000e+00> : vector<1280x32xf32>
    %4 = tpu.matmul %2, %3, %cst_5 {dimension_numbers = #tpu.dot_dimension_numbers<[1], [0], [0], [1], [0, 0, 1, 1], [], []>} : vector<1280x40xf32>, vector<40x32xf32>, vector<1280x32xf32> -> vector<1280x32xf32>
    %c40 = arith.constant 40 : index
    %c0_6 = arith.constant 0 : index
    %5 = vector.load %arg2[%c40, %c0_6] : memref<424x64xf32, #tpu.memory_space<vmem>>, vector<1x32xf32>
    %6 = vector.broadcast %5 : vector<1x32xf32> to vector<1280x32xf32>
    %7 = arith.addf %4, %6 : vector<1280x32xf32>
    %cst_7 = arith.constant 0.000000e+00 : f32
    %8 = vector.broadcast %cst_7 : f32 to vector<1280x32xf32>
    %9 = arith.maximumf %7, %8 : vector<1280x32xf32>
    %10 = vector.shape_cast %9 : vector<1280x32xf32> to vector<20x64x32xf32>
    %cst_8 = arith.constant dense<0.000000e+00> : vector<20x32xf32>
    %11 = vector.multi_reduction <add>, %10, %cst_8 [1] : vector<20x64x32xf32> to vector<20x32xf32>
    %cst_9 = arith.constant 6.400000e+01 : f32
    %12 = vector.broadcast %cst_9 : f32 to vector<20x32xf32>
    %13 = arith.divf %11, %12 : vector<20x32xf32>
    %14 = vector.extract_strided_slice %13 {offsets = [0, 0], sizes = [5, 32], strides = [1, 1]} : vector<20x32xf32> to vector<5x32xf32>
    %15 = vector.extract_strided_slice %13 {offsets = [5, 0], sizes = [15, 32], strides = [1, 1]} : vector<20x32xf32> to vector<15x32xf32>
    %c96 = arith.constant 96 : index
    %c0_10 = arith.constant 0 : index
    %16 = vector.load %arg2[%c96, %c0_10] : memref<424x64xf32, #tpu.memory_space<vmem>>, vector<32x64xf32>
    %cst_11 = arith.constant dense<0.000000e+00> : vector<5x64xf32>
    %17 = tpu.matmul %14, %16, %cst_11 {dimension_numbers = #tpu.dot_dimension_numbers<[1], [0], [0], [1], [0, 0, 1, 1], [], []>} : vector<5x32xf32>, vector<32x64xf32>, vector<5x64xf32> -> vector<5x64xf32>
    %c128 = arith.constant 128 : index
    %c0_12 = arith.constant 0 : index
    %18 = vector.load %arg2[%c128, %c0_12] : memref<424x64xf32, #tpu.memory_space<vmem>>, vector<1x64xf32>
    %19 = vector.broadcast %18 : vector<1x64xf32> to vector<5x64xf32>
    %20 = arith.addf %17, %19 : vector<5x64xf32>
    %21 = math.tanh %20 : vector<5x64xf32>
    %cst_13 = arith.constant dense<0.000000e+00> : vector<64xf32>
    %22 = vector.multi_reduction <add>, %21, %cst_13 [0] : vector<5x64xf32> to vector<64xf32>
    %23 = vector.shape_cast %22 : vector<64xf32> to vector<1x64xf32>
    %cst_14 = arith.constant 5.000000e+00 : f32
    %24 = vector.broadcast %cst_14 : f32 to vector<1x64xf32>
    %25 = arith.divf %23, %24 : vector<1x64xf32>
    %c136 = arith.constant 136 : index
    %c0_15 = arith.constant 0 : index
    %26 = vector.load %arg2[%c136, %c0_15] : memref<424x64xf32, #tpu.memory_space<vmem>>, vector<64x32xf32>
    %cst_16 = arith.constant dense<0.000000e+00> : vector<1x32xf32>
    %27 = tpu.matmul %25, %26, %cst_16 {dimension_numbers = #tpu.dot_dimension_numbers<[1], [0], [0], [1], [0, 0, 1, 1], [], []>} : vector<1x64xf32>, vector<64x32xf32>, vector<1x32xf32> -> vector<1x32xf32>
    %c200 = arith.constant 200 : index
    %c0_17 = arith.constant 0 : index
    %28 = vector.load %arg2[%c200, %c0_17] : memref<424x64xf32, #tpu.memory_space<vmem>>, vector<1x32xf32>
    %29 = arith.addf %27, %28 : vector<1x32xf32>
    %cst_18 = arith.constant 0.000000e+00 : f32
    %30 = vector.broadcast %cst_18 : f32 to vector<1x32xf32>
    %31 = arith.maximumf %29, %30 : vector<1x32xf32>
    %c208 = arith.constant 208 : index
    %c0_19 = arith.constant 0 : index
    %32 = vector.load %arg2[%c208, %c0_19] : memref<424x64xf32, #tpu.memory_space<vmem>>, vector<32x16xf32>
    %cst_20 = arith.constant dense<0.000000e+00> : vector<1x16xf32>
    %33 = tpu.matmul %31, %32, %cst_20 {dimension_numbers = #tpu.dot_dimension_numbers<[1], [0], [0], [1], [0, 0, 1, 1], [], []>} : vector<1x32xf32>, vector<32x16xf32>, vector<1x16xf32> -> vector<1x16xf32>
    %c240 = arith.constant 240 : index
    %c0_21 = arith.constant 0 : index
    %34 = vector.load %arg2[%c240, %c0_21] : memref<424x64xf32, #tpu.memory_space<vmem>>, vector<1x16xf32>
    %35 = arith.addf %33, %34 : vector<1x16xf32>
    %36 = arith.mulf %35, %35 : vector<1x16xf32>
    %cst_22 = arith.constant dense<0.000000e+00> : vector<1xf32>
    %37 = vector.multi_reduction <add>, %36, %cst_22 [1] : vector<1x16xf32> to vector<1xf32>
    %38 = vector.shape_cast %37 : vector<1xf32> to vector<1x1xf32>
    %cst_23 = arith.constant 1.000000e-24 : f32
    %39 = vector.broadcast %cst_23 : f32 to vector<1x1xf32>
    %40 = arith.maximumf %38, %39 : vector<1x1xf32>
    %41 = math.rsqrt %40 : vector<1x1xf32>
    %42 = vector.broadcast %41 : vector<1x1xf32> to vector<1x16xf32>
    %43 = arith.mulf %35, %42 : vector<1x16xf32>
    %44 = arith.mulf %14, %14 : vector<5x32xf32>
    %cst_24 = arith.constant dense<0.000000e+00> : vector<5xf32>
    %45 = vector.multi_reduction <add>, %44, %cst_24 [1] : vector<5x32xf32> to vector<5xf32>
    %46 = vector.shape_cast %45 : vector<5xf32> to vector<5x1xf32>
    %cst_25 = arith.constant 1.000000e-24 : f32
    %47 = vector.broadcast %cst_25 : f32 to vector<5x1xf32>
    %48 = arith.maximumf %46, %47 : vector<5x1xf32>
    %49 = math.rsqrt %48 : vector<5x1xf32>
    %50 = vector.broadcast %49 : vector<5x1xf32> to vector<5x32xf32>
    %51 = arith.mulf %14, %50 : vector<5x32xf32>
    %cst_26 = arith.constant dense<0.000000e+00> : vector<15x5xf32>
    %52 = tpu.matmul %15, %51, %cst_26 {dimension_numbers = #tpu.dot_dimension_numbers<[1], [1], [0], [0], [0, 0, 1, 0], [], []>} : vector<15x32xf32>, vector<5x32xf32>, vector<15x5xf32> -> vector<15x5xf32>
    %c0_27 = arith.constant 0 : index
    %c0_28 = arith.constant 0 : index
    %53 = vector.load %arg4[%c0_27, %c0_28] : memref<48x128xf32, #tpu.memory_space<vmem>>, vector<15x5xf32>
    tpu.vector_store %arg4[%c0_27, %c0_28], %52 {strides = array<i32>} : memref<48x128xf32, #tpu.memory_space<vmem>>, vector<15x5xf32>,
    %c96_29 = arith.constant 96 : index
    %c0_30 = arith.constant 0 : index
    %54 = vector.load %arg2[%c96_29, %c0_30] : memref<424x64xf32, #tpu.memory_space<vmem>>, vector<32x64xf32>
    %cst_31 = arith.constant dense<0.000000e+00> : vector<15x64xf32>
    %55 = tpu.matmul %15, %54, %cst_31 {dimension_numbers = #tpu.dot_dimension_numbers<[1], [0], [0], [1], [0, 0, 1, 1], [], []>} : vector<15x32xf32>, vector<32x64xf32>, vector<15x64xf32> -> vector<15x64xf32>
    %c128_32 = arith.constant 128 : index
    %c0_33 = arith.constant 0 : index
    %56 = vector.load %arg2[%c128_32, %c0_33] : memref<424x64xf32, #tpu.memory_space<vmem>>, vector<1x64xf32>
    %57 = vector.broadcast %56 : vector<1x64xf32> to vector<15x64xf32>
    %58 = arith.addf %55, %57 : vector<15x64xf32>
    %59 = math.tanh %58 : vector<15x64xf32>
    %cst_34 = arith.constant dense<0.000000e+00> : vector<15x5xf32>
    %60 = tpu.matmul %59, %21, %cst_34 {dimension_numbers = #tpu.dot_dimension_numbers<[1], [1], [0], [0], [0, 0, 1, 0], [], []>} : vector<15x64xf32>, vector<5x64xf32>, vector<15x5xf32> -> vector<15x5xf32>
    %c16 = arith.constant 16 : index
    %c0_35 = arith.constant 0 : index
    %61 = vector.load %arg4[%c16, %c0_35] : memref<48x128xf32, #tpu.memory_space<vmem>>, vector<15x5xf32>
    tpu.vector_store %arg4[%c16, %c0_35], %60 {strides = array<i32>} : memref<48x128xf32, #tpu.memory_space<vmem>>, vector<15x5xf32>,
    %c248 = arith.constant 248 : index
    %c0_36 = arith.constant 0 : index
    %62 = vector.load %arg2[%c248, %c0_36] : memref<424x64xf32, #tpu.memory_space<vmem>>, vector<16x10xf32>
    %cst_37 = arith.constant dense<0.000000e+00> : vector<1x10xf32>
    %63 = tpu.matmul %43, %62, %cst_37 {dimension_numbers = #tpu.dot_dimension_numbers<[1], [0], [0], [1], [0, 0, 1, 1], [], []>} : vector<1x16xf32>, vector<16x10xf32>, vector<1x10xf32> -> vector<1x10xf32>
    %c264 = arith.constant 264 : index
    %c0_38 = arith.constant 0 : index
    %64 = vector.load %arg2[%c264, %c0_38] : memref<424x64xf32, #tpu.memory_space<vmem>>, vector<1x10xf32>
    %65 = arith.addf %63, %64 : vector<1x10xf32>
    %c32 = arith.constant 32 : index
    %c0_39 = arith.constant 0 : index
    %66 = vector.load %arg4[%c32, %c0_39] : memref<48x128xf32, #tpu.memory_space<vmem>>, vector<1x10xf32>
    tpu.vector_store %arg4[%c32, %c0_39], %65 {strides = array<i32>} : memref<48x128xf32, #tpu.memory_space<vmem>>, vector<1x10xf32>,
    %c1280 = arith.constant 1280 : index
    %c0_40 = arith.constant 0 : index
    %67 = vector.load %arg1[%c1280, %c0_40] : memref<1600x40xf32, #tpu.memory_space<vmem>>, vector<320x40xf32>
    %c48 = arith.constant 48 : index
    %c0_41 = arith.constant 0 : index
    %68 = vector.load %arg2[%c48, %c0_41] : memref<424x64xf32, #tpu.memory_space<vmem>>, vector<40x32xf32>
    %cst_42 = arith.constant dense<0.000000e+00> : vector<320x32xf32>
    %69 = tpu.matmul %67, %68, %cst_42 {dimension_numbers = #tpu.dot_dimension_numbers<[1], [0], [0], [1], [0, 0, 1, 1], [], []>} : vector<320x40xf32>, vector<40x32xf32>, vector<320x32xf32> -> vector<320x32xf32>
    %c88 = arith.constant 88 : index
    %c0_43 = arith.constant 0 : index
    %70 = vector.load %arg2[%c88, %c0_43] : memref<424x64xf32, #tpu.memory_space<vmem>>, vector<1x32xf32>
    %71 = vector.broadcast %70 : vector<1x32xf32> to vector<320x32xf32>
    %72 = arith.addf %69, %71 : vector<320x32xf32>
    %cst_44 = arith.constant 0.000000e+00 : f32
    %73 = vector.broadcast %cst_44 : f32 to vector<320x32xf32>
    %74 = arith.maximumf %72, %73 : vector<320x32xf32>
    %75 = vector.shape_cast %74 : vector<320x32xf32> to vector<5x64x32xf32>
    %cst_45 = arith.constant dense<0.000000e+00> : vector<5x32xf32>
    %76 = vector.multi_reduction <add>, %75, %cst_45 [1] : vector<5x64x32xf32> to vector<5x32xf32>
    %cst_46 = arith.constant 6.400000e+01 : f32
    %77 = vector.broadcast %cst_46 : f32 to vector<5x32xf32>
    %78 = arith.divf %76, %77 : vector<5x32xf32>
    %c272 = arith.constant 272 : index
    %c0_47 = arith.constant 0 : index
    %79 = vector.load %arg2[%c272, %c0_47] : memref<424x64xf32, #tpu.memory_space<vmem>>, vector<32x64xf32>
    %cst_48 = arith.constant dense<0.000000e+00> : vector<5x64xf32>
    %80 = tpu.matmul %78, %79, %cst_48 {dimension_numbers = #tpu.dot_dimension_numbers<[1], [0], [0], [1], [0, 0, 1, 1], [], []>} : vector<5x32xf32>, vector<32x64xf32>, vector<5x64xf32> -> vector<5x64xf32>
    %c304 = arith.constant 304 : index
    %c0_49 = arith.constant 0 : index
    %81 = vector.load %arg2[%c304, %c0_49] : memref<424x64xf32, #tpu.memory_space<vmem>>, vector<1x64xf32>
    %82 = vector.broadcast %81 : vector<1x64xf32> to vector<5x64xf32>
    %83 = arith.addf %80, %82 : vector<5x64xf32>
    %84 = math.tanh %83 : vector<5x64xf32>
    %cst_50 = arith.constant dense<0.000000e+00> : vector<64xf32>
    %85 = vector.multi_reduction <add>, %84, %cst_50 [0] : vector<5x64xf32> to vector<64xf32>
    %86 = vector.shape_cast %85 : vector<64xf32> to vector<1x64xf32>
    %cst_51 = arith.constant 5.000000e+00 : f32
    %87 = vector.broadcast %cst_51 : f32 to vector<1x64xf32>
    %88 = arith.divf %86, %87 : vector<1x64xf32>
    %c312 = arith.constant 312 : index
    %c0_52 = arith.constant 0 : index
    %89 = vector.load %arg2[%c312, %c0_52] : memref<424x64xf32, #tpu.memory_space<vmem>>, vector<64x32xf32>
    %cst_53 = arith.constant dense<0.000000e+00> : vector<1x32xf32>
    %90 = tpu.matmul %88, %89, %cst_53 {dimension_numbers = #tpu.dot_dimension_numbers<[1], [0], [0], [1], [0, 0, 1, 1], [], []>} : vector<1x64xf32>, vector<64x32xf32>, vector<1x32xf32> -> vector<1x32xf32>
    %c376 = arith.constant 376 : index
    %c0_54 = arith.constant 0 : index
    %91 = vector.load %arg2[%c376, %c0_54] : memref<424x64xf32, #tpu.memory_space<vmem>>, vector<1x32xf32>
    %92 = arith.addf %90, %91 : vector<1x32xf32>
    %cst_55 = arith.constant 0.000000e+00 : f32
    %93 = vector.broadcast %cst_55 : f32 to vector<1x32xf32>
    %94 = arith.maximumf %92, %93 : vector<1x32xf32>
    %c384 = arith.constant 384 : index
    %c0_56 = arith.constant 0 : index
    %95 = vector.load %arg2[%c384, %c0_56] : memref<424x64xf32, #tpu.memory_space<vmem>>, vector<32x16xf32>
    %cst_57 = arith.constant dense<0.000000e+00> : vector<1x16xf32>
    %96 = tpu.matmul %94, %95, %cst_57 {dimension_numbers = #tpu.dot_dimension_numbers<[1], [0], [0], [1], [0, 0, 1, 1], [], []>} : vector<1x32xf32>, vector<32x16xf32>, vector<1x16xf32> -> vector<1x16xf32>
    %c416 = arith.constant 416 : index
    %c0_58 = arith.constant 0 : index
    %97 = vector.load %arg2[%c416, %c0_58] : memref<424x64xf32, #tpu.memory_space<vmem>>, vector<1x16xf32>
    %98 = arith.addf %96, %97 : vector<1x16xf32>
    %99 = arith.mulf %98, %98 : vector<1x16xf32>
    %cst_59 = arith.constant dense<0.000000e+00> : vector<1xf32>
    %100 = vector.multi_reduction <add>, %99, %cst_59 [1] : vector<1x16xf32> to vector<1xf32>
    %101 = vector.shape_cast %100 : vector<1xf32> to vector<1x1xf32>
    %cst_60 = arith.constant 1.000000e-24 : f32
    %102 = vector.broadcast %cst_60 : f32 to vector<1x1xf32>
    %103 = arith.maximumf %101, %102 : vector<1x1xf32>
    %104 = math.rsqrt %103 : vector<1x1xf32>
    %105 = vector.broadcast %104 : vector<1x1xf32> to vector<1x16xf32>
    %106 = arith.mulf %98, %105 : vector<1x16xf32>
    %107 = arith.mulf %43, %106 : vector<1x16xf32>
    %cst_61 = arith.constant dense<0.000000e+00> : vector<1xf32>
    %108 = vector.multi_reduction <add>, %107, %cst_61 [1] : vector<1x16xf32> to vector<1xf32>
    %109 = vector.shape_cast %108 : vector<1xf32> to vector<1x1xf32>
    %cst_62 = arith.constant 14.2857141 : f32
    %110 = vector.broadcast %cst_62 : f32 to vector<1x1xf32>
    %111 = arith.mulf %109, %110 : vector<1x1xf32>
    %c33 = arith.constant 33 : index
    %c0_63 = arith.constant 0 : index
    %112 = vector.load %arg4[%c33, %c0_63] : memref<48x128xf32, #tpu.memory_space<vmem>>, vector<1x1xf32>
    tpu.vector_store %arg4[%c33, %c0_63], %111 {strides = array<i32>} : memref<48x128xf32, #tpu.memory_space<vmem>>, vector<1x1xf32>,
    %c0_64 = arith.constant 0 : index
    %c0_65 = arith.constant 0 : index
    %113 = vector.load %arg3[%c0_64, %c0_65] : memref<8x16xf32, #tpu.memory_space<vmem>>, vector<8x16xf32>
    %cst_66 = arith.constant dense<0.000000e+00> : vector<1x8xf32>
    %114 = tpu.matmul %43, %113, %cst_66 {dimension_numbers = #tpu.dot_dimension_numbers<[1], [1], [0], [0], [0, 0, 1, 0], [], []>} : vector<1x16xf32>, vector<8x16xf32>, vector<1x8xf32> -> vector<1x8xf32>
    %cst_67 = arith.constant 14.2857141 : f32
    %115 = vector.broadcast %cst_67 : f32 to vector<1x8xf32>
    %116 = arith.mulf %114, %115 : vector<1x8xf32>
    %c33_68 = arith.constant 33 : index
    %c1 = arith.constant 1 : index
    %117 = vector.load %arg4[%c33_68, %c1] : memref<48x128xf32, #tpu.memory_space<vmem>>, vector<1x8xf32>
    tpu.vector_store %arg4[%c33_68, %c1], %116 {strides = array<i32>} : memref<48x128xf32, #tpu.memory_space<vmem>>, vector<1x8xf32>,
    %c0_69 = arith.constant 0 : index
    %c0_70 = arith.constant 0 : index
    %118 = vector.load %arg3[%c0_69, %c0_70] : memref<8x16xf32, #tpu.memory_space<vmem>>, vector<8x16xf32>
    %c40_71 = arith.constant 40 : index
    %c0_72 = arith.constant 0 : index
    %119 = vector.load %arg4[%c40_71, %c0_72] : memref<48x128xf32, #tpu.memory_space<vmem>>, vector<8x16xf32>
    tpu.vector_store %arg4[%c40_71, %c0_72], %118 {strides = array<i32>} : memref<48x128xf32, #tpu.memory_space<vmem>>, vector<8x16xf32>,
    %c0_73 = arith.constant 0 : index
    %120 = memref.load %arg0[%c0_73] : memref<1xi32, #tpu.memory_space<smem>>
    %c40_i32 = arith.constant 40 : i32
    %121 = arith.addi %c40_i32, %120 : i32
    %122 = arith.index_cast %121 : i32 to index
    %c0_74 = arith.constant 0 : index
    %123 = vector.load %arg4[%122, %c0_74] : memref<48x128xf32, #tpu.memory_space<vmem>>, vector<1x16xf32>
    tpu.vector_store %arg4[%122, %c0_74], %106 {strides = array<i32>} : memref<48x128xf32, #tpu.memory_space<vmem>>, vector<1x16xf32>,
    return
  }
}

</mosaic_0001>

<bundles_post_ra>
// kernel: _moco_device_forward.1
= control target key start
LH: loop header
LB: loop body
LE: loop exit
PB: predicated region body
PF: predicated region fallthrough
CT: control target
= control target key end

     0   :  { %vm194_vm0 = vcmask 326656   ;;  %vm4738_vm1 = vmmov 0   ;;  %vm1700_vm2 = vcmask 261120   ;;  %vm2156_vm3 = vcmask 1041409   ;;  %s4739_s10 = smov 1   ;;  %s6532_s2 = inlined_call_operand.vmem [shape: f32[424,64], index: 2, kind: input, shape index: {}]   ;;  %s6533_s1 = inlined_call_operand.vmem [shape: f32[1600,40], index: 1, kind: input, shape index: {}]   ;;  %s6534_s4 = inlined_call_operand.vmem [shape: f32[48,128], index: 4, kind: output, shape index: {}]   ;;  %s6535_s3 = inlined_call_operand.vmem [shape: f32[8,16], index: 3, kind: input, shape index: {}]   ;;  %s6536_s0 = inlined_call_operand.<no memory space> [shape: s32[1], index: 0, kind: input, shape index: {}]  }
   0x1   :  { %v188_v0 = vld [vmem:[%s6532_s2 + $0x20] sm:$0xff]  ;;  %v187_v1 = vld [vmem:[%s6532_s2 + $0x18] sm:$0xff]  ;;  %v186_v3 = vld [vmem:[%s6532_s2 + $0x10] sm:$0xff]  ;;  %vm2158_vm4 = vcmask 1042434   ;;  %vm2160_vm5 = vcmask 1043459   ;;  %vm2162_vm6 = vcmask 1044484   ;;  %s3783_s14 = scalar_lea.vmem %s6534_s4, %s6536_s0 }
   0x2   :  { %4273 = vmatprep.subr.mxu0 %v188_v0  ;;  %v24_v2 = vld [vmem:[%s6533_s1] sm:$0xff]  ;;  %4708 = vmatprep.subr.mxu1 %v188_v0  ;;  %v185_v4 = vld [vmem:[%s6532_s2 + $0x8] sm:$0xff]  ;;  %v26_v7 = vld [vmem:[%s6533_s1 + $0x10] sm:$0xff]  ;;  %vm2432_vm7 = vcmask 258048   ;;  %vm2472_vm8 = vcmask 1045509   ;;  %vm2474_vm9 = vcmask 1046534  }
   0x3   :  { %4274 = vmatpush3.msra.mxu0 %v188_v0  ;;  %4283 = vmatprep.mubr.msk.f32.mxu0 %vm194_vm0, %v24_v2  ;;  %v184_v5 = vld [vmem:[%s6532_s2] sm:$0xff]  ;;  %v25_v6 = vld [vmem:[%s6533_s1 + $0x8] sm:$0xff]  ;;  %v27_v8 = vld [vmem:[%s6533_s1 + $0x18] sm:$0xff]  ;;  %vm2237_vm10 = vcmask 520192   ;;  %vm2256_vm11 = vcmask 523264   ;;  %vm2476_vm12 = vcmask 1047559  }
   0x4   :  { %4275 = vmatprep.subr.mxu0 %v187_v1  ;;  %4713 = vmatpush3.msra.mxu1 %v188_v0  ;;  %v28_v9 = vld [vmem:[%s6533_s1 + $0x20] sm:$0xff]  ;;  %v29_v10 = vld [vmem:[%s6533_s1 + $0x28] sm:$0xff]  ;;  %v30_v11 = vld [vmem:[%s6533_s1 + $0x30] sm:$0xff]  ;;  %vm2580_vm13 = vcmask 38912   ;;  %vm2410_vm14 = vcmask 122880   ;;  %vm2578_vm15 = vcmask 39936  }
   0x5   :  { %4276 = vmatpush3.msra.mxu0 %v187_v1  ;;  %4709 = vmatprep.subr.mxu1 %v187_v1  ;;  %v31_v12 = vld [vmem:[%s6533_s1 + $0x38] sm:$0xff]  ;;  %v32_v13 = vld [vmem:[%s6533_s1 + $0x40] sm:$0xff]  ;;  %v33_v14 = vld [vmem:[%s6533_s1 + $0x48] sm:$0xff] }
   0x6   :  { %4277 = vmatprep.subr.mxu0 %v186_v3  ;;  %4714 = vmatpush3.msra.mxu1 %v187_v1  ;;  %v34_v15 = vld [vmem:[%s6533_s1 + $0x50] sm:$0xff]  ;;  %v35_v16 = vld [vmem:[%s6533_s1 + $0x58] sm:$0xff]  ;;  %v36_v17 = vld [vmem:[%s6533_s1 + $0x60] sm:$0xff] }
   0x7   :  { %4278 = vmatpush3.msra.mxu0 %v186_v3  ;;  %4710 = vmatprep.subr.mxu1 %v186_v3  ;;  %v37_v18 = vld [vmem:[%s6533_s1 + $0x68] sm:$0xff]  ;;  %v38_v19 = vld [vmem:[%s6533_s1 + $0x70] sm:$0xff]  ;;  %v39_v20 = vld [vmem:[%s6533_s1 + $0x78] sm:$0xff] }
   0x8   :  { %4279 = vmatprep.subr.mxu0 %v185_v4  ;;  %4715 = vmatpush3.msra.mxu1 %v186_v3  ;;  %v40_v21 = vld [vmem:[%s6533_s1 + $0x80] sm:$0xff]  ;;  %v41_v22 = vld [vmem:[%s6533_s1 + $0x88] sm:$0xff]  ;;  %v42_v23 = vld [vmem:[%s6533_s1 + $0x90] sm:$0xff] }
   0x9   :  { %4280 = vmatpush3.msra.mxu0 %v185_v4  ;;  %4711 = vmatprep.subr.mxu1 %v185_v4  ;;  %v43_v24 = vld [vmem:[%s6533_s1 + $0x98] sm:$0xff]  ;;  %v44_v25 = vld [vmem:[%s6533_s1 + $0xa0] sm:$0xff]  ;;  %v45_v26 = vld [vmem:[%s6533_s1 + $0xa8] sm:$0xff] }
   0xa   :  { %4281 = vmatprep.subr.mxu0 %v184_v5  ;;  %4716 = vmatpush3.msra.mxu1 %v185_v4  ;;  %v46_v27 = vld [vmem:[%s6533_s1 + $0xb0] sm:$0xff]  ;;  %v47_v28 = vld [vmem:[%s6533_s1 + $0xb8] sm:$0xff]  ;;  %v48_v29 = vld [vmem:[%s6533_s1 + $0xc0] sm:$0xff] }
   0xb   :  { %4282 = vmatpush3.msra.mxu0 %v184_v5  ;;  %4712 = vmatprep.subr.mxu1 %v184_v5  ;;  %v49_v30 = vld [vmem:[%s6533_s1 + $0xc8] sm:$0xff]  ;;  %v50_v31 = vld [vmem:[%s6533_s1 + $0xd0] sm:$0xff]  ;;  %v51_v32 = vld [vmem:[%s6533_s1 + $0xd8] sm:$0xff] }
   0xc   :  { %4284 = vmatmul.mubr.msk.f32.vlgmr.msra.gmra.mxu0 %vm194_vm0, %v25_v6  ;;  %4717 = vmatpush3.msra.mxu1 %v184_v5  ;;  %v52_v33 = vld [vmem:[%s6533_s1 + $0xe0] sm:$0xff]  ;;  %v146_v34 = vld [vmem:[%s6533_s1 + $0x3d0] sm:$0xff]  ;;  %v147_v35 = vld [vmem:[%s6533_s1 + $0x3d8] sm:$0xff] }
   0xd   :  { %4286 = vmatprep.mubr.msk.f32.mxu0 %vm194_vm0, %v26_v7  ;;  %v53_v36 = vld [vmem:[%s6533_s1 + $0xe8] sm:$0xff]  ;;  %4466 = vmatprep.mubr.msk.f32.mxu1 %vm194_vm0, %v146_v34  ;;  %v54_v37 = vld [vmem:[%s6533_s1 + $0xf0] sm:$0xff]  ;;  %v148_v38 = vld [vmem:[%s6533_s1 + $0x3e0] sm:$0xff] }
   0xe   :  { %4467 = vmatmul.mubr.msk.f32.vlgmr.msra.gmra.mxu1 %vm194_vm0, %v147_v35  ;;  %v149_v39 = vld [vmem:[%s6533_s1 + $0x3e8] sm:$0xff]  ;;  %v55_v40 = vld [vmem:[%s6533_s1 + $0xf8] sm:$0xff]  ;;  %v56_v41 = vld [vmem:[%s6533_s1 + $0x100] sm:$0xff] }
   0xf   :  { %4469 = vmatprep.mubr.msk.f32.mxu1 %vm194_vm0, %v148_v38  ;;  %v150_v42 = vld [vmem:[%s6533_s1 + $0x3f0] sm:$0xff]  ;;  %v151_v43 = vld [vmem:[%s6533_s1 + $0x3f8] sm:$0xff]  ;;  %v57_v44 = vld [vmem:[%s6533_s1 + $0x108] sm:$0xff] }
  0x10   :  { %4287 = vmatmul.mubr.msk.f32.gmra.mxu0 %vm194_vm0, %v27_v8  ;;  %v58_v45 = vld [vmem:[%s6533_s1 + $0x110] sm:$0xff]  ;;  %v152_v46 = vld [vmem:[%s6533_s1 + $0x400] sm:$0xff]  ;;  %v59_v47 = vld [vmem:[%s6533_s1 + $0x118] sm:$0xff] }
  0x11   :  { %4289 = vmatprep.mubr.msk.f32.mxu0 %vm194_vm0, %v28_v9  ;;  %v153_v48 = vld [vmem:[%s6533_s1 + $0x408] sm:$0xff]  ;;  %v60_v49 = vld [vmem:[%s6533_s1 + $0x120] sm:$0xff]  ;;  %v154_v50 = vld [vmem:[%s6533_s1 + $0x410] sm:$0xff] }
  0x12   :  { %4470 = vmatmul.mubr.msk.f32.gmra.mxu1 %vm194_vm0, %v149_v39  ;;  %v61_v51 = vld [vmem:[%s6533_s1 + $0x128] sm:$0xff]  ;;  %v155_v52 = vld [vmem:[%s6533_s1 + $0x418] sm:$0xff]  ;;  %v62_v53 = vld [vmem:[%s6533_s1 + $0x130] sm:$0xff] }
  0x13   :  { %4472 = vmatprep.mubr.msk.f32.mxu1 %vm194_vm0, %v150_v42  ;;  %v156_v54 = vld [vmem:[%s6533_s1 + $0x420] sm:$0xff]  ;;  %v63_v55 = vld [vmem:[%s6533_s1 + $0x138] sm:$0xff]  ;;  %v157_v56 = vld [vmem:[%s6533_s1 + $0x428] sm:$0xff] }
  0x14   :  { %4290 = vmatmul.mubr.msk.f32.gmra.mxu0 %vm194_vm0, %v29_v10  ;;  %v64_v57 = vld [vmem:[%s6533_s1 + $0x140] sm:$0xff]  ;;  %v158_v58 = vld [vmem:[%s6533_s1 + $0x430] sm:$0xff]  ;;  %v65_v59 = vld [vmem:[%s6533_s1 + $0x148] sm:$0xff] }
  0x15   :  { %4292 = vmatprep.mubr.msk.f32.mxu0 %vm194_vm0, %v30_v11  ;;  %v159_v60 = vld [vmem:[%s6533_s1 + $0x438] sm:$0xff]  ;;  %v66_v61 = vld [vmem:[%s6533_s1 + $0x150] sm:$0xff]  ;;  %v160_v62 = vld [vmem:[%s6533_s1 + $0x440] sm:$0xff] }
  0x16   :  { %4473 = vmatmul.mubr.msk.f32.gmra.mxu1 %vm194_vm0, %v151_v43  ;;  %v67_v63 = vld [vmem:[%s6533_s1 + $0x158] sm:$0xff]  ;;  %v161_v0 = vld [vmem:[%s6533_s1 + $0x448] sm:$0xff]  ;;  %v68_v1 = vld [vmem:[%s6533_s1 + $0x160] sm:$0xff] }
  0x17   :  { %4475 = vmatprep.mubr.msk.f32.mxu1 %vm194_vm0, %v152_v46  ;;  %v162_v2 = vld [vmem:[%s6533_s1 + $0x450] sm:$0xff]  ;;  %v69_v3 = vld [vmem:[%s6533_s1 + $0x168] sm:$0xff]  ;;  %v163_v4 = vld [vmem:[%s6533_s1 + $0x458] sm:$0xff] }
  0x18   :  { %4293 = vmatmul.mubr.msk.f32.gmra.mxu0 %vm194_vm0, %v31_v12  ;;  %v70_v5 = vld [vmem:[%s6533_s1 + $0x170] sm:$0xff]  ;;  %v164_v6 = vld [vmem:[%s6533_s1 + $0x460] sm:$0xff]  ;;  %v71_v7 = vld [vmem:[%s6533_s1 + $0x178] sm:$0xff] }
  0x19   :  { %4295 = vmatprep.mubr.msk.f32.mxu0 %vm194_vm0, %v32_v13  ;;  %v165_v8 = vld [vmem:[%s6533_s1 + $0x468] sm:$0xff]  ;;  %v72_v9 = vld [vmem:[%s6533_s1 + $0x180] sm:$0xff]  ;;  %v166_v10 = vld [vmem:[%s6533_s1 + $0x470] sm:$0xff] }
  0x1a   :  { %4476 = vmatmul.mubr.msk.f32.gmra.mxu1 %vm194_vm0, %v153_v48  ;;  %v73_v11 = vld [vmem:[%s6533_s1 + $0x188] sm:$0xff]  ;;  %v167_v12 = vld [vmem:[%s6533_s1 + $0x478] sm:$0xff]  ;;  %v74_v13 = vld [vmem:[%s6533_s1 + $0x190] sm:$0xff] }
  0x1b   :  { %4478 = vmatprep.mubr.msk.f32.mxu1 %vm194_vm0, %v154_v50  ;;  %v177_v34 = vld [vmem:[%s6533_s1 + $0x4c8] sm:$0xff]  ;;  %v84_v35 = vld [vmem:[%s6533_s1 + $0x1e0] sm:$0xff]  ;;  %v179_v38 = vld [vmem:[%s6533_s1 + $0x4d8] sm:$0xff] }
  0x1c   :  { %4296 = vmatmul.mubr.msk.f32.gmra.mxu0 %vm194_vm0, %v33_v14  ;;  %v168_v14 = vld [vmem:[%s6533_s1 + $0x480] sm:$0xff]  ;;  %v86_v39 = vld [vmem:[%s6533_s1 + $0x1f0] sm:$0xff]  ;;  %v181_v42 = vld [vmem:[%s6533_s1 + $0x4e8] sm:$0xff] }
  0x1d   :  { %4298 = vmatprep.mubr.msk.f32.mxu0 %vm194_vm0, %v34_v15  ;;  %v75_v15 = vld [vmem:[%s6533_s1 + $0x198] sm:$0xff]  ;;  %v88_v43 = vld [vmem:[%s6533_s1 + $0x200] sm:$0xff]  ;;  %v2144_v50 = vld [vmem:[%s6532_s2 + $0x70] sm:$0xff] }
  0x1e   :  { %4479 = vmatmul.mubr.msk.f32.gmra.mxu1 %vm194_vm0, %v155_v52  ;;  %v183_v46 = vld [vmem:[%s6533_s1 + $0x4f8] sm:$0xff]  ;;  %v94_v52 = vld [vmem:[%s6533_s1 + $0x230] sm:$0xff] }
  0x1f   :  { %4481 = vmatprep.mubr.msk.f32.mxu1 %vm194_vm0, %v156_v54  ;;  %v91_v48 = vld [vmem:[%s6533_s1 + $0x218] sm:$0xff]  ;;  %v96_v54 = vld [vmem:[%s6533_s1 + $0x240] sm:$0xff] }
  0x20   :  { %4299 = vmatmul.mubr.msk.f32.gmra.mxu0 %vm194_vm0, %v35_v16  ;;  %v169_v16 = vld [vmem:[%s6533_s1 + $0x488] sm:$0xff] }
  0x21   :  { %4301 = vmatprep.mubr.msk.f32.mxu0 %vm194_vm0, %v36_v17  ;;  %v76_v17 = vld [vmem:[%s6533_s1 + $0x1a0] sm:$0xff] }
  0x22   :  { %4482 = vmatmul.mubr.msk.f32.gmra.mxu1 %vm194_vm0, %v157_v56  ;;  %v98_v56 = vld [vmem:[%s6533_s1 + $0x250] sm:$0xff] }
  0x23   :  { %4484 = vmatprep.mubr.msk.f32.mxu1 %vm194_vm0, %v158_v58  ;;  %v100_v58 = vld [vmem:[%s6533_s1 + $0x260] sm:$0xff] }
  0x24   :  { %4302 = vmatmul.mubr.msk.f32.gmra.mxu0 %vm194_vm0, %v37_v18  ;;  %v2145_v18 = vld [vmem:[%s6532_s2 + $0x78] sm:$0xff] }
  0x25   :  { %4304 = vmatprep.mubr.msk.f32.mxu0 %vm194_vm0, %v38_v19  ;;  %v170_v19 = vld [vmem:[%s6533_s1 + $0x490] sm:$0xff] }
  0x26   :  { %4485 = vmatmul.mubr.msk.f32.gmra.mxu1 %vm194_vm0, %v159_v60  ;;  %v101_v60 = vld [vmem:[%s6533_s1 + $0x268] sm:$0xff] }
  0x27   :  { %4487 = vmatprep.mubr.msk.f32.mxu1 %vm194_vm0, %v160_v62  ;;  %v103_v62 = vld [vmem:[%s6533_s1 + $0x278] sm:$0xff] }
  0x28   :  { %4305 = vmatmul.mubr.msk.f32.gmra.mxu0 %vm194_vm0, %v39_v20  ;;  %v77_v20 = vld [vmem:[%s6533_s1 + $0x1a8] sm:$0xff] }
  0x29   :  { %4307 = vmatprep.mubr.msk.f32.mxu0 %vm194_vm0, %v40_v21  ;;  %v4737_v21 = vmov 0.0  }
  0x2a   :  { %4488 = vmatmul.mubr.msk.f32.gmra.mxu1 %vm194_vm0, %v161_v0  ;;  %4523 = vmatprep.subr.mxu1 %v4737_v21  ;;  %v105_v0 = vld [vmem:[%s6533_s1 + $0x288] sm:$0xff]  ;;  %19 = vst [vmem:[%s6534_s4 + $0x8] sm:$0xff] %v4737_v21  ;;  %18 = vst [vmem:[%s6534_s4] sm:$0xff] %v4737_v21 }
  0x2b   :  { %4490 = vmatprep.mubr.msk.f32.mxu1 %vm194_vm0, %v162_v2  ;;  %4524 = vmatpush3.msra.mxu1 %v2145_v18  ;;  %v107_v2 = vld [vmem:[%s6533_s1 + $0x298] sm:$0xff]  ;;  %v5345_v18 = vld [vmem:[%s6532_s2 + $0x28] ss:$0 sm:$0xff]  ;;  %20 = vst [vmem:[%s6534_s4 + $0x10] sm:$0xff] %v4737_v21  ;;  %21 = vst [vmem:[%s6534_s4 + $0x18] sm:$0xff] %v4737_v21 }
  0x2c   :  { %4308 = vmatmul.mubr.msk.f32.gmra.mxu0 %vm194_vm0, %v41_v22  ;;  %v171_v22 = vld [vmem:[%s6533_s1 + $0x498] sm:$0xff]  ;;  %4525 = vmatprep.subr.mxu1 %v4737_v21  ;;  %22 = vst [vmem:[%s6534_s4 + $0x20] sm:$0xff] %v4737_v21  ;;  %23 = vst [vmem:[%s6534_s4 + $0x28] sm:$0xff] %v4737_v21 }
  0x2d   :  { %4310 = vmatprep.mubr.msk.f32.mxu0 %vm194_vm0, %v42_v23  ;;  %v78_v23 = vld [vmem:[%s6533_s1 + $0x1b0] sm:$0xff]  ;;  %4526 = vmatpush3.msra.mxu1 %v2144_v50 }
  0x2e   :  { %4491 = vmatmul.mubr.msk.f32.gmra.mxu1 %vm194_vm0, %v163_v4  ;;  %4527 = vmatprep.subr.mxu1 %v4737_v21  ;;  %v2142_v4 = vld [vmem:[%s6532_s2 + $0x60] sm:$0xff] }
  0x2f   :  { %4493 = vmatprep.mubr.msk.f32.mxu1 %vm194_vm0, %v164_v6  ;;  %v110_v6 = vld [vmem:[%s6533_s1 + $0x2b0] sm:$0xff] }
  0x30   :  { %4311 = vmatmul.mubr.msk.f32.gmra.mxu0 %vm194_vm0, %v43_v24  ;;  %v172_v24 = vld [vmem:[%s6533_s1 + $0x4a0] sm:$0xff] }
  0x31   :  { %4313 = vmatprep.mubr.msk.f32.mxu0 %vm194_vm0, %v44_v25  ;;  %v79_v25 = vld [vmem:[%s6533_s1 + $0x1b8] sm:$0xff] }
  0x32   :  { %4494 = vmatmul.mubr.msk.f32.gmra.mxu1 %vm194_vm0, %v165_v8  ;;  %v112_v8 = vld [vmem:[%s6533_s1 + $0x2c0] sm:$0xff] }
  0x33   :  { %4496 = vmatprep.mubr.msk.f32.mxu1 %vm194_vm0, %v166_v10  ;;  %v114_v10 = vld [vmem:[%s6533_s1 + $0x2d0] sm:$0xff] }
  0x34   :  { %4314 = vmatmul.mubr.msk.f32.gmra.mxu0 %vm194_vm0, %v45_v26  ;;  %v173_v26 = vld [vmem:[%s6533_s1 + $0x4a8] sm:$0xff] }
  0x35   :  { %4316 = vmatprep.mubr.msk.f32.mxu0 %vm194_vm0, %v46_v27  ;;  %v80_v27 = vld [vmem:[%s6533_s1 + $0x1c0] sm:$0xff] }
  0x36   :  { %4497 = vmatmul.mubr.msk.f32.gmra.mxu1 %vm194_vm0, %v167_v12  ;;  %v116_v12 = vld [vmem:[%s6533_s1 + $0x2e0] sm:$0xff] }
  0x37   :  { %4499 = vmatprep.mubr.msk.f32.mxu1 %vm194_vm0, %v168_v14  ;;  %v118_v14 = vld [vmem:[%s6533_s1 + $0x2f0] sm:$0xff] }
  0x38   :  { %4317 = vmatmul.mubr.msk.f32.gmra.mxu0 %vm194_vm0, %v47_v28  ;;  %v174_v28 = vld [vmem:[%s6533_s1 + $0x4b0] sm:$0xff] }
  0x39   :  { %4319 = vmatprep.mubr.msk.f32.mxu0 %vm194_vm0, %v48_v29  ;;  %v81_v29 = vld [vmem:[%s6533_s1 + $0x1c8] sm:$0xff] }
  0x3a   :  { %4500 = vmatmul.mubr.msk.f32.gmra.mxu1 %vm194_vm0, %v169_v16  ;;  %v120_v16 = vld [vmem:[%s6533_s1 + $0x300] sm:$0xff] }
  0x3b   :  { %4502 = vmatprep.mubr.msk.f32.mxu1 %vm194_vm0, %v170_v19  ;;  %v122_v19 = vld [vmem:[%s6533_s1 + $0x310] sm:$0xff] }
  0x3c   :  { %4320 = vmatmul.mubr.msk.f32.gmra.mxu0 %vm194_vm0, %v49_v30  ;;  %v175_v30 = vld [vmem:[%s6533_s1 + $0x4b8] sm:$0xff] }
  0x3d   :  { %4322 = vmatprep.mubr.msk.f32.mxu0 %vm194_vm0, %v50_v31  ;;  %v82_v31 = vld [vmem:[%s6533_s1 + $0x1d0] sm:$0xff] }
  0x3e   :  { %4503 = vmatmul.mubr.msk.f32.gmra.mxu1 %vm194_vm0, %v171_v22 }
  0x3f   :  { %4505 = vmatprep.mubr.msk.f32.mxu1 %vm194_vm0, %v172_v24 }
  0x40   :  { %4323 = vmatmul.mubr.msk.f32.gmra.mxu0 %vm194_vm0, %v51_v32  ;;  %v176_v32 = vld [vmem:[%s6533_s1 + $0x4c0] sm:$0xff] }
  0x41   :  { %4325 = vmatprep.mubr.msk.f32.mxu0 %vm194_vm0, %v52_v33  ;;  %v83_v33 = vld [vmem:[%s6533_s1 + $0x1d8] sm:$0xff] }
  0x42   :  { %4506 = vmatmul.mubr.msk.f32.gmra.mxu1 %vm194_vm0, %v173_v26 }
  0x43   :  { %4508 = vmatprep.mubr.msk.f32.mxu1 %vm194_vm0, %v174_v28 }
  0x44   :  { %4326 = vmatmul.mubr.msk.f32.gmra.mxu0 %vm194_vm0, %v53_v36  ;;  %v178_v36 = vld [vmem:[%s6533_s1 + $0x4d0] sm:$0xff] }
  0x45   :  { %4328 = vmatprep.mubr.msk.f32.mxu0 %vm194_vm0, %v54_v37  ;;  %v85_v37 = vld [vmem:[%s6533_s1 + $0x1e8] sm:$0xff] }
  0x46   :  { %4509 = vmatmul.mubr.msk.f32.gmra.mxu1 %vm194_vm0, %v175_v30 }
  0x47   :  { %4511 = vmatprep.mubr.msk.f32.mxu1 %vm194_vm0, %v176_v32 }
  0x48   :  { %4329 = vmatmul.mubr.msk.f32.gmra.mxu0 %vm194_vm0, %v55_v40  ;;  %v180_v40 = vld [vmem:[%s6533_s1 + $0x4e0] sm:$0xff] }
  0x49   :  { %4331 = vmatprep.mubr.msk.f32.mxu0 %vm194_vm0, %v56_v41  ;;  %v87_v41 = vld [vmem:[%s6533_s1 + $0x1f8] sm:$0xff] }
  0x4a   :  { %4512 = vmatmul.mubr.msk.f32.gmra.mxu1 %vm194_vm0, %v177_v34 }
  0x4b   :  { %4514 = vmatprep.mubr.msk.f32.mxu1 %vm194_vm0, %v178_v36 }
  0x4c   :  { %4332 = vmatmul.mubr.msk.f32.gmra.mxu0 %vm194_vm0, %v57_v44  ;;  %v182_v44 = vld [vmem:[%s6533_s1 + $0x4f0] sm:$0xff] }
  0x4d   :  { %4334 = vmatprep.mubr.msk.f32.mxu0 %vm194_vm0, %v58_v45  ;;  %v89_v45 = vld [vmem:[%s6533_s1 + $0x208] sm:$0xff] }
  0x4e   :  { %4515 = vmatmul.mubr.msk.f32.gmra.mxu1 %vm194_vm0, %v179_v38 }
  0x4f   :  { %4517 = vmatprep.mubr.msk.f32.mxu1 %vm194_vm0, %v180_v40 }
  0x50   :  { %4335 = vmatmul.mubr.msk.f32.gmra.mxu0 %vm194_vm0, %v59_v47  ;;  %v90_v47 = vld [vmem:[%s6533_s1 + $0x210] sm:$0xff] }
  0x51   :  { %4337 = vmatprep.mubr.msk.f32.mxu0 %vm194_vm0, %v60_v49  ;;  %v92_v49 = vld [vmem:[%s6533_s1 + $0x220] sm:$0xff] }
  0x52   :  { %4518 = vmatmul.mubr.msk.f32.gmra.mxu1 %vm194_vm0, %v181_v42 }
  0x53   :  { %4520 = vmatprep.mubr.msk.f32.mxu1 %vm194_vm0, %v182_v44  ;;  %v128_v44 = vld [vmem:[%s6533_s1 + $0x340] sm:$0xff] }
  0x54   :  { %4338 = vmatmul.mubr.msk.f32.gmra.mxu0 %vm194_vm0, %v61_v51  ;;  %v93_v51 = vld [vmem:[%s6533_s1 + $0x228] sm:$0xff] }
  0x55   :  { %4340 = vmatprep.mubr.msk.f32.mxu0 %vm194_vm0, %v62_v53  ;;  %v95_v53 = vld [vmem:[%s6533_s1 + $0x238] sm:$0xff] }
  0x56   :  { %4521 = vmatmul.mubr.msk.f32.gmra.mxu1 %vm194_vm0, %v183_v46 }
  0x57   :  { %4531 = vmatprep.mubr.msk.f32.mxu1 %vm4738_vm1, %v4737_v21 }
  0x58   :  { %4341 = vmatmul.mubr.msk.f32.gmra.mxu0 %vm194_vm0, %v63_v55  ;;  %v97_v55 = vld [vmem:[%s6533_s1 + $0x248] sm:$0xff] }
  0x59   :  { %4343 = vmatprep.mubr.msk.f32.mxu0 %vm194_vm0, %v64_v57  ;;  %v99_v57 = vld [vmem:[%s6533_s1 + $0x258] sm:$0xff] }
  0x5c   :  { %4344 = vmatmul.mubr.msk.f32.gmra.mxu0 %vm194_vm0, %v65_v59  ;;  %v2143_v59 = vld [vmem:[%s6532_s2 + $0x68] sm:$0xff] }
  0x5d   :  { %4346 = vmatprep.mubr.msk.f32.mxu0 %vm194_vm0, %v66_v61  ;;  %4528 = vmatpush3.msra.mxu1 %v2143_v59  ;;  %v102_v61 = vld [vmem:[%s6533_s1 + $0x270] sm:$0xff] }
  0x5e   :  { %4529 = vmatprep.subr.mxu1 %v4737_v21 }
  0x5f   :  { %4530 = vmatpush3.msra.mxu1 %v2142_v4  ;;  %v132_v4 = vld [vmem:[%s6533_s1 + $0x360] sm:$0xff] }
  0x60   :  { %4347 = vmatmul.mubr.msk.f32.gmra.mxu0 %vm194_vm0, %v67_v63  ;;  %v104_v63 = vld [vmem:[%s6533_s1 + $0x280] sm:$0xff]  ;;  %4534 = vmatprep.subr.mxu1 %v4737_v21 }
  0x61   :  { %4349 = vmatprep.mubr.msk.f32.mxu0 %vm194_vm0, %v68_v1  ;;  %v106_v1 = vld [vmem:[%s6533_s1 + $0x290] sm:$0xff] }
  0x64   :  { %4350 = vmatmul.mubr.msk.f32.gmra.mxu0 %vm194_vm0, %v69_v3  ;;  %v108_v3 = vld [vmem:[%s6533_s1 + $0x2a0] sm:$0xff] }
  0x65   :  { %4352 = vmatprep.mubr.msk.f32.mxu0 %vm194_vm0, %v70_v5  ;;  %v109_v5 = vld [vmem:[%s6533_s1 + $0x2a8] sm:$0xff] }
  0x68   :  { %4353 = vmatmul.mubr.msk.f32.gmra.mxu0 %vm194_vm0, %v71_v7  ;;  %v111_v7 = vld [vmem:[%s6533_s1 + $0x2b8] sm:$0xff] }
  0x69   :  { %4355 = vmatprep.mubr.msk.f32.mxu0 %vm194_vm0, %v72_v9  ;;  %v113_v9 = vld [vmem:[%s6533_s1 + $0x2c8] sm:$0xff] }
  0x6c   :  { %4356 = vmatmul.mubr.msk.f32.gmra.mxu0 %vm194_vm0, %v73_v11  ;;  %v115_v11 = vld [vmem:[%s6533_s1 + $0x2d8] sm:$0xff] }
  0x6d   :  { %4358 = vmatprep.mubr.msk.f32.mxu0 %vm194_vm0, %v74_v13  ;;  %v117_v13 = vld [vmem:[%s6533_s1 + $0x2e8] sm:$0xff] }
  0x70   :  { %4359 = vmatmul.mubr.msk.f32.gmra.mxu0 %vm194_vm0, %v75_v15  ;;  %v119_v15 = vld [vmem:[%s6533_s1 + $0x2f8] sm:$0xff] }
  0x71   :  { %4361 = vmatprep.mubr.msk.f32.mxu0 %vm194_vm0, %v76_v17  ;;  %v121_v17 = vld [vmem:[%s6533_s1 + $0x308] sm:$0xff] }
  0x74   :  { %4362 = vmatmul.mubr.msk.f32.gmra.mxu0 %vm194_vm0, %v77_v20 }
  0x75   :  { %4364 = vmatprep.mubr.msk.f32.mxu0 %vm194_vm0, %v78_v23  ;;  %v123_v23 = vld [vmem:[%s6533_s1 + $0x318] sm:$0xff] }
  0x78   :  { %4365 = vmatmul.mubr.msk.f32.gmra.mxu0 %vm194_vm0, %v79_v25  ;;  %v124_v25 = vld [vmem:[%s6533_s1 + $0x320] sm:$0xff] }
  0x79   :  { %4367 = vmatprep.mubr.msk.f32.mxu0 %vm194_vm0, %v80_v27 }
  0x7c   :  { %4368 = vmatmul.mubr.msk.f32.gmra.mxu0 %vm194_vm0, %v81_v29 }
  0x7d   :  { %4370 = vmatprep.mubr.msk.f32.mxu0 %vm194_vm0, %v82_v31  ;;  %v125_v31 = vld [vmem:[%s6533_s1 + $0x328] sm:$0xff] }
  0x80   :  { %4371 = vmatmul.mubr.msk.f32.gmra.mxu0 %vm194_vm0, %v83_v33  ;;  %v126_v33 = vld [vmem:[%s6533_s1 + $0x330] sm:$0xff] }
  0x81   :  { %4373 = vmatprep.mubr.msk.f32.mxu0 %vm194_vm0, %v84_v35 }
  0x84   :  { %4374 = vmatmul.mubr.msk.f32.gmra.mxu0 %vm194_vm0, %v85_v37 }
  0x85   :  { %4376 = vmatprep.mubr.msk.f32.mxu0 %vm194_vm0, %v86_v39 }
  0x88   :  { %4377 = vmatmul.mubr.msk.f32.gmra.mxu0 %vm194_vm0, %v87_v41  ;;  %v127_v41 = vld [vmem:[%s6533_s1 + $0x338] sm:$0xff] }
  0x89   :  { %4379 = vmatprep.mubr.msk.f32.mxu0 %vm194_vm0, %v88_v43 }
  0x8c   :  { %4380 = vmatmul.mubr.msk.f32.gmra.mxu0 %vm194_vm0, %v89_v45 }
  0x8d   :  { %4382 = vmatprep.mubr.msk.f32.mxu0 %vm194_vm0, %v90_v47 }
  0x90   :  { %4383 = vmatmul.mubr.msk.f32.gmra.mxu0 %vm194_vm0, %v91_v48 }
  0x91   :  { %4385 = vmatprep.mubr.msk.f32.mxu0 %vm194_vm0, %v92_v49 }
  0x94   :  { %4386 = vmatmul.mubr.msk.f32.gmra.mxu0 %vm194_vm0, %v93_v51 }
  0x95   :  { %4388 = vmatprep.mubr.msk.f32.mxu0 %vm194_vm0, %v94_v52 }
  0x98   :  { %4389 = vmatmul.mubr.msk.f32.gmra.mxu0 %vm194_vm0, %v95_v53  ;;  %v129_v53 = vld [vmem:[%s6533_s1 + $0x348] sm:$0xff] }
  0x99   :  { %4391 = vmatprep.mubr.msk.f32.mxu0 %vm194_vm0, %v96_v54 }
  0x9c   :  { %4392 = vmatmul.mubr.msk.f32.gmra.mxu0 %vm194_vm0, %v97_v55 }
  0x9d   :  { %4394 = vmatprep.mubr.msk.f32.mxu0 %vm194_vm0, %v98_v56  ;;  %v130_v56 = vld [vmem:[%s6533_s1 + $0x350] sm:$0xff] }
  0xa0   :  { %4395 = vmatmul.mubr.msk.f32.gmra.mxu0 %vm194_vm0, %v99_v57 }
  0xa1   :  { %4397 = vmatprep.mubr.msk.f32.mxu0 %vm194_vm0, %v100_v58 }
  0xa4   :  { %4398 = vmatmul.mubr.msk.f32.gmra.mxu0 %vm194_vm0, %v101_v60 }
  0xa5   :  { %4400 = vmatprep.mubr.msk.f32.mxu0 %vm194_vm0, %v102_v61 }
  0xa8   :  { %4401 = vmatmul.mubr.msk.f32.gmra.mxu0 %vm194_vm0, %v103_v62 }
  0xa9   :  { %4403 = vmatprep.mubr.msk.f32.mxu0 %vm194_vm0, %v104_v63 }
  0xac   :  { %4404 = vmatmul.mubr.msk.f32.gmra.mxu0 %vm194_vm0, %v105_v0 }
  0xad   :  { %4406 = vmatprep.mubr.msk.f32.mxu0 %vm194_vm0, %v106_v1  ;;  %v131_v1 = vld [vmem:[%s6533_s1 + $0x358] sm:$0xff] }
  0xb0   :  { %4407 = vmatmul.mubr.msk.f32.gmra.mxu0 %vm194_vm0, %v107_v2 }
  0xb1   :  { %4409 = vmatprep.mubr.msk.f32.mxu0 %vm194_vm0, %v108_v3 }
  0xb4   :  { %4410 = vmatmul.mubr.msk.f32.gmra.mxu0 %vm194_vm0, %v109_v5 }
  0xb5   :  { %4412 = vmatprep.mubr.msk.f32.mxu0 %vm194_vm0, %v110_v6 }
  0xb8   :  { %4413 = vmatmul.mubr.msk.f32.gmra.mxu0 %vm194_vm0, %v111_v7 }
  0xb9   :  { %4415 = vmatprep.mubr.msk.f32.mxu0 %vm194_vm0, %v112_v8 }
  0xbc   :  { %4416 = vmatmul.mubr.msk.f32.gmra.mxu0 %vm194_vm0, %v113_v9 }
  0xbd   :  { %4418 = vmatprep.mubr.msk.f32.mxu0 %vm194_vm0, %v114_v10 }
  0xc0   :  { %4419 = vmatmul.mubr.msk.f32.gmra.mxu0 %vm194_vm0, %v115_v11 }
  0xc1   :  { %4421 = vmatprep.mubr.msk.f32.mxu0 %vm194_vm0, %v116_v12 }
  0xc4   :  { %4422 = vmatmul.mubr.msk.f32.gmra.mxu0 %vm194_vm0, %v117_v13  ;;  %v133_v13 = vld [vmem:[%s6533_s1 + $0x368] sm:$0xff] }
  0xc5   :  { %4424 = vmatprep.mubr.msk.f32.mxu0 %vm194_vm0, %v118_v14 }
  0xc8   :  { %4425 = vmatmul.mubr.msk.f32.gmra.mxu0 %vm194_vm0, %v119_v15 }
  0xc9   :  { %4427 = vmatprep.mubr.msk.f32.mxu0 %vm194_vm0, %v120_v16  ;;  %v134_v16 = vld [vmem:[%s6533_s1 + $0x370] sm:$0xff] }
  0xcc   :  { %v4285_v20 = vpop.f32.mrf.mxu0  ;;  %4428 = vmatmul.mubr.msk.f32.gmra.mxu0 %vm194_vm0, %v121_v17 }
  0xcd   :  { %v747_v22 = vadd.f32 %v4285_v20, %v5345_v18  ;;  %4430 = vmatprep.mubr.msk.f32.mxu0 %vm194_vm0, %v122_v19 }
  0xce   :  { %v741_v24 = vpop.f32.mrf.mxu0 }
  0xcf   :  { %v742_v26 = vadd.f32 %v5345_v18, %v741_v24  ;;  %v1541_v28 = vmax.f32 %v747_v22, 0.0 }
  0xd0   :  { %v4288_v27 = vpop.f32.mrf.mxu0  ;;  %4431 = vmatmul.mubr.msk.f32.gmra.mxu0 %vm194_vm0, %v123_v23 }
  0xd1   :  { %v1540_v29 = vmax.f32 %v742_v26, 0.0  ;;  %v757_v30 = vadd.f32 %v4288_v27, %v5345_v18  ;;  %4433 = vmatprep.mubr.msk.f32.mxu0 %vm194_vm0, %v124_v25  ;;  %v1702_v37 = vsel %vm1700_vm2, %v1541_v28, 0.0  ;;  %v135_v25 = vld [vmem:[%s6533_s1 + $0x378] sm:$0xff]  ;;  %v136_v28 = vld [vmem:[%s6533_s1 + $0x380] sm:$0xff] }
  0xd2   :  { %v751_v32 = vpop.f32.mrf.mxu0 }
  0xd3   :  { %v1701_v34 = vsel %vm1700_vm2, %v1540_v29, 0.0  ;;  %v752_v35 = vadd.f32 %v5345_v18, %v751_v32  ;;  %v1543_v38 = vmax.f32 %v757_v30, 0.0 }
  0xd4   :  { %v4291_v36 = vpop.f32.mrf.mxu0  ;;  %4434 = vmatmul.mubr.msk.f32.gmra.mxu0 %vm194_vm0, %v125_v31  ;;  %v1703_v42 = vadd.f32 %v1702_v37, %v1701_v34 }
  0xd5   :  { %v1542_v39 = vmax.f32 %v752_v35, 0.0  ;;  %v767_v40 = vadd.f32 %v4291_v36, %v5345_v18  ;;  %4436 = vmatprep.mubr.msk.f32.mxu0 %vm194_vm0, %v126_v33  ;;  %v1706_v49 = vsel %vm1700_vm2, %v1543_v38, 0.0  ;;  %v137_v36 = vld [vmem:[%s6533_s1 + $0x388] sm:$0xff] }
  0xd6   :  { %v761_v43 = vpop.f32.mrf.mxu0 }
  0xd7   :  { %v1704_v45 = vsel %vm1700_vm2, %v1542_v39, 0.0  ;;  %v762_v46 = vadd.f32 %v5345_v18, %v761_v43  ;;  %v1545_v50 = vmax.f32 %v767_v40, 0.0  ;;  %v138_v39 = vld [vmem:[%s6533_s1 + $0x390] sm:$0xff] }
  0xd8   :  { %v1705_v47 = vadd.f32 %v1704_v45, %v1703_v42  ;;  %v4294_v48 = vpop.f32.mrf.mxu0  ;;  %4437 = vmatmul.mubr.msk.f32.gmra.mxu0 %vm194_vm0, %v127_v41  ;;  %v139_v45 = vld [vmem:[%s6533_s1 + $0x398] sm:$0xff] }
  0xd9   :  { %v1544_v51 = vmax.f32 %v762_v46, 0.0  ;;  %v777_v52 = vadd.f32 %v4294_v48, %v5345_v18  ;;  %4439 = vmatprep.mubr.msk.f32.mxu0 %vm194_vm0, %v128_v44  ;;  %v1710_v61 = vsel %vm1700_vm2, %v1545_v50, 0.0  ;;  %v140_v48 = vld [vmem:[%s6533_s1 + $0x3a0] sm:$0xff] }
  0xda   :  { %v1707_v54 = vadd.f32 %v1706_v49, %v1705_v47  ;;  %v771_v55 = vpop.f32.mrf.mxu0 }
  0xdb   :  { %v1708_v57 = vsel %vm1700_vm2, %v1544_v51, 0.0  ;;  %v772_v58 = vadd.f32 %v5345_v18, %v771_v55  ;;  %v1547_v62 = vmax.f32 %v777_v52, 0.0 }
  0xdc   :  { %v1709_v59 = vadd.f32 %v1708_v57, %v1707_v54  ;;  %v4297_v60 = vpop.f32.mrf.mxu0  ;;  %4440 = vmatmul.mubr.msk.f32.gmra.mxu0 %vm194_vm0, %v129_v53  ;;  %v141_v57 = vld [vmem:[%s6533_s1 + $0x3a8] sm:$0xff] }
  0xdd   :  { %v1546_v63 = vmax.f32 %v772_v58, 0.0  ;;  %v787_v0 = vadd.f32 %v4297_v60, %v5345_v18  ;;  %4442 = vmatprep.mubr.msk.f32.mxu0 %vm194_vm0, %v130_v56  ;;  %v1714_v9 = vsel %vm1700_vm2, %v1547_v62, 0.0  ;;  %v142_v60 = vld [vmem:[%s6533_s1 + $0x3b0] sm:$0xff] }
  0xde   :  { %v1711_v2 = vadd.f32 %v1710_v61, %v1709_v59  ;;  %v781_v3 = vpop.f32.mrf.mxu0 }
  0xdf   :  { %v1712_v5 = vsel %vm1700_vm2, %v1546_v63, 0.0  ;;  %v782_v6 = vadd.f32 %v5345_v18, %v781_v3  ;;  %v1549_v10 = vmax.f32 %v787_v0, 0.0 }
  0xe0   :  { %v1713_v7 = vadd.f32 %v1712_v5, %v1711_v2  ;;  %v4300_v8 = vpop.f32.mrf.mxu0  ;;  %4443 = vmatmul.mubr.msk.f32.gmra.mxu0 %vm194_vm0, %v131_v1 }
  0xe1   :  { %v1548_v11 = vmax.f32 %v782_v6, 0.0  ;;  %v797_v12 = vadd.f32 %v4300_v8, %v5345_v18  ;;  %4445 = vmatprep.mubr.msk.f32.mxu0 %vm194_vm0, %v132_v4  ;;  %v1723_v22 = vsel %vm1700_vm2, %v1549_v10, 0.0  ;;  %v143_v6 = vld [vmem:[%s6533_s1 + $0x3b8] sm:$0xff]  ;;  %v144_v10 = vld [vmem:[%s6533_s1 + $0x3c0] sm:$0xff] }
  0xe2   :  { %v5414_v14 = vadd.f32 %v1714_v9, %v1713_v7  ;;  %v791_v15 = vpop.f32.mrf.mxu0 }
  0xe3   :  { %v1722_v17 = vsel %vm1700_vm2, %v1548_v11, 0.0  ;;  %v792_v19 = vadd.f32 %v5345_v18, %v791_v15  ;;  %v1551_v23 = vmax.f32 %v797_v12, 0.0 }
  0xe4   :  { %v4303_v20 = vpop.f32.mrf.mxu0  ;;  %4446 = vmatmul.mubr.msk.f32.gmra.mxu0 %vm194_vm0, %v133_v13  ;;  %v1724_v26 = vadd.f32 %v1723_v22, %v1722_v17 }
  0xe5   :  { %v1550_v24 = vmax.f32 %v792_v19, 0.0  ;;  %4448 = vmatprep.mubr.msk.f32.mxu0 %vm194_vm0, %v134_v16  ;;  %v1727_v33 = vsel %vm1700_vm2, %v1551_v23, 0.0  ;;  %v807_v34 = vadd.f32 %v4303_v20, %v5345_v18  ;;  %v145_v23 = vld [vmem:[%s6533_s1 + $0x3c8] sm:$0xff] }
  0xe6   :  { %v801_v27 = vpop.f32.mrf.mxu0 }
  0xe7   :  { %v1725_v29 = vsel %vm1700_vm2, %v1550_v24, 0.0  ;;  %v802_v30 = vadd.f32 %v5345_v18, %v801_v27  ;;  %v1553_v43 = vmax.f32 %v807_v34, 0.0 }
  0xe8   :  { %v1726_v31 = vadd.f32 %v1725_v29, %v1724_v26  ;;  %v4306_v32 = vpop.f32.mrf.mxu0  ;;  %4449 = vmatmul.mubr.msk.f32.gmra.mxu0 %vm194_vm0, %v135_v25 }
  0xe9   :  { %v1552_v35 = vmax.f32 %v802_v30, 0.0  ;;  %4451 = vmatprep.mubr.msk.f32.mxu0 %vm194_vm0, %v136_v28  ;;  %v817_v51 = vadd.f32 %v4306_v32, %v5345_v18  ;;  %v1731_v53 = vsel %vm1700_vm2, %v1553_v43, 0.0 }
  0xea   :  { %v1728_v37 = vadd.f32 %v1727_v33, %v1726_v31  ;;  %v811_v38 = vpop.f32.mrf.mxu0 }
  0xeb   :  { %v1729_v40 = vsel %vm1700_vm2, %v1552_v35, 0.0  ;;  %v812_v41 = vadd.f32 %v5345_v18, %v811_v38  ;;  %v1555_v0 = vmax.f32 %v817_v51, 0.0  ;;  %v1716_v38 = vrot.slane %v5414_v14, 4 }
  0xec   :  { %v4309_v42 = vpop.f32.mrf.mxu0  ;;  %4452 = vmatmul.mubr.msk.f32.gmra.mxu0 %vm194_vm0, %v137_v36  ;;  %v1730_v46 = vadd.f32 %v1729_v40, %v1728_v37 }
  0xed   :  { %v827_v44 = vadd.f32 %v4309_v42, %v5345_v18  ;;  %4454 = vmatprep.mubr.msk.f32.mxu0 %vm194_vm0, %v138_v39  ;;  %v1554_v49 = vmax.f32 %v812_v41, 0.0  ;;  %v1735_v13 = vsel %vm1700_vm2, %v1555_v0, 0.0  ;;  %v1717_v51 = vadd.f32 %v1716_v38, %v5414_v14 }
  0xee   :  { %v821_v47 = vpop.f32.mrf.mxu0  ;;  %v1732_v58 = vadd.f32 %v1731_v53, %v1730_v46 }
  0xef   :  { %v822_v50 = vadd.f32 %v5345_v18, %v821_v47  ;;  %v1557_v54 = vmax.f32 %v827_v44, 0.0  ;;  %v1733_v61 = vsel %vm1700_vm2, %v1554_v49, 0.0  ;;  %v1718_v14 = vrot.slane %v1717_v51, 2 }
  0xf0   :  { %v4312_v52 = vpop.f32.mrf.mxu0  ;;  %4455 = vmatmul.mubr.msk.f32.gmra.mxu0 %vm194_vm0, %v139_v45  ;;  %v1734_v7 = vadd.f32 %v1733_v61, %v1732_v58 }
  0xf1   :  { %v1556_v55 = vmax.f32 %v822_v50, 0.0  ;;  %v837_v56 = vadd.f32 %v4312_v52, %v5345_v18  ;;  %4457 = vmatprep.mubr.msk.f32.mxu0 %vm194_vm0, %v140_v48  ;;  %v1744_v2 = vsel %vm1700_vm2, %v1557_v54, 0.0  ;;  %v5498_v50 = vpop.f32.mrf.mxu1 }
  0xf2   :  { %v831_v59 = vpop.f32.mrf.mxu0  ;;  %v1736_v24 = vadd.f32 %v1735_v13, %v1734_v7 }
  0xf3   :  { %v1743_v62 = vsel %vm1700_vm2, %v1556_v55, 0.0  ;;  %v832_v63 = vadd.f32 %v5345_v18, %v831_v59  ;;  %v1559_v3 = vmax.f32 %v837_v56, 0.0  ;;  %v5503_v56 = vpop.f32.mrf.mxu1 }
  0xf4   :  { %v4315_v1 = vpop.f32.mrf.mxu0  ;;  %4458 = vmatmul.mubr.msk.f32.gmra.mxu0 %vm194_vm0, %v141_v57  ;;  %v1745_v8 = vadd.f32 %v1744_v2, %v1743_v62  ;;  %v1737_v35 = vrot.slane %v1736_v24, 4 }
  0xf5   :  { %v1558_v4 = vmax.f32 %v832_v63, 0.0  ;;  %v847_v5 = vadd.f32 %v4315_v1, %v5345_v18  ;;  %4460 = vmatprep.mubr.msk.f32.mxu0 %vm194_vm0, %v142_v60  ;;  %v1748_v17 = vsel %vm1700_vm2, %v1559_v3, 0.0  ;;  %v5507_v1 = vpop.f32.mrf.mxu1 }
  0xf6   :  { %v841_v9 = vpop.f32.mrf.mxu0  ;;  %v1738_v47 = vadd.f32 %v1737_v35, %v1736_v24 }
  0xf7   :  { %v1746_v11 = vsel %vm1700_vm2, %v1558_v4, 0.0  ;;  %v842_v12 = vadd.f32 %v5345_v18, %v841_v9  ;;  %v1561_v19 = vmax.f32 %v847_v5, 0.0  ;;  %v5511_v7 = vpop.f32.mrf.mxu1 }
  0xf8   :  { %v1747_v15 = vadd.f32 %v1746_v11, %v1745_v8  ;;  %v4318_v16 = vpop.f32.mrf.mxu0  ;;  %4461 = vmatmul.mubr.msk.f32.gmra.mxu0 %vm194_vm0, %v143_v6  ;;  %v1739_v61 = vrot.slane %v1738_v47, 2 }
  0xf9   :  { %v1560_v20 = vmax.f32 %v842_v12, 0.0  ;;  %v857_v22 = vadd.f32 %v4318_v16, %v5345_v18  ;;  %4463 = vmatprep.mubr.msk.f32.mxu0 %vm194_vm0, %v144_v10  ;;  %v1752_v31 = vsel %vm1700_vm2, %v1561_v19, 0.0  ;;  %v5515_v16 = vpop.f32.mrf.mxu1 }
  0xfa   :  { %v1749_v25 = vadd.f32 %v1748_v17, %v1747_v15  ;;  %v851_v26 = vpop.f32.mrf.mxu0  ;;  %v1740_v12 = vadd.f32 %v1739_v61, %v1738_v47  ;;  %v1719_v17 = vadd.f32 %v1718_v14, %v1717_v51 }
  0xfb   :  { %v1750_v27 = vsel %vm1700_vm2, %v1560_v20, 0.0  ;;  %v852_v28 = vadd.f32 %v5345_v18, %v851_v26  ;;  %v1563_v32 = vmax.f32 %v857_v22, 0.0 }
  0xfc   :  { %v1751_v29 = vadd.f32 %v1750_v27, %v1749_v25  ;;  %v4321_v30 = vpop.f32.mrf.mxu0  ;;  %4464 = vmatmul.mubr.msk.f32.gmra.mxu0 %vm194_vm0, %v145_v23  ;;  %v5519_v25 = vpop.f32.mrf.mxu1 }
  0xfd   :  { %v1562_v33 = vmax.f32 %v852_v28, 0.0  ;;  %v867_v34 = vadd.f32 %v4321_v30, %v5345_v18  ;;  %v1756_v43 = vsel %vm1700_vm2, %v1563_v32, 0.0  ;;  %v1741_v30 = vrot.slane %v1740_v12, 1 }
  0xfe   :  { %v1753_v36 = vadd.f32 %v1752_v31, %v1751_v29  ;;  %v861_v37 = vpop.f32.mrf.mxu0 }
  0xff   :  { %v1754_v39 = vsel %vm1700_vm2, %v1562_v33, 0.0  ;;  %v862_v40 = vadd.f32 %v5345_v18, %v861_v37  ;;  %v1565_v44 = vmax.f32 %v867_v34, 0.0  ;;  %v5523_v33 = vpop.f32.mrf.mxu1  ;;  %v1720_v34 = vrot.slane %v1719_v17, 1 }
 0x100   :  { %v1755_v41 = vadd.f32 %v1754_v39, %v1753_v36  ;;  %v4324_v42 = vpop.f32.mrf.mxu0 }
 0x101   :  { %v1564_v45 = vmax.f32 %v862_v40, 0.0  ;;  %v877_v46 = vadd.f32 %v4324_v42, %v5345_v18  ;;  %v1765_v57 = vsel %vm1700_vm2, %v1565_v44, 0.0  ;;  %v5527_v40 = vpop.f32.mrf.mxu1 }
 0x102   :  { %v1757_v48 = vadd.f32 %v1756_v43, %v1755_v41  ;;  %v871_v49 = vpop.f32.mrf.mxu0 }
 0x103   :  { %v1764_v52 = vsel %vm1700_vm2, %v1564_v45, 0.0  ;;  %v872_v53 = vadd.f32 %v5345_v18, %v871_v49  ;;  %v1567_v58 = vmax.f32 %v877_v46, 0.0  ;;  %v1742_v45 = vadd.f32 %v1741_v30, %v1740_v12 }
 0x104   :  { %v1758_v54 = vrot.slane %v1757_v48, 4  ;;  %v4327_v55 = vpop.f32.mrf.mxu0  ;;  %v1766_v63 = vadd.f32 %v1765_v57, %v1764_v52  ;;  %v1721_v49 = vadd.f32 %v1720_v34, %v1719_v17 }
 0x105   :  { %v1566_v59 = vmax.f32 %v872_v53, 0.0  ;;  %v887_v60 = vadd.f32 %v4327_v55, %v5345_v18  ;;  %v1769_v8 = vsel %vm1700_vm2, %v1567_v58, 0.0 }
 0x106   :  { %v1759_v62 = vadd.f32 %v1758_v54, %v1757_v48  ;;  %v881_v0 = vpop.f32.mrf.mxu0  ;;  %v5531_v48 = vpop.f32.mrf.mxu1 }
 0x107   :  { %v1767_v2 = vsel %vm1700_vm2, %v1566_v59, 0.0  ;;  %v882_v3 = vadd.f32 %v5345_v18, %v881_v0  ;;  %v1569_v9 = vmax.f32 %v887_v60, 0.0 }
 0x108   :  { %v1760_v4 = vrot.slane %v1759_v62, 2  ;;  %v1768_v5 = vadd.f32 %v1767_v2, %v1766_v63  ;;  %v4330_v6 = vpop.f32.mrf.mxu0  ;;  %v5535_v57 = vpop.f32.mrf.mxu1 }
 0x109   :  { %v1568_v10 = vmax.f32 %v882_v3, 0.0  ;;  %v897_v11 = vadd.f32 %v4330_v6, %v5345_v18  ;;  %v1773_v26 = vsel %vm1700_vm2, %v1569_v9, 0.0  ;;  %v5543_v3 = vmul.f32 0.015625, %v1721_v49 }
 0x10a   :  { %v1770_v13 = vadd.f32 %v1769_v8, %v1768_v5  ;;  %v891_v15 = vpop.f32.mrf.mxu0  ;;  %v1761_v22 = vadd.f32 %v1760_v4, %v1759_v62  ;;  %v5539_v62 = vmul.f32 0.015625, %v1742_v45  ;;  %v5541_v2 = vpop.f32.mrf.mxu1 }
 0x10b   :  { %v1771_v19 = vsel %vm1700_vm2, %v1568_v10, 0.0  ;;  %v892_v20 = vadd.f32 %v5345_v18, %v891_v15  ;;  %v1571_v27 = vmax.f32 %v897_v11, 0.0 }
 0x10c   :  { %v1772_v23 = vadd.f32 %v1771_v19, %v1770_v13  ;;  %v4333_v24 = vpop.f32.mrf.mxu0  ;;  %v1762_v37 = vrot.slane %v1761_v22, 1  ;;  %v5549_v12 = vpop.f32.mrf.mxu1 }
 0x10d   :  { %v1570_v28 = vmax.f32 %v892_v20, 0.0  ;;  %v907_v29 = vadd.f32 %v4333_v24, %v5345_v18  ;;  %v1777_v41 = vsel %vm1700_vm2, %v1571_v27, 0.0 }
 0x10e   :  { %v1774_v31 = vadd.f32 %v1773_v26, %v1772_v23  ;;  %v901_v32 = vpop.f32.mrf.mxu0  ;;  %v1763_v53 = vadd.f32 %v1762_v37, %v1761_v22  ;;  %v2418_v23 = vmul.f32 %v5539_v62, %v5539_v62  ;;  %v5555_v24 = vpop.f32.mrf.mxu1 }
 0x10f   :  { %v1775_v35 = vsel %vm1700_vm2, %v1570_v28, 0.0  ;;  %v902_v36 = vadd.f32 %v5345_v18, %v901_v32  ;;  %v1573_v42 = vmax.f32 %v907_v29, 0.0  ;;  %v2417_v28 = vmul.f32 %v5543_v3, %v5543_v3 }
 0x110   :  { %v1776_v38 = vadd.f32 %v1775_v35, %v1774_v31  ;;  %v4336_v39 = vpop.f32.mrf.mxu0  ;;  %v5547_v6 = vmul.f32 0.015625, %v1763_v53  ;;  %v5564_v35 = vpop.f32.mrf.mxu1 }
 0x111   :  { %v1572_v43 = vmax.f32 %v902_v36, 0.0  ;;  %v917_v44 = vadd.f32 %v4336_v39, %v5345_v18  ;;  %v1786_v58 = vsel %vm1700_vm2, %v1573_v42, 0.0  ;;  %v1387_v39 = vadd.f32 %v5523_v33, %v5345_v18 }
 0x112   :  { %v1778_v46 = vadd.f32 %v1777_v41, %v1776_v38  ;;  %v911_v47 = vpop.f32.mrf.mxu0  ;;  %v2419_v34 = vmul.f32 %v5547_v6, %v5547_v6  ;;  %v2427_v45 = vsel %vm2156_vm3, %v2418_v23, %v2417_v28 }
 0x113   :  { %v1785_v51 = vsel %vm1700_vm2, %v1572_v43, 0.0  ;;  %v912_v52 = vadd.f32 %v5345_v18, %v911_v47  ;;  %v1575_v59 = vmax.f32 %v917_v44, 0.0  ;;  %v2157_v44 = vsel %vm2156_vm3, %v5539_v62, %v5543_v3 }
 0x114   :  { %v1779_v54 = vrot.slane %v1778_v46, 4  ;;  %v4339_v55 = vpop.f32.mrf.mxu0  ;;  %v1787_v0 = vadd.f32 %v1786_v58, %v1785_v51  ;;  %v5582_v58 = vsel %vm2158_vm4, %v2419_v34, %v2427_v45  ;;  %v1392_v34 = vadd.f32 %v5345_v18, %v5535_v57 }
 0x115   :  { %v1574_v60 = vmax.f32 %v912_v52, 0.0  ;;  %v927_v61 = vadd.f32 %v4339_v55, %v5345_v18  ;;  %v1790_v13 = vsel %vm1700_vm2, %v1575_v59, 0.0  ;;  %v1669_v52 = vmax.f32 %v1387_v39, 0.0 }
 0x116   :  { %v1780_v63 = vadd.f32 %v1779_v54, %v1778_v46  ;;  %v921_v14 = vpop.f32.mrf.mxu0  ;;  %v5573_v46 = vpop.f32.mrf.mxu1  ;;  %v2159_v55 = vsel %vm2158_vm4, %v5547_v6, %v2157_v44 }
 0x117   :  { %v1788_v4 = vsel %vm1700_vm2, %v1574_v60, 0.0  ;;  %v922_v5 = vadd.f32 %v5345_v18, %v921_v14  ;;  %v1577_v10 = vmax.f32 %v927_v61, 0.0 }
 0x118   :  { %v1781_v8 = vrot.slane %v1780_v63, 2  ;;  %v1789_v9 = vadd.f32 %v1788_v4, %v1787_v0  ;;  %v4342_v11 = vpop.f32.mrf.mxu0  ;;  %v5584_v59 = vpop.f32.mrf.mxu1 }
 0x119   :  { %v1576_v15 = vmax.f32 %v922_v5, 0.0  ;;  %v937_v17 = vadd.f32 %v4342_v11, %v5345_v18  ;;  %v1794_v30 = vsel %vm1700_vm2, %v1577_v10, 0.0 }
 0x11a   :  { %v1782_v19 = vadd.f32 %v1781_v8, %v1780_v63  ;;  %v1791_v20 = vadd.f32 %v1790_v13, %v1789_v9  ;;  %v931_v22 = vpop.f32.mrf.mxu0  ;;  %v2038_v8 = vsel %vm1700_vm2, %v1669_v52, 0.0  ;;  %v1382_v9 = vadd.f32 %v5345_v18, %v5527_v40  ;;  %v5596_v10 = vpop.f32.mrf.mxu1 }
 0x11b   :  { %v1792_v26 = vsel %vm1700_vm2, %v1576_v15, 0.0  ;;  %v932_v27 = vadd.f32 %v5345_v18, %v931_v22  ;;  %v1579_v36 = vmax.f32 %v937_v17, 0.0  ;;  %v1397_v17 = vadd.f32 %v5531_v48, %v5345_v18 }
 0x11c   :  { %v1783_v29 = vrot.slane %v1782_v19, 1  ;;  %v1793_v31 = vadd.f32 %v1792_v26, %v1791_v20  ;;  %v4345_v32 = vpop.f32.mrf.mxu0  ;;  %v1668_v26 = vmax.f32 %v1382_v9, 0.0 }
 0x11d   :  { %v1578_v37 = vmax.f32 %v932_v27, 0.0  ;;  %v947_v38 = vadd.f32 %v4345_v32, %v5345_v18  ;;  %v1798_v60 = vsel %vm1700_vm2, %v1579_v36, 0.0  ;;  %v5606_v27 = vpop.f32.mrf.mxu1  ;;  %v1407_v36 = vadd.f32 %v5541_v2, %v5345_v18 }
 0x11e   :  { %v1784_v41 = vadd.f32 %v1783_v29, %v1782_v19  ;;  %v1795_v42 = vadd.f32 %v1794_v30, %v1793_v31  ;;  %v941_v43 = vpop.f32.mrf.mxu0  ;;  %v1671_v30 = vmax.f32 %v1397_v17, 0.0  ;;  %v2037_v48 = vsel %vm1700_vm2, %v1668_v26, 0.0 }
 0x11f   :  { %v1796_v47 = vsel %vm1700_vm2, %v1578_v37, 0.0  ;;  %v1581_v49 = vmax.f32 %v947_v38, 0.0  ;;  %v942_v51 = vadd.f32 %v5345_v18, %v941_v43  ;;  %v1673_v52 = vmax.f32 %v1407_v36, 0.0 }
 0x120   :  { %v5577_v53 = vmul.f32 0.015625, %v1784_v41  ;;  %v1797_v33 = vadd.f32 %v1796_v47, %v1795_v42  ;;  %v4348_v54 = vpop.f32.mrf.mxu0  ;;  %v2039_v41 = vadd.f32 %v2038_v8, %v2037_v48  ;;  %v5617_v42 = vpop.f32.mrf.mxu1  ;;  %v2042_v47 = vsel %vm1700_vm2, %v1671_v30, 0.0 }
 0x121   :  { %v1807_v61 = vsel %vm1700_vm2, %v1581_v49, 0.0  ;;  %v1580_v63 = vmax.f32 %v942_v51, 0.0  ;;  %v957_v0 = vadd.f32 %v4348_v54, %v5345_v18  ;;  %v1670_v49 = vmax.f32 %v1392_v34, 0.0 }
 0x122   :  { %v1799_v14 = vadd.f32 %v1798_v60, %v1797_v33  ;;  %v951_v4 = vpop.f32.mrf.mxu0  ;;  %v5591_v5 = vsel %vm2160_vm5, %v5577_v53, %v2159_v55  ;;  %v5604_v23 = vmul.f32 %v5577_v53, %v5577_v53  ;;  %v5627_v8 = vpop.f32.mrf.mxu1  ;;  %v1417_v30 = vadd.f32 %v5555_v24, %v5345_v18 }
 0x123   :  { %v1806_v11 = vsel %vm1700_vm2, %v1580_v63, 0.0  ;;  %v1583_v13 = vmax.f32 %v957_v0, 0.0  ;;  %v952_v15 = vadd.f32 %v5345_v18, %v951_v4  ;;  %v2040_v60 = vsel %vm1700_vm2, %v1670_v49, 0.0 }
 0x124   :  { %v1800_v19 = vrot.slane %v1799_v14, 4  ;;  %v1808_v20 = vadd.f32 %v1807_v61, %v1806_v11  ;;  %v4351_v22 = vpop.f32.mrf.mxu0  ;;  %v1402_v61 = vadd.f32 %v5345_v18, %v5549_v12  ;;  %v2041_v4 = vadd.f32 %v2040_v60, %v2039_v41  ;;  %v5637_v36 = vpop.f32.mrf.mxu1 }
 0x125   :  { %v1811_v40 = vsel %vm1700_vm2, %v1583_v13, 0.0  ;;  %v1582_v28 = vmax.f32 %v952_v15, 0.0  ;;  %v967_v29 = vadd.f32 %v4351_v22, %v5345_v18  ;;  %v2046_v15 = vsel %vm1700_vm2, %v1673_v52, 0.0 }
 0x126   :  { %v1801_v31 = vadd.f32 %v1800_v19, %v1799_v14  ;;  %v961_v32 = vpop.f32.mrf.mxu0  ;;  %v1672_v17 = vmax.f32 %v1402_v61, 0.0  ;;  %v2043_v12 = vadd.f32 %v2042_v47, %v2041_v4  ;;  %v1675_v41 = vmax.f32 %v1417_v30, 0.0  ;;  %v5658_v60 = vpop.f32.mrf.mxu1 }
 0x127   :  { %v1809_v37 = vsel %vm1700_vm2, %v1582_v28, 0.0  ;;  %v1585_v38 = vmax.f32 %v967_v29, 0.0  ;;  %v962_v39 = vadd.f32 %v5345_v18, %v961_v32 }
 0x128   :  { %v1802_v43 = vrot.slane %v1801_v31, 2  ;;  %v1810_v44 = vadd.f32 %v1809_v37, %v1808_v20  ;;  %v4354_v45 = vpop.f32.mrf.mxu0  ;;  %v2044_v29 = vsel %vm1700_vm2, %v1672_v17, 0.0  ;;  %v2050_v4 = vsel %vm1700_vm2, %v1675_v41, 0.0 }
 0x129   :  { %v1815_v57 = vsel %vm1700_vm2, %v1585_v38, 0.0  ;;  %v1584_v51 = vmax.f32 %v962_v39, 0.0  ;;  %v977_v2 = vadd.f32 %v4354_v45, %v5345_v18  ;;  %v2045_v34 = vadd.f32 %v2044_v29, %v2043_v12  ;;  %v5674_v12 = vpop.f32.mrf.mxu1 }
 0x12a   :  { %v1803_v33 = vadd.f32 %v1802_v43, %v1801_v31  ;;  %v1812_v54 = vadd.f32 %v1811_v40, %v1810_v44  ;;  %v971_v55 = vpop.f32.mrf.mxu0  ;;  %v1412_v43 = vadd.f32 %v5345_v18, %v5564_v35  ;;  %v2429_v35 = vsel %vm2160_vm5, %v5604_v23, %v5582_v58 }
 0x12b   :  { %v1813_v63 = vsel %vm1700_vm2, %v1584_v51, 0.0  ;;  %v1587_v0 = vmax.f32 %v977_v2, 0.0  ;;  %v972_v14 = vadd.f32 %v5345_v18, %v971_v55  ;;  %v2047_v47 = vadd.f32 %v2046_v15, %v2045_v34 }
 0x12c   :  { %v1804_v9 = vrot.slane %v1803_v33, 1  ;;  %v1814_v11 = vadd.f32 %v1813_v63, %v1812_v54  ;;  %v4357_v13 = vpop.f32.mrf.mxu0  ;;  %v1674_v55 = vmax.f32 %v1412_v43, 0.0 }
 0x12d   :  { %v1819_v19 = vsel %vm1700_vm2, %v1587_v0, 0.0  ;;  %v1586_v20 = vmax.f32 %v972_v14, 0.0  ;;  %v987_v22 = vadd.f32 %v4357_v13, %v5345_v18  ;;  %v1427_v0 = vadd.f32 %v5573_v46, %v5345_v18 }
 0x12e   :  { %v1805_v26 = vadd.f32 %v1804_v9, %v1803_v33  ;;  %v1816_v40 = vadd.f32 %v1815_v57, %v1814_v11  ;;  %v981_v28 = vpop.f32.mrf.mxu0  ;;  %v2048_v13 = vsel %vm1700_vm2, %v1674_v55, 0.0  ;;  %v1422_v46 = vadd.f32 %v5345_v18, %v5584_v59 }
 0x12f   :  { %v1817_v31 = vsel %vm1700_vm2, %v1586_v20, 0.0  ;;  %v1589_v32 = vmax.f32 %v987_v22, 0.0  ;;  %v982_v48 = vadd.f32 %v5345_v18, %v981_v28  ;;  %v1677_v15 = vmax.f32 %v1427_v0, 0.0 }
 0x130   :  { %v5639_v37 = vmul.f32 0.015625, %v1805_v26  ;;  %v1818_v38 = vadd.f32 %v1817_v31, %v1816_v40  ;;  %v4360_v39 = vpop.f32.mrf.mxu0  ;;  %v2049_v22 = vadd.f32 %v2048_v13, %v2047_v47  ;;  %v1676_v28 = vmax.f32 %v1422_v46, 0.0 }
 0x131   :  { %v1828_v44 = vsel %vm1700_vm2, %v1589_v32, 0.0  ;;  %v1588_v45 = vmax.f32 %v982_v48, 0.0  ;;  %v997_v24 = vadd.f32 %v4360_v39, %v5345_v18  ;;  %v2059_v32 = vsel %vm1700_vm2, %v1677_v15, 0.0 }
 0x132   :  { %v5645_v49 = vadd.f32 %v1819_v19, %v1818_v38  ;;  %v991_v57 = vpop.f32.mrf.mxu0  ;;  %v2163_v51 = vsel %vm2162_vm6, %v5639_v37, %v5591_v5  ;;  %v2421_v2 = vmul.f32 %v5639_v37, %v5639_v37  ;;  %v5677_v31 = vadd.f32 %v2050_v4, %v2049_v22 }
 0x133   :  { %v1827_v52 = vsel %vm1700_vm2, %v1588_v45, 0.0  ;;  %v1591_v33 = vmax.f32 %v997_v24, 0.0  ;;  %v992_v54 = vadd.f32 %v5345_v18, %v991_v57  ;;  %4532 = vmatmul.mubr.msk.f32.vlgmr.msra.gmra.mxu1 %vm1700_vm2, %v2163_v51  ;;  %v2058_v34 = vsel %vm1700_vm2, %v1676_v28, 0.0  ;;  %v5686_v45 = vpop.f32.mrf.mxu1 }
 0x134   :  { %v1829_v61 = vadd.f32 %v1828_v44, %v1827_v52  ;;  %v4363_v63 = vpop.f32.mrf.mxu0  ;;  %v2430_v5 = vsel %vm2162_vm6, %v2421_v2, %v2429_v35  ;;  %4550 = vmatprep.mubr.msk.f32.mxu1 %vm4738_vm1, %v4737_v21  ;;  %v1437_v38 = vadd.f32 %v5596_v10, %v5345_v18  ;;  %v2060_v57 = vadd.f32 %v2059_v32, %v2058_v34 }
 0x135   :  { %v1590_v58 = vmax.f32 %v992_v54, 0.0  ;;  %v1007_v23 = vadd.f32 %v4363_v63, %v5345_v18  ;;  %v2433_v14 = vsel %vm2432_vm7, %v2430_v5, 0.0  ;;  %v1832_v9 = vsel %vm1700_vm2, %v1591_v33, 0.0  ;;  %v5694_v5 = vpop.f32.mrf.mxu1 }
 0x136   :  { %v1001_v11 = vpop.f32.mrf.mxu0  ;;  %2434 = vadd.xlane.f32.xlu0 %v2433_v14  ;;  %v1679_v33 = vmax.f32 %v1437_v38, 0.0  ;;  %v1432_v10 = vadd.f32 %v5345_v18, %v5606_v27  ;;  %v1447_v14 = vadd.f32 %v5617_v42, %v5345_v18  ;;  %v1442_v46 = vadd.f32 %v5345_v18, %v5627_v8 }
 0x137   :  { %v1830_v17 = vsel %vm1700_vm2, %v1590_v58, 0.0  ;;  %v1593_v19 = vmax.f32 %v1007_v23, 0.0  ;;  %v1002_v20 = vadd.f32 %v5345_v18, %v1001_v11  ;;  %v5708_v22 = vpop.f32.mrf.mxu1  ;;  %v1457_v8 = vadd.f32 %v5637_v36, %v5345_v18 }
 0x138   :  { %v1831_v26 = vadd.f32 %v1830_v17, %v1829_v61  ;;  %v4366_v40 = vpop.f32.mrf.mxu0  ;;  %v1678_v23 = vmax.f32 %v1432_v10, 0.0  ;;  %v2063_v42 = vsel %vm1700_vm2, %v1679_v33, 0.0  ;;  %vm2757_vm7 = vcmask 130048  }
 0x139   :  { %v1592_v29 = vmax.f32 %v1002_v20, 0.0  ;;  %v1017_v30 = vadd.f32 %v4366_v40, %v5345_v18  ;;  %v1836_v39 = vsel %vm1700_vm2, %v1593_v19, 0.0  ;;  %v1683_v36 = vmax.f32 %v1457_v8, 0.0 }
 0x13a   :  { %v1833_v48 = vadd.f32 %v1832_v9, %v1831_v26  ;;  %v1011_v59 = vpop.f32.mrf.mxu0  ;;  %v2061_v15 = vsel %vm1700_vm2, %v1678_v23, 0.0 }
 0x13b   :  { %v1834_v41 = vsel %vm1700_vm2, %v1592_v29, 0.0  ;;  %v1595_v43 = vmax.f32 %v1017_v30, 0.0  ;;  %v1012_v44 = vadd.f32 %v5345_v18, %v1011_v59  ;;  %v2062_v28 = vadd.f32 %v2061_v15, %v2060_v57 }
 0x13c   :  { %v1835_v24 = vadd.f32 %v1834_v41, %v1833_v48  ;;  %v4369_v47 = vpop.f32.mrf.mxu0  ;;  %v1681_v29 = vmax.f32 %v1447_v14, 0.0  ;;  %v1680_v59 = vmax.f32 %v1442_v46, 0.0  ;;  %v2071_v46 = vsel %vm1700_vm2, %v1683_v36, 0.0 }
 0x13d   :  { %v1594_v51 = vmax.f32 %v1012_v44, 0.0  ;;  %v1027_v2 = vadd.f32 %v4369_v47, %v5345_v18  ;;  %v1840_v54 = vsel %vm1700_vm2, %v1595_v43, 0.0  ;;  %v2064_v34 = vadd.f32 %v2063_v42, %v2062_v28  ;;  %v5716_v44 = vpop.f32.mrf.mxu1 }
 0x13e   :  { %v1837_v35 = vadd.f32 %v1836_v39, %v1835_v24  ;;  %v1021_v52 = vpop.f32.mrf.mxu0  ;;  %v2067_v57 = vsel %vm1700_vm2, %v1681_v29, 0.0 }
 0x13f   :  { %v1838_v55 = vsel %vm1700_vm2, %v1594_v51, 0.0  ;;  %v1597_v61 = vmax.f32 %v1027_v2, 0.0  ;;  %v1022_v63 = vadd.f32 %v5345_v18, %v1021_v52  ;;  %v2065_v51 = vsel %vm1700_vm2, %v1680_v59, 0.0  ;;  %v5726_v23 = vpop.f32.mrf.mxu1 }
 0x140   :  { %v1839_v0 = vadd.f32 %v1838_v55, %v1837_v35  ;;  %v4372_v58 = vpop.f32.mrf.mxu0  ;;  %v2066_v52 = vadd.f32 %v2065_v51, %v2064_v34  ;;  %v1452_v55 = vadd.f32 %v5345_v18, %v5658_v60  ;;  %v1462_v60 = vadd.f32 %v5345_v18, %v5686_v45 }
 0x141   :  { %v1849_v4 = vsel %vm1700_vm2, %v1597_v61, 0.0  ;;  %v1596_v9 = vmax.f32 %v1022_v63, 0.0  ;;  %v1037_v27 = vadd.f32 %v4372_v58, %v5345_v18 }
 0x142   :  { %v5700_v11 = vadd.f32 %v1840_v54, %v1839_v0  ;;  %v1031_v13 = vpop.f32.mrf.mxu0  ;;  %v2068_v58 = vadd.f32 %v2067_v57, %v2066_v52  ;;  %v1684_v59 = vmax.f32 %v1462_v60, 0.0 }
 0x143   :  { %v1848_v17 = vsel %vm1700_vm2, %v1596_v9, 0.0  ;;  %v1599_v19 = vmax.f32 %v1037_v27, 0.0  ;;  %v1032_v20 = vadd.f32 %v5345_v18, %v1031_v13  ;;  %v1682_v9 = vmax.f32 %v1452_v55, 0.0 }
 0x144   :  { %v1850_v26 = vadd.f32 %v1849_v4, %v1848_v17  ;;  %v4375_v40 = vpop.f32.mrf.mxu0  ;;  %v1467_v27 = vadd.f32 %v5674_v12, %v5345_v18  ;;  %v5740_v12 = vld [vmem:[%s6532_s2 + $0x28] ss:$0 sm:$0xff] }
 0x145   :  { %v1598_v30 = vmax.f32 %v1032_v20, 0.0  ;;  %v1047_v32 = vadd.f32 %v4375_v40, %v5345_v18  ;;  %v1853_v38 = vsel %vm1700_vm2, %v1599_v19, 0.0  ;;  %v2069_v42 = vsel %vm1700_vm2, %v1682_v9, 0.0 }
 0x146   :  { %v1041_v48 = vpop.f32.mrf.mxu0  ;;  %v1472_v57 = vadd.f32 %v5740_v12, %v5708_v22 }
 0x147   :  { %v1851_v39 = vsel %vm1700_vm2, %v1598_v30, 0.0  ;;  %v1601_v41 = vmax.f32 %v1047_v32, 0.0  ;;  %v1042_v43 = vadd.f32 %v5345_v18, %v1041_v48  ;;  %v2070_v30 = vadd.f32 %v2069_v42, %v2068_v58  ;;  %v4510_v32 = vpop.f32.mrf.mxu1 }
 0x148   :  { %v1852_v24 = vadd.f32 %v1851_v39, %v1850_v26  ;;  %v4378_v47 = vpop.f32.mrf.mxu0  ;;  %v1685_v26 = vmax.f32 %v1467_v27, 0.0 }
 0x149   :  { %v1600_v2 = vmax.f32 %v1042_v43, 0.0  ;;  %v1057_v35 = vadd.f32 %v4378_v47, %v5345_v18  ;;  %v1857_v33 = vsel %vm1700_vm2, %v1601_v41, 0.0  ;;  %v5746_v39 = vadd.f32 %v2071_v46, %v2070_v30  ;;  %v1491_v52 = vpop.f32.mrf.mxu1 }
 0x14a   :  { %v1854_v10 = vadd.f32 %v1853_v38, %v1852_v24  ;;  %v1051_v54 = vpop.f32.mrf.mxu0  ;;  %v2080_v48 = vsel %vm1700_vm2, %v1685_v26, 0.0  ;;  %v2079_v24 = vsel %vm1700_vm2, %v1684_v59, 0.0  ;;  %v1477_v47 = vadd.f32 %v5740_v12, %v5694_v5 }
 0x14b   :  { %v1855_v61 = vsel %vm1700_vm2, %v1600_v2, 0.0  ;;  %v1603_v63 = vmax.f32 %v1057_v35, 0.0  ;;  %v1052_v0 = vadd.f32 %v5345_v18, %v1051_v54 }
 0x14c   :  { %v1856_v14 = vadd.f32 %v1855_v61, %v1854_v10  ;;  %v4381_v4 = vpop.f32.mrf.mxu0  ;;  %v2081_v10 = vadd.f32 %v2080_v48, %v2079_v24  ;;  %v1687_v61 = vmax.f32 %v1477_v47, 0.0  ;;  %v1497_v47 = vadd.f32 %v5740_v12, %v4510_v32 }
 0x14d   :  { %v1602_v13 = vmax.f32 %v1052_v0, 0.0  ;;  %v1067_v15 = vadd.f32 %v4381_v4, %v5345_v18  ;;  %v1861_v17 = vsel %vm1700_vm2, %v1603_v63, 0.0  ;;  %v1686_v0 = vmax.f32 %v1472_v57, 0.0  ;;  %v4513_v4 = vpop.f32.mrf.mxu1 }
 0x14e   :  { %v1858_v19 = vadd.f32 %v1857_v33, %v1856_v14  ;;  %v1061_v20 = vpop.f32.mrf.mxu0 }
 0x14f   :  { %v1859_v40 = vsel %vm1700_vm2, %v1602_v13, 0.0  ;;  %v1605_v28 = vmax.f32 %v1067_v15, 0.0  ;;  %v1062_v29 = vadd.f32 %v5740_v12, %v1061_v20  ;;  %v2082_v13 = vsel %vm1700_vm2, %v1686_v0, 0.0  ;;  %v1501_v30 = vpop.f32.mrf.mxu1 }
 0x150   :  { %v1860_v18 = vadd.f32 %v1859_v40, %v1858_v19  ;;  %v4384_v45 = vpop.f32.mrf.mxu0  ;;  %v1487_v15 = vadd.f32 %v5740_v12, %v5716_v44  ;;  %v2083_v42 = vadd.f32 %v2082_v13, %v2081_v10  ;;  %v1482_v44 = vadd.f32 %v5740_v12, %v5726_v23 }
 0x151   :  { %v1870_v34 = vsel %vm1700_vm2, %v1605_v28, 0.0  ;;  %v1604_v8 = vmax.f32 %v1062_v29, 0.0  ;;  %v1077_v38 = vadd.f32 %v5740_v12, %v4384_v45 }
 0x152   :  { %v5748_v41 = vadd.f32 %v1861_v17, %v1860_v18  ;;  %v1071_v43 = vpop.f32.mrf.mxu0  ;;  %v2084_v17 = vsel %vm1700_vm2, %v1687_v61, 0.0  ;;  %v1689_v48 = vmax.f32 %v1487_v15, 0.0  ;;  %v1688_v24 = vmax.f32 %v1482_v44, 0.0 }
 0x153   :  { %v1869_v51 = vsel %vm1700_vm2, %v1604_v8, 0.0  ;;  %v1607_v2 = vmax.f32 %v1077_v38, 0.0  ;;  %v1072_v35 = vadd.f32 %v5740_v12, %v1071_v43  ;;  %v2085_v59 = vadd.f32 %v2084_v17, %v2083_v42 }
 0x154   :  { %v1871_v36 = vadd.f32 %v1870_v34, %v1869_v51  ;;  %v4387_v33 = vpop.f32.mrf.mxu0  ;;  %v2088_v23 = vsel %vm1700_vm2, %v1689_v48, 0.0 }
 0x155   :  { %v1606_v54 = vmax.f32 %v1072_v35, 0.0  ;;  %v1087_v55 = vadd.f32 %v5740_v12, %v4387_v33  ;;  %v1874_v5 = vsel %vm1700_vm2, %v1607_v2, 0.0 }
 0x156   :  { %v1081_v63 = vpop.f32.mrf.mxu0 }
 0x157   :  { %v1872_v58 = vsel %vm1700_vm2, %v1606_v54, 0.0  ;;  %v1609_v22 = vmax.f32 %v1087_v55, 0.0  ;;  %v1082_v14 = vadd.f32 %v5740_v12, %v1081_v63  ;;  %v2086_v54 = vsel %vm1700_vm2, %v1688_v24, 0.0 }
 0x158   :  { %v1873_v9 = vadd.f32 %v1872_v58, %v1871_v36  ;;  %v4390_v27 = vpop.f32.mrf.mxu0  ;;  %v4516_v36 = vpop.f32.mrf.mxu1  ;;  %v2087_v32 = vadd.f32 %v2086_v54, %v2085_v59  ;;  %v1691_v58 = vmax.f32 %v1497_v47, 0.0 }
 0x159   :  { %v1608_v46 = vmax.f32 %v1082_v14, 0.0  ;;  %v1097_v60 = vadd.f32 %v5740_v12, %v4390_v27  ;;  %v1878_v26 = vsel %vm1700_vm2, %v1609_v22, 0.0  ;;  %v1492_v22 = vadd.f32 %v5740_v12, %v1491_v52 }
 0x15a   :  { %v1875_v19 = vadd.f32 %v1874_v5, %v1873_v9  ;;  %v1091_v20 = vpop.f32.mrf.mxu0  ;;  %v1507_v14 = vadd.f32 %v5740_v12, %v4513_v4  ;;  %v2089_v15 = vadd.f32 %v2088_v23, %v2087_v32  ;;  %v2092_v4 = vsel %vm1700_vm2, %v1691_v58, 0.0 }
 0x15b   :  { %v1876_v40 = vsel %vm1700_vm2, %v1608_v46, 0.0  ;;  %v1611_v28 = vmax.f32 %v1097_v60, 0.0  ;;  %v1092_v29 = vadd.f32 %v5740_v12, %v1091_v20  ;;  %v1511_v46 = vpop.f32.mrf.mxu1 }
 0x15c   :  { %v1877_v18 = vadd.f32 %v1876_v40, %v1875_v19  ;;  %v4393_v45 = vpop.f32.mrf.mxu0  ;;  %v1690_v19 = vmax.f32 %v1492_v22, 0.0  ;;  %v1502_v40 = vadd.f32 %v5740_v12, %v1501_v30 }
 0x15d   :  { %v1610_v34 = vmax.f32 %v1092_v29, 0.0  ;;  %v1107_v8 = vadd.f32 %v5740_v12, %v4393_v45  ;;  %v1882_v57 = vsel %vm1700_vm2, %v1611_v28, 0.0  ;;  %v4519_v59 = vpop.f32.mrf.mxu1 }
 0x15e   :  { %v1879_v38 = vadd.f32 %v1878_v26, %v1877_v18  ;;  %v1101_v43 = vpop.f32.mrf.mxu0  ;;  %v1693_v26 = vmax.f32 %v1507_v14, 0.0  ;;  %v2090_v29 = vsel %vm1700_vm2, %v1690_v19, 0.0 }
 0x15f   :  { %v1880_v51 = vsel %vm1700_vm2, %v1610_v34, 0.0  ;;  %v1613_v2 = vmax.f32 %v1107_v8, 0.0  ;;  %v1102_v35 = vadd.f32 %v5740_v12, %v1101_v43  ;;  %v2091_v44 = vadd.f32 %v2090_v29, %v2089_v15 }
 0x160   :  { %v1881_v33 = vadd.f32 %v1880_v51, %v1879_v38  ;;  %v4396_v10 = vpop.f32.mrf.mxu0  ;;  %v1692_v38 = vmax.f32 %v1502_v40, 0.0  ;;  %v1517_v43 = vadd.f32 %v5740_v12, %v4516_v36 }
 0x161   :  { %v1891_v55 = vsel %vm1700_vm2, %v1613_v2, 0.0  ;;  %v1612_v61 = vmax.f32 %v1102_v35, 0.0  ;;  %v1117_v63 = vadd.f32 %v5740_v12, %v4396_v10  ;;  %v5795_v47 = vadd.f32 %v2092_v4, %v2091_v44 }
 0x162   :  { %v5780_v0 = vadd.f32 %v1882_v57, %v1881_v33  ;;  %v1111_v5 = vpop.f32.mrf.mxu0  ;;  %v2101_v57 = vsel %vm1700_vm2, %v1693_v26, 0.0  ;;  %v2100_v35 = vsel %vm1700_vm2, %v1692_v38, 0.0  ;;  %v1695_v32 = vmax.f32 %v1517_v43, 0.0 }
 0x163   :  { %v1890_v9 = vsel %vm1700_vm2, %v1612_v61, 0.0  ;;  %v1615_v27 = vmax.f32 %v1117_v63, 0.0  ;;  %v1112_v13 = vadd.f32 %v5740_v12, %v1111_v5  ;;  %v2102_v63 = vadd.f32 %v2101_v57, %v2100_v35 }
 0x164   :  { %v1892_v60 = vadd.f32 %v1891_v55, %v1890_v9  ;;  %v4399_v17 = vpop.f32.mrf.mxu0  ;;  %v1521_v55 = vpop.f32.mrf.mxu1  ;;  %v1512_v5 = vadd.f32 %v5740_v12, %v1511_v46  ;;  %v2105_v46 = vsel %vm1700_vm2, %v1695_v32, 0.0 }
 0x165   :  { %v1614_v20 = vmax.f32 %v1112_v13, 0.0  ;;  %v1127_v42 = vadd.f32 %v5740_v12, %v4399_v17  ;;  %v1895_v52 = vsel %vm1700_vm2, %v1615_v27, 0.0  ;;  %v1527_v13 = vadd.f32 %v5740_v12, %v4519_v59 }
 0x166   :  { %v1121_v28 = vpop.f32.mrf.mxu0  ;;  %v1694_v27 = vmax.f32 %v1512_v5, 0.0  ;;  %v1522_v44 = vadd.f32 %v5740_v12, %v1521_v55 }
 0x167   :  { %v1893_v18 = vsel %vm1700_vm2, %v1614_v20, 0.0  ;;  %v1617_v45 = vmax.f32 %v1127_v42, 0.0  ;;  %v1122_v48 = vadd.f32 %v5740_v12, %v1121_v28  ;;  %v4522_v20 = vpop.f32.mrf.mxu1  ;;  %v1697_v29 = vmax.f32 %v1527_v13, 0.0  ;;  %v2252_v13 = vld [vmem:[%s6532_s2 + $0xb0] sm:$0xff] }
 0x168   :  { %v1894_v34 = vadd.f32 %v1893_v18, %v1892_v60  ;;  %v4402_v8 = vpop.f32.mrf.mxu0  ;;  %v2103_v40 = vsel %vm1700_vm2, %v1694_v27, 0.0 }
 0x169   :  { %v1616_v30 = vmax.f32 %v1122_v48, 0.0  ;;  %v1137_v24 = vadd.f32 %v5740_v12, %v4402_v8  ;;  %v1899_v33 = vsel %vm1700_vm2, %v1617_v45, 0.0  ;;  %v2104_v48 = vadd.f32 %v2103_v40, %v2102_v63  ;;  %v1531_v38 = vpop.f32.mrf.mxu1  ;;  %v2251_v40 = vld [vmem:[%s6532_s2 + $0xa8] sm:$0xff] }
 0x16a   :  { %v1896_v51 = vadd.f32 %v1895_v52, %v1894_v34  ;;  %v1131_v2 = vpop.f32.mrf.mxu0  ;;  %v2109_v35 = vsel %vm1700_vm2, %v1697_v29, 0.0  ;;  %v1532_v55 = vadd.f32 %v5740_v12, %v1531_v38 }
 0x16b   :  { %v1897_v10 = vsel %vm1700_vm2, %v1616_v30, 0.0  ;;  %v1619_v23 = vmax.f32 %v1137_v24, 0.0  ;;  %v1132_v54 = vadd.f32 %v5740_v12, %v1131_v2  ;;  %v1696_v24 = vmax.f32 %v1522_v44, 0.0  ;;  %v2250_v44 = vld [vmem:[%s6532_s2 + $0xa0] sm:$0xff] }
 0x16c   :  { %v1898_v36 = vadd.f32 %v1897_v10, %v1896_v51  ;;  %v4405_v61 = vpop.f32.mrf.mxu0  ;;  %v2106_v57 = vadd.f32 %v2105_v46, %v2104_v48  ;;  %v1698_v27 = vmax.f32 %v1532_v55, 0.0 }
 0x16d   :  { %v1618_v58 = vmax.f32 %v1132_v54, 0.0  ;;  %v1147_v22 = vadd.f32 %v5740_v12, %v4405_v61  ;;  %v1903_v15 = vsel %vm1700_vm2, %v1619_v23, 0.0  ;;  %v2107_v23 = vsel %vm1700_vm2, %v1696_v24, 0.0  ;;  %v2253_v61 = vld [vmem:[%s6532_s2 + $0xb8] sm:$0xff] }
 0x16e   :  { %v1900_v14 = vadd.f32 %v1899_v33, %v1898_v36  ;;  %v1141_v9 = vpop.f32.mrf.mxu0  ;;  %v1537_v54 = vadd.f32 %v5740_v12, %v4522_v20  ;;  %v2254_v36 = vld [vmem:[%s6532_s2 + $0xc0] sm:$0xff]  ;;  %v2111_v46 = vsel %vm1700_vm2, %v1698_v27, 0.0 }
 0x16f   :  { %v1901_v60 = vsel %vm1700_vm2, %v1618_v58, 0.0  ;;  %v1621_v17 = vmax.f32 %v1147_v22, 0.0  ;;  %v1142_v19 = vadd.f32 %v5740_v12, %v1141_v9  ;;  %v2108_v58 = vadd.f32 %v2107_v23, %v2106_v57  ;;  %4535 = vmatpush3.msra.mxu1 %v2254_v36 }
 0x170   :  { %v1902_v42 = vadd.f32 %v1901_v60, %v1900_v14  ;;  %v4408_v26 = vpop.f32.mrf.mxu0  ;;  %v1699_v9 = vmax.f32 %v1537_v54, 0.0  ;;  %4536 = vmatprep.subr.mxu1 %v4737_v21 }
 0x171   :  { %v1912_v52 = vsel %vm1700_vm2, %v1621_v17, 0.0  ;;  %v1620_v28 = vmax.f32 %v1142_v19, 0.0  ;;  %v1157_v4 = vadd.f32 %v5740_v12, %v4408_v26  ;;  %v2110_v17 = vadd.f32 %v2109_v35, %v2108_v58  ;;  %4537 = vmatpush3.msra.mxu1 %v2253_v61 }
 0x172   :  { %v5812_v18 = vadd.f32 %v1903_v15, %v1902_v42  ;;  %v1151_v45 = vpop.f32.mrf.mxu0  ;;  %v2113_v26 = vsel %vm1700_vm2, %v1699_v9, 0.0  ;;  %4538 = vmatprep.subr.mxu1 %v4737_v21 }
 0x173   :  { %v1911_v59 = vsel %vm1700_vm2, %v1620_v28, 0.0  ;;  %v1623_v34 = vmax.f32 %v1157_v4, 0.0  ;;  %v1152_v8 = vadd.f32 %v5740_v12, %v1151_v45  ;;  %v2112_v29 = vadd.f32 %v2111_v46, %v2110_v17  ;;  %4539 = vmatpush3.msra.mxu1 %v2252_v13 }
 0x174   :  { %v1913_v43 = vadd.f32 %v1912_v52, %v1911_v59  ;;  %v4411_v30 = vpop.f32.mrf.mxu0  ;;  %4540 = vmatprep.subr.mxu1 %v4737_v21 }
 0x175   :  { %v1622_v51 = vmax.f32 %v1152_v8, 0.0  ;;  %v1167_v2 = vadd.f32 %v5740_v12, %v4411_v30  ;;  %v1916_v33 = vsel %vm1700_vm2, %v1623_v34, 0.0  ;;  %v5850_v8 = vadd.f32 %v2113_v26, %v2112_v29  ;;  %4541 = vmatpush3.msra.mxu1 %v2251_v40  ;;  %v2249_v30 = vld [vmem:[%s6532_s2 + $0x98] sm:$0xff] }
 0x176   :  { %v1161_v10 = vpop.f32.mrf.mxu0  ;;  %4542 = vmatprep.subr.mxu1 %v4737_v21 }
 0x177   :  { %v1914_v63 = vsel %vm1700_vm2, %v1622_v51, 0.0  ;;  %v1625_v32 = vmax.f32 %v1167_v2, 0.0  ;;  %v1162_v5 = vadd.f32 %v5740_v12, %v1161_v10  ;;  %4543 = vmatpush3.msra.mxu1 %v2250_v44  ;;  %v2248_v10 = vld [vmem:[%s6532_s2 + $0x90] sm:$0xff] }
 0x178   :  { %v1915_v22 = vadd.f32 %v1914_v63, %v1913_v43  ;;  %v4414_v14 = vpop.f32.mrf.mxu0  ;;  %4544 = vmatprep.subr.mxu1 %v4737_v21  ;;  %v2247_v63 = vld [vmem:[%s6532_s2 + $0x88] sm:$0xff] }
 0x179   :  { %v1624_v15 = vmax.f32 %v1162_v5, 0.0  ;;  %v1177_v60 = vadd.f32 %v5740_v12, %v4414_v14  ;;  %v1920_v19 = vsel %vm1700_vm2, %v1625_v32, 0.0  ;;  %4545 = vmatpush3.msra.mxu1 %v2249_v30 }
 0x17a   :  { %v1917_v20 = vadd.f32 %v1916_v33, %v1915_v22  ;;  %v1171_v42 = vpop.f32.mrf.mxu0  ;;  %4546 = vmatprep.subr.mxu1 %v4737_v21 }
 0x17b   :  { %v1918_v52 = vsel %vm1700_vm2, %v1624_v15, 0.0  ;;  %v1627_v28 = vmax.f32 %v1177_v60, 0.0  ;;  %v1172_v4 = vadd.f32 %v5740_v12, %v1171_v42  ;;  %4547 = vmatpush3.msra.mxu1 %v2248_v10 }
 0x17c   :  { %v1919_v45 = vadd.f32 %v1918_v52, %v1917_v20  ;;  %v4417_v48 = vpop.f32.mrf.mxu0  ;;  %4548 = vmatprep.subr.mxu1 %v4737_v21 }
 0x17d   :  { %v1626_v59 = vmax.f32 %v1172_v4, 0.0  ;;  %v1187_v34 = vadd.f32 %v5740_v12, %v4417_v48  ;;  %v1924_v24 = vsel %vm1700_vm2, %v1627_v28, 0.0  ;;  %4549 = vmatpush3.msra.mxu1 %v2247_v63 }
 0x17e   :  { %v1921_v38 = vadd.f32 %v1920_v19, %v1919_v45  ;;  %v1181_v43 = vpop.f32.mrf.mxu0  ;;  %4553 = vmatprep.subr.mxu1 %v4737_v21 }
 0x17f   :  { %v1922_v57 = vsel %vm1700_vm2, %v1626_v59, 0.0  ;;  %v1629_v51 = vmax.f32 %v1187_v34, 0.0  ;;  %v1182_v2 = vadd.f32 %v5740_v12, %v1181_v43 }
 0x180   :  { %v1923_v35 = vadd.f32 %v1922_v57, %v1921_v38  ;;  %v4420_v33 = vpop.f32.mrf.mxu0 }
 0x181   :  { %v1933_v23 = vsel %vm1700_vm2, %v1629_v51, 0.0  ;;  %v1628_v54 = vmax.f32 %v1182_v2, 0.0  ;;  %v1197_v55 = vadd.f32 %v5740_v12, %v4420_v33 }
 0x182   :  { %v5865_v36 = vadd.f32 %v1924_v24, %v1923_v35  ;;  %v1191_v61 = vpop.f32.mrf.mxu0 }
 0x183   :  { %v1932_v32 = vsel %vm1700_vm2, %v1628_v54, 0.0  ;;  %v1631_v5 = vmax.f32 %v1197_v55, 0.0  ;;  %v1192_v58 = vadd.f32 %v5740_v12, %v1191_v61 }
 0x184   :  { %v1934_v22 = vadd.f32 %v1933_v23, %v1932_v32  ;;  %v4423_v14 = vpop.f32.mrf.mxu0 }
 0x185   :  { %v1630_v9 = vmax.f32 %v1192_v58, 0.0  ;;  %v1207_v27 = vadd.f32 %v5740_v12, %v4423_v14  ;;  %v1937_v15 = vsel %vm1700_vm2, %v1631_v5, 0.0 }
 0x186   :  { %v1201_v13 = vpop.f32.mrf.mxu0 }
 0x187   :  { %v1935_v60 = vsel %vm1700_vm2, %v1630_v9, 0.0  ;;  %v1633_v17 = vmax.f32 %v1207_v27, 0.0  ;;  %v1202_v19 = vadd.f32 %v5740_v12, %v1201_v13 }
 0x188   :  { %v1936_v20 = vadd.f32 %v1935_v60, %v1934_v22  ;;  %v4426_v42 = vpop.f32.mrf.mxu0 }
 0x189   :  { %v1632_v26 = vmax.f32 %v1202_v19, 0.0  ;;  %v1217_v46 = vadd.f32 %v5740_v12, %v4426_v42  ;;  %v1941_v28 = vsel %vm1700_vm2, %v1633_v17, 0.0 }
 0x18a   :  { %v1938_v40 = vadd.f32 %v1937_v15, %v1936_v20  ;;  %v1211_v52 = vpop.f32.mrf.mxu0 }
 0x18b   :  { %v1939_v4 = vsel %vm1700_vm2, %v1632_v26, 0.0  ;;  %v1635_v29 = vmax.f32 %v1217_v46, 0.0  ;;  %v1212_v45 = vadd.f32 %v5740_v12, %v1211_v52 }
 0x18c   :  { %v1940_v48 = vadd.f32 %v1939_v4, %v1938_v40  ;;  %v5883_v44 = vpop.f32.mrf.mxu0 }
 0x18d   :  { %v1634_v59 = vmax.f32 %v1212_v45, 0.0  ;;  %v1945_v43 = vsel %vm1700_vm2, %v1635_v29, 0.0 }
 0x18e   :  { %v1942_v34 = vadd.f32 %v1941_v28, %v1940_v48  ;;  %v5885_v38 = vpop.f32.mrf.mxu0 }
 0x18f   :  { %v1943_v30 = vsel %vm1700_vm2, %v1634_v59, 0.0 }
 0x190   :  { %v1944_v24 = vadd.f32 %v1943_v30, %v1942_v34  ;;  %v5889_v57 = vpop.f32.mrf.mxu0 }
 0x192   :  { %v5891_v51 = vadd.f32 %v1945_v43, %v1944_v24  ;;  %v5893_v2 = vpop.f32.mrf.mxu0 }
 0x194   :  { %v5895_v35 = vpop.f32.mrf.mxu0 }
 0x196   :  { %v5897_v33 = vpop.f32.mrf.mxu0 }
 0x198   :  { %v5899_v10 = vpop.f32.mrf.mxu0 }
 0x19a   :  { %v5901_v23 = vpop.f32.mrf.mxu0 }
 0x19c   :  { %v4441_v54 = vpop.f32.mrf.mxu0 }
 0x19d   :  { %v1267_v55 = vadd.f32 %v5740_v12, %v4441_v54 }
 0x19e   :  { %v1261_v61 = vpop.f32.mrf.mxu0 }
 0x19f   :  { %v1645_v63 = vmax.f32 %v1267_v55, 0.0  ;;  %v1262_v32 = vadd.f32 %v5740_v12, %v1261_v61 }
 0x1a0   :  { %v4444_v5 = vpop.f32.mrf.mxu0 }
 0x1a1   :  { %v1644_v58 = vmax.f32 %v1262_v32, 0.0  ;;  %v1975_v22 = vsel %vm1700_vm2, %v1645_v63, 0.0  ;;  %v1277_v14 = vadd.f32 %v5740_v12, %v4444_v5 }
 0x1a2   :  { %v1271_v9 = vpop.f32.mrf.mxu0 }
 0x1a3   :  { %v1974_v27 = vsel %vm1700_vm2, %v1644_v58, 0.0  ;;  %v1272_v13 = vadd.f32 %v5740_v12, %v1271_v9  ;;  %v1647_v19 = vmax.f32 %v1277_v14, 0.0 }
 0x1a4   :  { %v4447_v15 = vpop.f32.mrf.mxu0  ;;  %v1976_v60 = vadd.f32 %v1975_v22, %v1974_v27 }
 0x1a5   :  { %v1646_v17 = vmax.f32 %v1272_v13, 0.0  ;;  %v1979_v52 = vsel %vm1700_vm2, %v1647_v19, 0.0  ;;  %v1287_v28 = vadd.f32 %v5740_v12, %v4447_v15 }
 0x1a6   :  { %v1281_v20 = vpop.f32.mrf.mxu0 }
 0x1a7   :  { %v1977_v42 = vsel %vm1700_vm2, %v1646_v17, 0.0  ;;  %v1282_v26 = vadd.f32 %v5740_v12, %v1281_v20  ;;  %v1649_v34 = vmax.f32 %v1287_v28, 0.0 }
 0x1a8   :  { %v4450_v46 = vpop.f32.mrf.mxu0  ;;  %v1978_v40 = vadd.f32 %v1977_v42, %v1976_v60 }
 0x1a9   :  { %v1648_v4 = vmax.f32 %v1282_v26, 0.0  ;;  %v1983_v22 = vsel %vm1700_vm2, %v1649_v34, 0.0  ;;  %v1297_v14 = vadd.f32 %v5740_v12, %v4450_v46 }
 0x1aa   :  { %v1291_v29 = vpop.f32.mrf.mxu0  ;;  %v1980_v48 = vadd.f32 %v1979_v52, %v1978_v40 }
 0x1ab   :  { %v1981_v43 = vsel %vm1700_vm2, %v1648_v4, 0.0  ;;  %v1292_v30 = vadd.f32 %v5740_v12, %v1291_v29  ;;  %v1651_v40 = vmax.f32 %v1297_v14, 0.0 }
 0x1ac   :  { %v4453_v45 = vpop.f32.mrf.mxu0  ;;  %v1982_v63 = vadd.f32 %v1981_v43, %v1980_v48 }
 0x1ad   :  { %v1307_v59 = vadd.f32 %v5740_v12, %v4453_v45  ;;  %v1650_v9 = vmax.f32 %v1292_v30, 0.0 }
 0x1ae   :  { %v1301_v24 = vpop.f32.mrf.mxu0  ;;  %v1984_v20 = vadd.f32 %v1983_v22, %v1982_v63 }
 0x1af   :  { %v1653_v54 = vmax.f32 %v1307_v59, 0.0  ;;  %v1302_v55 = vadd.f32 %v5740_v12, %v1301_v24  ;;  %v1985_v52 = vsel %vm1700_vm2, %v1650_v9, 0.0  ;;  %v1987_v24 = vsel %vm1700_vm2, %v1651_v40, 0.0 }
 0x1b0   :  { %v4456_v61 = vpop.f32.mrf.mxu0  ;;  %v1986_v34 = vadd.f32 %v1985_v52, %v1984_v20  ;;  %v1362_v52 = vadd.f32 %v5740_v12, %v5511_v7 }
 0x1b1   :  { %v1996_v32 = vsel %vm1700_vm2, %v1653_v54, 0.0  ;;  %v1652_v5 = vmax.f32 %v1302_v55, 0.0  ;;  %v1317_v58 = vadd.f32 %v5740_v12, %v4456_v61 }
 0x1b2   :  { %v1311_v27 = vpop.f32.mrf.mxu0  ;;  %v1988_v9 = vadd.f32 %v1987_v24, %v1986_v34  ;;  %v1372_v24 = vadd.f32 %v5740_v12, %v5519_v25 }
 0x1b3   :  { %v1995_v13 = vsel %vm1700_vm2, %v1652_v5, 0.0  ;;  %v1655_v15 = vmax.f32 %v1317_v58, 0.0  ;;  %v1312_v60 = vadd.f32 %v5740_v12, %v1311_v27  ;;  %v1352_v58 = vadd.f32 %v5740_v12, %v5503_v56 }
 0x1b4   :  { %v1997_v17 = vadd.f32 %v1996_v32, %v1995_v13  ;;  %v4459_v19 = vpop.f32.mrf.mxu0 }
 0x1b5   :  { %v1654_v42 = vmax.f32 %v1312_v60, 0.0  ;;  %v1327_v26 = vadd.f32 %v5740_v12, %v4459_v19  ;;  %v2000_v4 = vsel %vm1700_vm2, %v1655_v15, 0.0  ;;  %v1357_v15 = vadd.f32 %v5740_v12, %v5498_v50 }
 0x1b6   :  { %v1321_v28 = vpop.f32.mrf.mxu0  ;;  %v1662_v40 = vmax.f32 %v1352_v58, 0.0  ;;  %v1367_v50 = vadd.f32 %v5740_v12, %v5507_v1  ;;  %v1377_v1 = vadd.f32 %v5740_v12, %v5515_v16  ;;  %v2073_v58 = vrot.slane %v5746_v39, 4 }
 0x1b7   :  { %v1998_v46 = vsel %vm1700_vm2, %v1654_v42, 0.0  ;;  %v1657_v29 = vmax.f32 %v1327_v26, 0.0  ;;  %v1322_v45 = vadd.f32 %v5740_v12, %v1321_v28  ;;  %v1989_v28 = vrot.slane %v1988_v9, 4 }
 0x1b8   :  { %v1999_v48 = vadd.f32 %v1998_v46, %v1997_v17  ;;  %v4462_v59 = vpop.f32.mrf.mxu0 }
 0x1b9   :  { %v1656_v43 = vmax.f32 %v1322_v45, 0.0  ;;  %v1337_v30 = vadd.f32 %v5740_v12, %v4462_v59  ;;  %v2004_v61 = vsel %vm1700_vm2, %v1657_v29, 0.0  ;;  %v1663_v45 = vmax.f32 %v1357_v15, 0.0 }
 0x1ba   :  { %v2001_v54 = vadd.f32 %v2000_v4, %v1999_v48  ;;  %v1331_v55 = vpop.f32.mrf.mxu0  ;;  %v1990_v7 = vadd.f32 %v1989_v28, %v1988_v9  ;;  %v1666_v9 = vmax.f32 %v1372_v24, 0.0 }
 0x1bb   :  { %v2002_v63 = vsel %vm1700_vm2, %v1656_v43, 0.0  ;;  %v1659_v32 = vmax.f32 %v1337_v30, 0.0  ;;  %v1332_v5 = vadd.f32 %v5740_v12, %v1331_v55  ;;  %v2019_v43 = vsel %vm1700_vm2, %v1662_v40, 0.0 }
 0x1bc   :  { %v2003_v22 = vadd.f32 %v2002_v63, %v2001_v54  ;;  %v4465_v14 = vpop.f32.mrf.mxu0  ;;  %v1664_v30 = vmax.f32 %v1362_v52, 0.0  ;;  %v1665_v54 = vmax.f32 %v1367_v50, 0.0  ;;  %v2021_v63 = vsel %vm1700_vm2, %v1663_v45, 0.0 }
 0x1bd   :  { %v1658_v27 = vmax.f32 %v1332_v5, 0.0  ;;  %v1347_v13 = vadd.f32 %v5740_v12, %v4465_v14  ;;  %v2008_v19 = vsel %vm1700_vm2, %v1659_v32, 0.0  ;;  %v2052_v32 = vrot.slane %v5677_v31, 4 }
 0x1be   :  { %v2005_v60 = vadd.f32 %v2004_v61, %v2003_v22  ;;  %v1341_v17 = vpop.f32.mrf.mxu0  ;;  %v2094_v5 = vrot.slane %v5795_v47, 4  ;;  %v2115_v14 = vrot.slane %v5850_v8, 4  ;;  %v2023_v25 = vsel %vm1700_vm2, %v1664_v30, 0.0 }
 0x1bf   :  { %v2006_v20 = vsel %vm1700_vm2, %v1658_v27, 0.0  ;;  %v1661_v42 = vmax.f32 %v1347_v13, 0.0  ;;  %v1342_v26 = vadd.f32 %v5740_v12, %v1341_v17  ;;  %v1991_v27 = vrot.slane %v1990_v7, 2 }
 0x1c0   :  { %v2007_v56 = vadd.f32 %v2006_v20, %v2005_v60  ;;  %v2025_v60 = vsel %vm1700_vm2, %v1665_v54, 0.0  ;;  %v1667_v17 = vmax.f32 %v1377_v1, 0.0  ;;  %v2053_v16 = vadd.f32 %v2052_v32, %v5677_v31 }
 0x1c1   :  { %v2017_v4 = vsel %vm1700_vm2, %v1661_v42, 0.0  ;;  %v1660_v46 = vmax.f32 %v1342_v26, 0.0  ;;  %v2095_v12 = vadd.f32 %v2094_v5, %v5795_v47  ;;  %v2116_v42 = vadd.f32 %v2115_v14, %v5850_v8 }
 0x1c2   :  { %v2009_v29 = vadd.f32 %v2008_v19, %v2007_v56  ;;  %v2074_v19 = vadd.f32 %v2073_v58, %v5746_v39  ;;  %v2027_v26 = vsel %vm1700_vm2, %v1666_v9, 0.0  ;;  %v1992_v40 = vadd.f32 %v1991_v27, %v1990_v7 }
 0x1c3   :  { %v2016_v48 = vsel %vm1700_vm2, %v1660_v46, 0.0  ;;  %v2029_v28 = vsel %vm1700_vm2, %v1667_v17, 0.0  ;;  %v2096_v46 = vrot.slane %v2095_v12, 2  ;;  %v2117_v45 = vrot.slane %v2116_v42, 2 }
 0x1c4   :  { %v2010_v59 = vrot.slane %v2009_v29, 4  ;;  %v2018_v34 = vadd.f32 %v2017_v4, %v2016_v48  ;;  %v2054_v4 = vrot.slane %v2053_v16, 2  ;;  %v2075_v50 = vrot.slane %v2074_v19, 2 }
 0x1c5   :  { %v1993_v31 = vrot.slane %v1992_v40, 1  ;;  %v2097_v39 = vadd.f32 %v2096_v46, %v2095_v12  ;;  %v2118_v8 = vadd.f32 %v2117_v45, %v2116_v42 }
 0x1c6   :  { %v2011_v55 = vadd.f32 %v2010_v59, %v2009_v29  ;;  %v2020_v61 = vadd.f32 %v2019_v43, %v2018_v34  ;;  %v2055_v59 = vadd.f32 %v2054_v4, %v2053_v16  ;;  %v2076_v34 = vadd.f32 %v2075_v50, %v2074_v19 }
 0x1c7   :  { %v1994_v30 = vadd.f32 %v1993_v31, %v1992_v40  ;;  %v2119_v1 = vrot.slane %v2118_v8, 1 }
 0x1c8   :  { %v2022_v22 = vadd.f32 %v2021_v63, %v2020_v61  ;;  %v2012_v13 = vrot.slane %v2011_v55, 2  ;;  %v2056_v54 = vrot.slane %v2055_v59, 1  ;;  %v2077_v61 = vrot.slane %v2076_v34, 1 }
 0x1c9   :  { %v2135_v32 = vmul.f32 0.015625, %v1994_v30  ;;  %v2120_v27 = vadd.f32 %v2119_v1, %v2118_v8 }
 0x1ca   :  { %v2024_v15 = vadd.f32 %v2023_v25, %v2022_v22  ;;  %v2013_v56 = vadd.f32 %v2012_v13, %v2011_v55  ;;  %v2098_v55 = vrot.slane %v2097_v39, 1  ;;  %v2057_v22 = vadd.f32 %v2056_v54, %v2055_v59 }
 0x1cb   :  { %v2078_v25 = vadd.f32 %v2077_v61, %v2076_v34  ;;  %v2141_v12 = vmul.f32 0.015625, %v2120_v27  ;;  %v2332_v27 = vld [vmem:[%s6532_s2 + $0xd8] sm:$0xff] }
 0x1cc   :  { %v2026_v20 = vadd.f32 %v2025_v60, %v2024_v15  ;;  %v2014_v48 = vrot.slane %v2013_v56, 1  ;;  %v2099_v14 = vadd.f32 %v2098_v55, %v2097_v39  ;;  %v2138_v60 = vmul.f32 0.015625, %v2057_v22 }
 0x1cd   :  { %v2139_v16 = vmul.f32 0.015625, %v2078_v25  ;;  %v1842_v22 = vrot.slane %v5700_v11, 4 }
 0x1ce   :  { %v2028_v52 = vadd.f32 %v2027_v26, %v2026_v20  ;;  %v2015_v24 = vadd.f32 %v2014_v48, %v2013_v56  ;;  %v2140_v17 = vmul.f32 0.015625, %v2099_v14  ;;  %v2435_v56 = vpop.xlane.xlu0 %2434  ;;  %v1863_v14 = vrot.slane %v5748_v41, 4 }
 0x1d0   :  { %v2030_v29 = vadd.f32 %v2029_v28, %v2028_v52  ;;  %v2136_v5 = vmul.f32 0.015625, %v2015_v24  ;;  %v2436_v52 = vmax.f32 %v2435_v56, 1e-24  ;;  %v5976_v28 = vld [vmem:[%s6532_s2 + $0x80] ss:$0 sm:$0xff] }
 0x1d2   :  { %v2031_v47 = vrot.slane %v2030_v29, 4  ;;  %v2478_v13 = vsel %vm2156_vm3, %v2136_v5, %v2135_v32  ;;  %4721 = vrsqrt.f32 %v2436_v52  ;;  %v2334_v5 = vld [vmem:[%s6532_s2 + $0xe8] sm:$0xff]  ;;  %v1947_v52 = vrot.slane %v5891_v51, 4 }
 0x1d4   :  { %v2032_v43 = vadd.f32 %v2031_v47, %v2030_v29 }
 0x1d6   :  { %v2033_v7 = vrot.slane %v2032_v43, 2 }
 0x1d8   :  { %v2034_v63 = vadd.f32 %v2033_v7, %v2032_v43 }
 0x1da   :  { %v2035_v58 = vrot.slane %v2034_v63, 1 }
 0x1dc   :  { %v2036_v9 = vadd.f32 %v2035_v58, %v2034_v63 }
 0x1de   :  { %v2137_v15 = vmul.f32 0.015625, %v2036_v9 }
 0x1df   :  { %v4722_v29 = vpop.eup %4721 }
 0x1e0   :  { %v2479_v19 = vsel %vm2158_vm4, %v2137_v15, %v2478_v13  ;;  %v2439_v47 = vrot.slane %v4722_v29, 1  ;;  %v2440_v39 = vrot.slane %v4722_v29, 2  ;;  %v2441_v7 = vrot.slane %v4722_v29, 3 }
 0x1e1   :  { %v2480_v20 = vsel %vm2160_vm5, %v2138_v60, %v2479_v19  ;;  %v2448_v61 = vmul.f32 %v4722_v29, %v5543_v3  ;;  %v2442_v63 = vrot.slane %v4722_v29, 4  ;;  %v2333_v3 = vld [vmem:[%s6532_s2 + $0xe0] sm:$0xff]  ;;  %v1905_v15 = vrot.slane %v5812_v18, 4 }
 0x1e2   :  { %v2481_v42 = vsel %vm2162_vm6, %v2139_v16, %v2480_v20  ;;  %v2449_v43 = vmul.f32 %v2439_v47, %v5539_v62  ;;  %v2450_v30 = vmul.f32 %v2440_v39, %v5547_v6  ;;  %v2451_v58 = vmul.f32 %v2441_v7, %v5577_v53 }
 0x1e3   :  { %v2482_v26 = vsel %vm2472_vm8, %v2140_v17, %v2481_v42  ;;  %v1821_v6 = vrot.slane %v5645_v49, 4  ;;  %v2452_v25 = vmul.f32 %v2442_v63, %v5639_v37  ;;  %v1884_v53 = vrot.slane %v5780_v0, 4  ;;  %v2331_v17 = vld [vmem:[%s6532_s2 + $0xd0] sm:$0xff] }
 0x1e4   :  { %v5971_v40 = vsel %vm2474_vm9, %v2141_v12, %v2482_v26  ;;  %v2489_v54 = vrot.slane %v2449_v43, 7  ;;  %v2491_v1 = vrot.slane %v2450_v30, 6  ;;  %v2493_v13 = vrot.slane %v2451_v58, 5 }
 0x1e5   :  { %v1822_v60 = vadd.f32 %v1821_v6, %v5645_v49  ;;  %v1843_v37 = vadd.f32 %v1842_v22, %v5700_v11  ;;  %v1864_v12 = vadd.f32 %v1863_v14, %v5748_v41  ;;  %v2495_v19 = vrot.slane %v2452_v25, 4 }
 0x1e6   :  { %v2490_v62 = vsel %vm2156_vm3, %v2489_v54, %v2448_v61  ;;  %v1885_v20 = vadd.f32 %v1884_v53, %v5780_v0  ;;  %v1926_v42 = vrot.slane %v5865_v36, 4  ;;  %v1906_v49 = vadd.f32 %v1905_v15, %v5812_v18 }
 0x1e7   :  { %v2492_v9 = vsel %vm2158_vm4, %v2491_v1, %v2490_v62  ;;  %v1823_v26 = vrot.slane %v1822_v60, 2  ;;  %v1844_v56 = vrot.slane %v1843_v37, 2  ;;  %v1865_v41 = vrot.slane %v1864_v12, 2 }
 0x1e8   :  { %v2494_v16 = vsel %vm2160_vm5, %v2493_v13, %v2492_v9  ;;  %v1927_v0 = vadd.f32 %v1926_v42, %v5865_v36  ;;  %v1948_v18 = vadd.f32 %v1947_v52, %v5891_v51 }
 0x1e9   :  { %v6021_v11 = vsel %vm2162_vm6, %v2495_v19, %v2494_v16  ;;  %v1845_v29 = vadd.f32 %v1844_v56, %v1843_v37 }
 0x1ea   :  { %v1928_v47 = vrot.slane %v1927_v0, 2 }
 0x1f3   :  { %v2232_v4 = vpop.f32.mrf.mxu1 }
 0x1f4   :  { %v2233_v46 = vadd.f32 %v5976_v28, %v2232_v4  ;;  %v1886_v4 = vrot.slane %v1885_v20, 2 }
 0x1f5   :  { %v4533_v50 = vpop.f32.mrf.mxu1 }
 0x1f6   :  { %4723 = vtanh.f32 %v2233_v46  ;;  %v1907_v46 = vrot.slane %v1906_v49, 2  ;;  %v1824_v50 = vadd.f32 %v1823_v26, %v1822_v60 }
 0x1f8   :  { %v1825_v39 = vrot.slane %v1824_v50, 1 }
 0x1fa   :  { %v1826_v54 = vadd.f32 %v1825_v39, %v1824_v50 }
 0x203   :  { %v5979_v45 = vpop.eup %4723 }
 0x204   :  { %v2238_v31 = vsel %vm2237_vm10, %v5979_v45, 0.0 }
 0x205   :  { %v2239_v48 = vrot.slane %v2238_v31, 4 }
 0x207   :  { %v2240_v59 = vadd.f32 %v2239_v48, %v2238_v31  ;;  %v1866_v31 = vadd.f32 %v1865_v41, %v1864_v12  ;;  %v1887_v48 = vadd.f32 %v1886_v4, %v1885_v20 }
 0x209   :  { %v2241_v34 = vrot.slane %v2240_v59, 2  ;;  %v1867_v43 = vrot.slane %v1866_v31, 1  ;;  %v1888_v30 = vrot.slane %v1887_v48, 1 }
 0x20b   :  { %v2242_v8 = vadd.f32 %v2241_v34, %v2240_v59  ;;  %v1908_v59 = vadd.f32 %v1907_v46, %v1906_v49  ;;  %v1846_v34 = vrot.slane %v1845_v29, 1  ;;  %v1868_v61 = vadd.f32 %v1867_v43, %v1866_v31 }
 0x20c   :  { %v1889_v63 = vadd.f32 %v1888_v30, %v1887_v48 }
 0x20d   :  { %v2243_v24 = vrot.slane %v2242_v8, 1  ;;  %v1909_v7 = vrot.slane %v1908_v59, 1  ;;  %v2129_v51 = vmul.f32 0.015625, %v1868_v61 }
 0x20e   :  { %v2130_v6 = vmul.f32 0.015625, %v1889_v63 }
 0x20f   :  { %v2244_v55 = vadd.f32 %v2243_v24, %v2242_v8  ;;  %v1949_v8 = vrot.slane %v1948_v18, 2  ;;  %v1929_v24 = vadd.f32 %v1928_v47, %v1927_v0 }
 0x211   :  { %v2246_v32 = vmul.f32 0.2, %v2244_v55  ;;  %v1847_v55 = vadd.f32 %v1846_v34, %v1845_v29  ;;  %v1950_v36 = vadd.f32 %v1949_v8, %v1948_v18  ;;  %v1930_v1 = vrot.slane %v1929_v24, 1 }
 0x213   :  { %4551 = vmatmul.mubr.msk.f32.vlgmr.msra.gmra.mxu1 %vm2256_vm11, %v2246_v32  ;;  %v1910_v32 = vadd.f32 %v1909_v7, %v1908_v59  ;;  %v2128_v58 = vmul.f32 0.015625, %v1847_v55  ;;  %v1951_v62 = vrot.slane %v1950_v36, 1  ;;  %v1931_v22 = vadd.f32 %v1930_v1, %v1929_v24 }
 0x214   :  { %4554 = vmatpush3.msra.mxu1 %v2334_v5  ;;  %4561 = vmatprep.mubr.msk.f32.mxu1 %vm4738_vm1, %v4737_v21  ;;  %v2127_v5 = vmul.f32 0.015625, %v1826_v54 }
 0x215   :  { %4555 = vmatprep.subr.mxu1 %v4737_v21  ;;  %v1952_v25 = vadd.f32 %v1951_v62, %v1950_v36  ;;  %v2132_v53 = vmul.f32 0.015625, %v1931_v22  ;;  %v2255_v36 = vld [vmem:[%s6532_s2 + $0xc8] sm:$0x1]  ;;  %v2584_v62 = vld [vmem:[%s6532_s2 + $0x70] sm:$0xff] }
 0x216   :  { %4556 = vmatpush3.msra.mxu1 %v2333_v3  ;;  %v2131_v3 = vmul.f32 0.015625, %v1910_v32  ;;  %v2468_v14 = vsel %vm2156_vm3, %v2128_v58, %v2127_v5  ;;  %v2585_v58 = vld [vmem:[%s6532_s2 + $0x78] sm:$0xff] }
 0x217   :  { %4557 = vmatprep.subr.mxu1 %v4737_v21  ;;  %v2469_v9 = vsel %vm2158_vm4, %v2129_v51, %v2468_v14  ;;  %v2133_v13 = vmul.f32 0.015625, %v1952_v25 }
 0x218   :  { %4558 = vmatpush3.msra.mxu1 %v2332_v27  ;;  %v2470_v27 = vsel %vm2160_vm5, %v2130_v6, %v2469_v9  ;;  %v2583_v6 = vld [vmem:[%s6532_s2 + $0x68] sm:$0xff] }
 0x219   :  { %4559 = vmatprep.subr.mxu1 %v4737_v21  ;;  %v2471_v15 = vsel %vm2162_vm6, %v2131_v3, %v2470_v27 }
 0x21a   :  { %4560 = vmatpush3.msra.mxu1 %v2331_v17  ;;  %v2473_v60 = vsel %vm2472_vm8, %v2132_v53, %v2471_v15  ;;  %v4736_v17 = vld [vmem:[%s6532_s2 + $0x28] ss:$0 sm:$0xff] }
 0x21b   :  { %4564 = vmatprep.subr.msk.mxu1 %vm1700_vm2, %v6021_v11  ;;  %v2475_v37 = vsel %vm2474_vm9, %v2133_v13, %v2473_v60  ;;  %v1227_v16 = vadd.f32 %v4736_v17, %v5883_v44  ;;  %v1222_v12 = vadd.f32 %v4736_v17, %v5885_v38  ;;  %v1232_v42 = vadd.f32 %v4736_v17, %v5893_v2 }
 0x21c   :  { %v1237_v56 = vadd.f32 %v4736_v17, %v5889_v57  ;;  %v1242_v46 = vadd.f32 %v4736_v17, %v5897_v33  ;;  %v1247_v50 = vadd.f32 %v4736_v17, %v5895_v35  ;;  %v1252_v48 = vadd.f32 %v4736_v17, %v5901_v23 }
 0x21d   :  { %v1637_v19 = vmax.f32 %v1227_v16, 0.0  ;;  %v1636_v20 = vmax.f32 %v1222_v12, 0.0  ;;  %v1638_v41 = vmax.f32 %v1232_v42, 0.0  ;;  %v1257_v59 = vadd.f32 %v4736_v17, %v5899_v10  ;;  %v2755_v17 = vld [vmem:[%s6532_s2 + $0x100] sm:$0xff]  ;;  %v2754_v12 = vld [vmem:[%s6532_s2 + $0xf8] sm:$0xff] }
 0x21e   :  { %v1639_v4 = vmax.f32 %v1237_v56, 0.0  ;;  %v1640_v29 = vmax.f32 %v1242_v46, 0.0  ;;  %v1641_v31 = vmax.f32 %v1247_v50, 0.0  ;;  %v1642_v39 = vmax.f32 %v1252_v48, 0.0  ;;  %v2876_v56 = vld [vmem:[%s6532_s2 + $0x48] sm:$0xff]  ;;  %v2835_v46 = vld [vmem:[%s6533_s1 + $0x510] sm:$0xff] }
 0x21f   :  { %v1954_v49 = vsel %vm1700_vm2, %v1637_v19, 0.0  ;;  %v1953_v26 = vsel %vm1700_vm2, %v1636_v20, 0.0  ;;  %v1956_v0 = vsel %vm1700_vm2, %v1638_v41, 0.0  ;;  %v1643_v33 = vmax.f32 %v1257_v59, 0.0  ;;  %v2875_v41 = vld [vmem:[%s6532_s2 + $0x40] sm:$0xff]  ;;  %v2838_v50 = vld [vmem:[%s6533_s1 + $0x528] sm:$0xff] }
 0x220   :  { %v1955_v52 = vadd.f32 %v1954_v49, %v1953_v26  ;;  %v1958_v38 = vsel %vm1700_vm2, %v1639_v4, 0.0  ;;  %v1960_v18 = vsel %vm1700_vm2, %v1640_v29, 0.0  ;;  %v1962_v47 = vsel %vm1700_vm2, %v1641_v31, 0.0  ;;  %v2833_v26 = vld [vmem:[%s6533_s1 + $0x500] sm:$0xff]  ;;  %v2873_v4 = vld [vmem:[%s6532_s2 + $0x30] sm:$0xff]  ;;  %v2846_v59 = vld [vmem:[%s6533_s1 + $0x568] sm:$0xff] }
 0x221   :  { %v1964_v43 = vsel %vm1700_vm2, %v1642_v39, 0.0  ;;  %v1966_v35 = vsel %vm1700_vm2, %v1643_v33, 0.0  ;;  %v2839_v29 = vld [vmem:[%s6533_s1 + $0x530] sm:$0xff]  ;;  %v2841_v31 = vld [vmem:[%s6533_s1 + $0x540] sm:$0xff] }
 0x222   :  { %v1957_v44 = vadd.f32 %v1956_v0, %v1955_v52  ;;  %v2874_v52 = vld [vmem:[%s6532_s2 + $0x38] sm:$0xff]  ;;  %v2834_v0 = vld [vmem:[%s6533_s1 + $0x508] sm:$0xff]  ;;  %v2843_v48 = vld [vmem:[%s6533_s1 + $0x550] sm:$0xff] }
 0x223   :  { %v2847_v39 = vld [vmem:[%s6533_s1 + $0x570] sm:$0xff]  ;;  %v2849_v33 = vld [vmem:[%s6533_s1 + $0x580] sm:$0xff] }
 0x224   :  { %v1959_v2 = vadd.f32 %v1958_v38, %v1957_v44  ;;  %v2836_v44 = vld [vmem:[%s6533_s1 + $0x518] sm:$0xff]  ;;  %v2837_v38 = vld [vmem:[%s6533_s1 + $0x520] sm:$0xff] }
 0x226   :  { %v1961_v57 = vadd.f32 %v1960_v18, %v1959_v2  ;;  %v2840_v2 = vld [vmem:[%s6533_s1 + $0x538] sm:$0xff]  ;;  %v2842_v18 = vld [vmem:[%s6533_s1 + $0x548] sm:$0xff] }
 0x228   :  { %v1963_v34 = vadd.f32 %v1962_v47, %v1961_v57  ;;  %v2844_v57 = vld [vmem:[%s6533_s1 + $0x558] sm:$0xff]  ;;  %v2845_v47 = vld [vmem:[%s6533_s1 + $0x560] sm:$0xff] }
 0x22a   :  { %v1965_v8 = vadd.f32 %v1964_v43, %v1963_v34  ;;  %v2848_v34 = vld [vmem:[%s6533_s1 + $0x578] sm:$0xff]  ;;  %v2850_v43 = vld [vmem:[%s6533_s1 + $0x588] sm:$0xff] }
 0x22c   :  { %v1967_v30 = vadd.f32 %v1966_v35, %v1965_v8  ;;  %v2851_v8 = vld [vmem:[%s6533_s1 + $0x590] sm:$0xff]  ;;  %v2852_v35 = vld [vmem:[%s6533_s1 + $0x598] sm:$0xff] }
 0x22e   :  { %v1968_v24 = vrot.slane %v1967_v30, 4 }
 0x230   :  { %v1969_v7 = vadd.f32 %v1968_v24, %v1967_v30  ;;  %v2853_v30 = vld [vmem:[%s6533_s1 + $0x5a0] sm:$0xff]  ;;  %v2854_v24 = vld [vmem:[%s6533_s1 + $0x5a8] sm:$0xff] }
 0x232   :  { %v1970_v54 = vrot.slane %v1969_v7, 2 }
 0x234   :  { %v1971_v55 = vadd.f32 %v1970_v54, %v1969_v7  ;;  %v2855_v7 = vld [vmem:[%s6533_s1 + $0x5b0] sm:$0xff]  ;;  %v2856_v54 = vld [vmem:[%s6533_s1 + $0x5b8] sm:$0xff] }
 0x236   :  { %v1972_v61 = vrot.slane %v1971_v55, 1 }
 0x238   :  { %v1973_v23 = vadd.f32 %v1972_v61, %v1971_v55  ;;  %v2857_v55 = vld [vmem:[%s6533_s1 + $0x5c0] sm:$0xff]  ;;  %v2858_v61 = vld [vmem:[%s6533_s1 + $0x5c8] sm:$0xff] }
 0x23a   :  { %v2134_v1 = vmul.f32 0.015625, %v1973_v23  ;;  %v2859_v23 = vld [vmem:[%s6533_s1 + $0x5d0] sm:$0xff] }
 0x23c   :  { %v2477_v51 = vsel %vm2476_vm12, %v2134_v1, %v2475_v37  ;;  %v2862_v1 = vld [vmem:[%s6533_s1 + $0x5e8] sm:$0xff] }
 0x2d3   :  { %v2326_v10 = vpop.f32.mrf.mxu1 }
 0x2d4   :  { %v2327_v63 = vadd.f32 %v2326_v10, %v2255_v36  ;;  %v2860_v36 = vld [vmem:[%s6533_s1 + $0x5d8] sm:$0xff]  ;;  %v2861_v10 = vld [vmem:[%s6533_s1 + $0x5e0] sm:$0xff] }
 0x2d5   :  { %v4552_v32 = vpop.f32.mrf.mxu1 }
 0x2d6   :  { %v2330_v5 = vmax.f32 %v2327_v63, 0.0 }
 0x2d8   :  { %4562 = vmatmul.mubr.msk.f32.vlgmr.msra.gmra.mxu1 %vm1700_vm2, %v2330_v5  ;;  %v2863_v5 = vld [vmem:[%s6533_s1 + $0x5f0] sm:$0xff] }
 0x2d9   :  { %4565 = vmatpush3.xpose.msk.msra.mxu1 %vm1700_vm2, %v6021_v11  ;;  %4566 = vmatprep.mubr.msk.f32.mxu1 %vm1700_vm2, %v2477_v51  ;;  %v2582_v11 = vld [vmem:[%s6532_s2 + $0x60] sm:$0xff] }
 0x2da   :  { %4569 = vmatprep.subr.mxu1 %v2585_v58 }
 0x2dc   :  { %4567 = vmatmul.mubr.msk.f32.vlgmr.msra.gmra.mxu1 %vm1700_vm2, %v5971_v40 }
 0x2dd   :  { %4570 = vmatpush3.msra.mxu1 %v2585_v58  ;;  %4577 = vmatprep.mubr.msk.f32.mxu1 %vm1700_vm2, %v2477_v51  ;;  %v2864_v58 = vld [vmem:[%s6533_s1 + $0x5f8] sm:$0xff]  ;;  %v2865_v51 = vld [vmem:[%s6533_s1 + $0x600] sm:$0xff] }
 0x2de   :  { %4571 = vmatprep.subr.mxu1 %v2584_v62 }
 0x2df   :  { %4572 = vmatpush3.msra.mxu1 %v2584_v62  ;;  %v2866_v62 = vld [vmem:[%s6533_s1 + $0x608] sm:$0xff] }
 0x2e0   :  { %4573 = vmatprep.subr.mxu1 %v2583_v6 }
 0x2e1   :  { %4574 = vmatpush3.msra.mxu1 %v2583_v6  ;;  %v2867_v6 = vld [vmem:[%s6533_s1 + $0x610] sm:$0xff] }
 0x2e2   :  { %4575 = vmatprep.subr.mxu1 %v2582_v11 }
 0x2e3   :  { %4576 = vmatpush3.msra.mxu1 %v2582_v11  ;;  %v2868_v11 = vld [vmem:[%s6533_s1 + $0x618] sm:$0xff] }
 0x2e4   :  { %4578 = vmatmul.mubr.msk.f32.vlgmr.msra.gmra.mxu1 %vm1700_vm2, %v5971_v40  ;;  %4580 = vmatprep.subr.msk.mxu1 %vm2256_vm11, %v5979_v45  ;;  %v2335_v40 = vld [vmem:[%s6532_s2 + $0xf0] sm:$0x1] }
 0x2e5   :  { %4581 = vmatpush3.xpose.msk.msra.mxu1 %vm2256_vm11, %v5979_v45 }
 0x2e6   :  { %4585 = vmatprep.subr.mxu1 %v4737_v21 }
 0x398   :  { %v2405_v45 = vpop.f32.mrf.mxu1 }
 0x399   :  { %v2406_v22 = vadd.f32 %v2405_v45, %v2335_v40  ;;  %v2869_v40 = vld [vmem:[%s6533_s1 + $0x620] sm:$0xff]  ;;  %v2870_v45 = vld [vmem:[%s6533_s1 + $0x628] sm:$0xff] }
 0x39a   :  { %v4563_v3 = vpop.f32.mrf.mxu1 }
 0x39b   :  { %v2409_v14 = vmul.f32 %v2406_v22, %v2406_v22  ;;  %v2872_v3 = vld [vmem:[%s6533_s1 + $0x638] sm:$0xff] }
 0x39c   :  { %v4568_v25 = vpop.f32.mrf.mxu1 }
 0x39d   :  { %2581 = vst.msk [vmem:[%s6534_s4 + $0x8] sm:$0x7f] %vm2580_vm13, %v4568_v25  ;;  %v2411_v9 = vsel %vm2410_vm14, %v2409_v14, 0.0  ;;  %v3421_v14 = vld [vmem:[%s6532_s2 + $0x128] sm:$0xff]  ;;  %v3420_v25 = vld [vmem:[%s6532_s2 + $0x120] sm:$0xff] }
 0x39e   :  { %2412 = vadd.xlane.f32.xlu0 %v2411_v9  ;;  %v2569_v53 = vpop.f32.mrf.mxu1  ;;  %v3419_v9 = vld [vmem:[%s6532_s2 + $0x118] sm:$0xff] }
 0x39f   :  { %2579 = vst.msk [vmem:[%s6534_s4] sm:$0xff] %vm2578_vm15, %v2569_v53  ;;  %v3418_v53 = vld [vmem:[%s6532_s2 + $0x110] sm:$0xff] }
 0x3a4   :  { %v4579_v27 = vpop.f32.mrf.mxu1 }
 0x3a5   :  { %v2663_v13 = vadd.f32 %v4579_v27, %v5976_v28  ;;  %v2756_v27 = vld [vmem:[%s6532_s2 + $0x108] sm:$0x1] }
 0x3a6   :  { %v2657_v15 = vpop.f32.mrf.mxu1 }
 0x3a7   :  { %v2658_v60 = vadd.f32 %v5976_v28, %v2657_v15  ;;  %v2877_v28 = vld [vmem:[%s6532_s2 + $0x50] sm:$0xff] }
 0x3a9   :  { %4725 = vtanh.f32 %v2658_v60 }
 0x3aa   :  { %4727 = vtanh.f32 %v2663_v13 }
 0x3b6   :  { %v4726_v37 = vpop.eup %4725 }
 0x3b7   :  { %v4728_v16 = vpop.eup %4727  ;;  %4582 = vmatprep.mubr.msk.f32.mxu1 %vm2256_vm11, %v4726_v37  ;;  %v6346_v37 = vld [vmem:[%s6532_s2 + $0x58] ss:$0 sm:$0xff] }
 0x3b8   :  { %4583 = vmatmul.mubr.msk.f32.vlgmr.msra.gmra.mxu1 %vm2256_vm11, %v4728_v16 }
 0x3b9   :  { %4586 = vmatpush3.msra.mxu1 %v2755_v17  ;;  %4589 = vmatprep.mubr.msk.f32.mxu1 %vm4738_vm1, %v4737_v21 }
 0x3ba   :  { %4587 = vmatprep.subr.mxu1 %v4737_v21 }
 0x3bb   :  { %4588 = vmatpush3.msra.mxu1 %v2754_v12 }
 0x3bc   :  { %4592 = vmatprep.subr.mxu1 %v2877_v28 }
 0x427   :  { %v2413_v19 = vpop.xlane.xlu0 %2412 }
 0x428   :  { %v2414_v20 = vmax.f32 %v2413_v19, 1e-24 }
 0x42a   :  { %4729 = vrsqrt.f32 %v2414_v20 }
 0x437   :  { %v4730_v42 = vpop.eup %4729 }
 0x438   :  { %v6134_v49 = vmul.f32 %v4730_v42, %v2406_v22  ;;  %v2871_v22 = vld [vmem:[%s6533_s1 + $0x630] sm:$0xff] }
 0x43a   :  { %4590 = vmatmul.mubr.msk.f32.vlgmr.msra.gmra.mxu1 %vm2757_vm7, %v6134_v49 }
 0x43b   :  { %4593 = vmatpush3.msra.mxu1 %v2877_v28  ;;  %4602 = vmatprep.mubr.msk.f32.mxu1 %vm194_vm0, %v2833_v26 }
 0x43c   :  { %4594 = vmatprep.subr.mxu1 %v2876_v56 }
 0x43d   :  { %4595 = vmatpush3.msra.mxu1 %v2876_v56 }
 0x43e   :  { %4596 = vmatprep.subr.mxu1 %v2875_v41 }
 0x43f   :  { %4597 = vmatpush3.msra.mxu1 %v2875_v41 }
 0x440   :  { %4598 = vmatprep.subr.mxu1 %v2874_v52 }
 0x441   :  { %4599 = vmatpush3.msra.mxu1 %v2874_v52 }
 0x442   :  { %4600 = vmatprep.subr.mxu1 %v2873_v4 }
 0x443   :  { %4601 = vmatpush3.msra.mxu1 %v2873_v4 }
 0x444   :  { %4603 = vmatmul.mubr.msk.f32.vlgmr.msra.gmra.mxu1 %vm194_vm0, %v2834_v0  ;;  %4662 = vmatprep.subr.mxu1 %v4737_v21 }
 0x445   :  { %4605 = vmatprep.mubr.msk.f32.mxu1 %vm194_vm0, %v2835_v46  ;;  %4663 = vmatpush3.msra.mxu1 %v3421_v14 }
 0x446   :  { %4664 = vmatprep.subr.mxu1 %v4737_v21 }
 0x447   :  { %4665 = vmatpush3.msra.mxu1 %v3420_v25 }
 0x448   :  { %4606 = vmatmul.mubr.msk.f32.gmra.mxu1 %vm194_vm0, %v2836_v44  ;;  %4666 = vmatprep.subr.mxu1 %v4737_v21 }
 0x449   :  { %4608 = vmatprep.mubr.msk.f32.mxu1 %vm194_vm0, %v2837_v38  ;;  %4667 = vmatpush3.msra.mxu1 %v3419_v9 }
 0x44a   :  { %4668 = vmatprep.subr.mxu1 %v4737_v21 }
 0x44b   :  { %4669 = vmatpush3.msra.mxu1 %v3418_v53 }
 0x44c   :  { %4609 = vmatmul.mubr.msk.f32.gmra.mxu1 %vm194_vm0, %v2838_v50  ;;  %4673 = vmatprep.subr.mxu1 %v4737_v21 }
 0x44d   :  { %4611 = vmatprep.mubr.msk.f32.mxu1 %vm194_vm0, %v2839_v29 }
 0x450   :  { %4612 = vmatmul.mubr.msk.f32.gmra.mxu1 %vm194_vm0, %v2840_v2 }
 0x451   :  { %4614 = vmatprep.mubr.msk.f32.mxu1 %vm194_vm0, %v2841_v31 }
 0x454   :  { %4615 = vmatmul.mubr.msk.f32.gmra.mxu1 %vm194_vm0, %v2842_v18 }
 0x455   :  { %4617 = vmatprep.mubr.msk.f32.mxu1 %vm194_vm0, %v2843_v48 }
 0x458   :  { %4618 = vmatmul.mubr.msk.f32.gmra.mxu1 %vm194_vm0, %v2844_v57 }
 0x459   :  { %4620 = vmatprep.mubr.msk.f32.mxu1 %vm194_vm0, %v2845_v47 }
 0x45c   :  { %4621 = vmatmul.mubr.msk.f32.gmra.mxu1 %vm194_vm0, %v2846_v59 }
 0x45d   :  { %4623 = vmatprep.mubr.msk.f32.mxu1 %vm194_vm0, %v2847_v39 }
 0x460   :  { %4624 = vmatmul.mubr.msk.f32.gmra.mxu1 %vm194_vm0, %v2848_v34 }
 0x461   :  { %4626 = vmatprep.mubr.msk.f32.mxu1 %vm194_vm0, %v2849_v33 }
 0x464   :  { %4627 = vmatmul.mubr.msk.f32.gmra.mxu1 %vm194_vm0, %v2850_v43 }
 0x465   :  { %4629 = vmatprep.mubr.msk.f32.mxu1 %vm194_vm0, %v2851_v8 }
 0x468   :  { %4630 = vmatmul.mubr.msk.f32.gmra.mxu1 %vm194_vm0, %v2852_v35 }
 0x469   :  { %4632 = vmatprep.mubr.msk.f32.mxu1 %vm194_vm0, %v2853_v30 }
 0x46c   :  { %4633 = vmatmul.mubr.msk.f32.gmra.mxu1 %vm194_vm0, %v2854_v24 }
 0x46d   :  { %4635 = vmatprep.mubr.msk.f32.mxu1 %vm194_vm0, %v2855_v7 }
 0x470   :  { %4636 = vmatmul.mubr.msk.f32.gmra.mxu1 %vm194_vm0, %v2856_v54 }
 0x471   :  { %4638 = vmatprep.mubr.msk.f32.mxu1 %vm194_vm0, %v2857_v55 }
 0x474   :  { %4639 = vmatmul.mubr.msk.f32.gmra.mxu1 %vm194_vm0, %v2858_v61 }
 0x475   :  { %4641 = vmatprep.mubr.msk.f32.mxu1 %vm194_vm0, %v2859_v23 }
 0x478   :  { %v4584_v63 = vpop.f32.mrf.mxu1  ;;  %4642 = vmatmul.mubr.msk.f32.gmra.mxu1 %vm194_vm0, %v2860_v36 }
 0x479   :  { %2753 = vst.msk [vmem:[%s6534_s4 + $0x18] sm:$0x7f] %vm2580_vm13, %v4584_v63  ;;  %4644 = vmatprep.mubr.msk.f32.mxu1 %vm194_vm0, %v2861_v10 }
 0x47a   :  { %v2743_v32 = vpop.f32.mrf.mxu1 }
 0x47b   :  { %2752 = vst.msk [vmem:[%s6534_s4 + $0x10] sm:$0xff] %vm2578_vm15, %v2743_v32 }
 0x47c   :  { %4645 = vmatmul.mubr.msk.f32.gmra.mxu1 %vm194_vm0, %v2862_v1 }
 0x47d   :  { %4647 = vmatprep.mubr.msk.f32.mxu1 %vm194_vm0, %v2863_v5 }
 0x480   :  { %4648 = vmatmul.mubr.msk.f32.gmra.mxu1 %vm194_vm0, %v2864_v58 }
 0x481   :  { %4650 = vmatprep.mubr.msk.f32.mxu1 %vm194_vm0, %v2865_v51 }
 0x484   :  { %4651 = vmatmul.mubr.msk.f32.gmra.mxu1 %vm194_vm0, %v2866_v62 }
 0x485   :  { %4653 = vmatprep.mubr.msk.f32.mxu1 %vm194_vm0, %v2867_v6 }
 0x488   :  { %4654 = vmatmul.mubr.msk.f32.gmra.mxu1 %vm194_vm0, %v2868_v11 }
 0x489   :  { %4656 = vmatprep.mubr.msk.f32.mxu1 %vm194_vm0, %v2869_v40 }
 0x48c   :  { %4657 = vmatmul.mubr.msk.f32.gmra.mxu1 %vm194_vm0, %v2870_v45 }
 0x48d   :  { %4659 = vmatprep.mubr.msk.f32.mxu1 %vm194_vm0, %v2871_v22 }
 0x490   :  { %4660 = vmatmul.mubr.msk.f32.gmra.mxu1 %vm194_vm0, %v2872_v3  ;;  %vm2831_vm0 = vcmask 73728  }
 0x491   :  { %4670 = vmatprep.mubr.msk.f32.mxu1 %vm4738_vm1, %v4737_v21 }
 0x4fa   :  { %v2827_v13 = vpop.f32.mrf.mxu1 }
 0x4fb   :  { %v2828_v15 = vadd.f32 %v2827_v13, %v2756_v27 }
 0x4fc   :  { %v4591_v60 = vpop.f32.mrf.mxu1 }
 0x4fd   :  { %2832 = vst.msk [vmem:[%s6534_s4 + $0x20] sm:$0x1] %vm2831_vm0, %v2828_v15 }
 0x504   :  { %v4604_v17 = vpop.f32.mrf.mxu1 }
 0x505   :  { %v3075_v16 = vadd.f32 %v4604_v17, %v6346_v37 }
 0x506   :  { %v3069_v12 = vpop.f32.mrf.mxu1 }
 0x507   :  { %v3070_v28 = vadd.f32 %v6346_v37, %v3069_v12  ;;  %v3269_v20 = vmax.f32 %v3075_v16, 0.0 }
 0x508   :  { %v4607_v19 = vpop.f32.mrf.mxu1 }
 0x509   :  { %v3268_v42 = vmax.f32 %v3070_v28, 0.0  ;;  %v3085_v26 = vadd.f32 %v4607_v19, %v6346_v37  ;;  %v3309_v0 = vsel %vm1700_vm2, %v3269_v20, 0.0 }
 0x50a   :  { %v3079_v56 = vpop.f32.mrf.mxu1 }
 0x50b   :  { %v3308_v41 = vsel %vm1700_vm2, %v3268_v42, 0.0  ;;  %v3080_v52 = vadd.f32 %v6346_v37, %v3079_v56  ;;  %v3271_v46 = vmax.f32 %v3085_v26, 0.0 }
 0x50c   :  { %v4610_v4 = vpop.f32.mrf.mxu1  ;;  %v3310_v50 = vadd.f32 %v3309_v0, %v3308_v41 }
 0x50d   :  { %v3270_v44 = vmax.f32 %v3080_v52, 0.0  ;;  %v3095_v38 = vadd.f32 %v4610_v4, %v6346_v37  ;;  %v3313_v57 = vsel %vm1700_vm2, %v3271_v46, 0.0 }
 0x50e   :  { %v3089_v29 = vpop.f32.mrf.mxu1 }
 0x50f   :  { %v3311_v2 = vsel %vm1700_vm2, %v3270_v44, 0.0  ;;  %v3090_v31 = vadd.f32 %v6346_v37, %v3089_v29  ;;  %v3273_v47 = vmax.f32 %v3095_v38, 0.0 }
 0x510   :  { %v3312_v18 = vadd.f32 %v3311_v2, %v3310_v50  ;;  %v4613_v48 = vpop.f32.mrf.mxu1 }
 0x511   :  { %v3272_v59 = vmax.f32 %v3090_v31, 0.0  ;;  %v3105_v39 = vadd.f32 %v4613_v48, %v6346_v37  ;;  %v3317_v24 = vsel %vm1700_vm2, %v3273_v47, 0.0 }
 0x512   :  { %v3314_v34 = vadd.f32 %v3313_v57, %v3312_v18  ;;  %v3099_v33 = vpop.f32.mrf.mxu1 }
 0x513   :  { %v3315_v43 = vsel %vm1700_vm2, %v3272_v59, 0.0  ;;  %v3100_v8 = vadd.f32 %v6346_v37, %v3099_v33  ;;  %v3275_v7 = vmax.f32 %v3105_v39, 0.0 }
 0x514   :  { %v3316_v35 = vadd.f32 %v3315_v43, %v3314_v34  ;;  %v4616_v30 = vpop.f32.mrf.mxu1 }
 0x515   :  { %v3274_v54 = vmax.f32 %v3100_v8, 0.0  ;;  %v3321_v63 = vsel %vm1700_vm2, %v3275_v7, 0.0  ;;  %v3115_v40 = vadd.f32 %v4616_v30, %v6346_v37 }
 0x516   :  { %v3318_v55 = vadd.f32 %v3317_v24, %v3316_v35  ;;  %v3109_v61 = vpop.f32.mrf.mxu1 }
 0x517   :  { %v3319_v23 = vsel %vm1700_vm2, %v3274_v54, 0.0  ;;  %v3110_v11 = vadd.f32 %v6346_v37, %v3109_v61  ;;  %v3277_v53 = vmax.f32 %v3115_v40, 0.0 }
 0x518   :  { %v3320_v36 = vadd.f32 %v3319_v23, %v3318_v55  ;;  %v4619_v10 = vpop.f32.mrf.mxu1 }
 0x519   :  { %v3276_v25 = vmax.f32 %v3110_v11, 0.0  ;;  %v3125_v12 = vadd.f32 %v4619_v10, %v6346_v37  ;;  %v3330_v20 = vsel %vm1700_vm2, %v3277_v53, 0.0 }
 0x51a   :  { %v6364_v1 = vadd.f32 %v3321_v63, %v3320_v36  ;;  %v3119_v32 = vpop.f32.mrf.mxu1 }
 0x51b   :  { %v3120_v22 = vadd.f32 %v6346_v37, %v3119_v32  ;;  %v3329_v16 = vsel %vm1700_vm2, %v3276_v25, 0.0  ;;  %v3279_v46 = vmax.f32 %v3125_v12, 0.0 }
 0x51c   :  { %v4622_v5 = vpop.f32.mrf.mxu1  ;;  %v3331_v4 = vadd.f32 %v3330_v20, %v3329_v16 }
 0x51d   :  { %v3278_v13 = vmax.f32 %v3120_v22, 0.0  ;;  %v3135_v57 = vadd.f32 %v4622_v5, %v6346_v37  ;;  %v3334_v39 = vsel %vm1700_vm2, %v3279_v46, 0.0 }
 0x51e   :  { %v3129_v58 = vpop.f32.mrf.mxu1 }
 0x51f   :  { %v3332_v26 = vsel %vm1700_vm2, %v3278_v13, 0.0  ;;  %v3130_v56 = vadd.f32 %v6346_v37, %v3129_v58  ;;  %v3281_v54 = vmax.f32 %v3135_v57, 0.0 }
 0x520   :  { %v6366_v51 = vpop.f32.mrf.mxu1  ;;  %v3333_v29 = vadd.f32 %v3332_v26, %v3331_v4 }
 0x521   :  { %v3280_v18 = vmax.f32 %v3130_v56, 0.0  ;;  %v3338_v22 = vsel %vm1700_vm2, %v3281_v54, 0.0 }
 0x522   :  { %v3139_v62 = vpop.f32.mrf.mxu1  ;;  %v3335_v43 = vadd.f32 %v3334_v39, %v3333_v29 }
 0x523   :  { %v3336_v35 = vsel %vm1700_vm2, %v3280_v18, 0.0  ;;  %v3140_v55 = vadd.f32 %v6346_v37, %v3139_v62 }
 0x524   :  { %v4628_v6 = vpop.f32.mrf.mxu1  ;;  %v3337_v58 = vadd.f32 %v3336_v35, %v3335_v43 }
 0x525   :  { %v3155_v9 = vadd.f32 %v4628_v6, %v6346_v37  ;;  %v3282_v62 = vmax.f32 %v3140_v55, 0.0 }
 0x526   :  { %v3149_v45 = vpop.f32.mrf.mxu1 }
 0x527   :  { %v3150_v3 = vadd.f32 %v6346_v37, %v3149_v45  ;;  %v3285_v28 = vmax.f32 %v3155_v9, 0.0 }
 0x528   :  { %v4631_v14 = vpop.f32.mrf.mxu1 }
 0x529   :  { %v3284_v15 = vmax.f32 %v3150_v3, 0.0  ;;  %v3165_v52 = vadd.f32 %v4631_v14, %v6346_v37  ;;  %v3351_v44 = vsel %vm1700_vm2, %v3285_v28, 0.0 }
 0x52a   :  { %v3159_v27 = vpop.f32.mrf.mxu1 }
 0x52b   :  { %v3160_v60 = vadd.f32 %v6346_v37, %v3159_v27  ;;  %v3350_v41 = vsel %vm1700_vm2, %v3284_v15, 0.0  ;;  %v3287_v48 = vmax.f32 %v3165_v52, 0.0  ;;  %v3145_v15 = vadd.f32 %v6366_v51, %v6346_v37 }
 0x52c   :  { %v4634_v17 = vpop.f32.mrf.mxu1  ;;  %v3352_v2 = vadd.f32 %v3351_v44, %v3350_v41 }
 0x52d   :  { %v3286_v19 = vmax.f32 %v3160_v60, 0.0  ;;  %v3355_v30 = vsel %vm1700_vm2, %v3287_v48, 0.0  ;;  %v3175_v24 = vadd.f32 %v4634_v17, %v6346_v37  ;;  %v3339_v60 = vadd.f32 %v3338_v22, %v3337_v58 }
 0x52e   :  { %v3169_v42 = vpop.f32.mrf.mxu1 }
 0x52f   :  { %v3353_v38 = vsel %vm1700_vm2, %v3286_v19, 0.0  ;;  %v3170_v50 = vadd.f32 %v6346_v37, %v3169_v42  ;;  %v3289_v11 = vmax.f32 %v3175_v24, 0.0  ;;  %v3340_v42 = vsel %vm1700_vm2, %v3282_v62, 0.0 }
 0x530   :  { %v4637_v0 = vpop.f32.mrf.mxu1  ;;  %v3354_v47 = vadd.f32 %v3353_v38, %v3352_v2  ;;  %v3283_v38 = vmax.f32 %v3145_v15, 0.0  ;;  %v3341_v29 = vadd.f32 %v3340_v42, %v3339_v60 }
 0x531   :  { %v3288_v34 = vmax.f32 %v3170_v50, 0.0  ;;  %v3359_v12 = vsel %vm1700_vm2, %v3289_v11, 0.0  ;;  %v3185_v28 = vadd.f32 %v4637_v0, %v6346_v37 }
 0x532   :  { %v3179_v31 = vpop.f32.mrf.mxu1  ;;  %v3356_v61 = vadd.f32 %v3355_v30, %v3354_v47  ;;  %v3342_v43 = vsel %vm1700_vm2, %v3283_v38, 0.0 }
 0x533   :  { %v3180_v23 = vadd.f32 %v6346_v37, %v3179_v31  ;;  %v3357_v10 = vsel %vm1700_vm2, %v3288_v34, 0.0  ;;  %v3291_v2 = vmax.f32 %v3185_v28, 0.0  ;;  %v3343_v30 = vadd.f32 %v3342_v43, %v3341_v29 }
 0x534   :  { %v4640_v59 = vpop.f32.mrf.mxu1  ;;  %v3358_v3 = vadd.f32 %v3357_v10, %v3356_v61 }
 0x535   :  { %v3195_v33 = vadd.f32 %v4640_v59, %v6346_v37  ;;  %v3290_v14 = vmax.f32 %v3180_v23, 0.0  ;;  %v3363_v24 = vsel %vm1700_vm2, %v3291_v2, 0.0 }
 0x536   :  { %v3189_v8 = vpop.f32.mrf.mxu1  ;;  %v3360_v26 = vadd.f32 %v3359_v12, %v3358_v3 }
 0x537   :  { %v3190_v7 = vadd.f32 %v6346_v37, %v3189_v8  ;;  %v3293_v63 = vmax.f32 %v3195_v33, 0.0  ;;  %v3361_v56 = vsel %vm1700_vm2, %v3290_v14, 0.0 }
 0x538   :  { %v4643_v36 = vpop.f32.mrf.mxu1  ;;  %v3362_v48 = vadd.f32 %v3361_v56, %v3360_v26 }
 0x539   :  { %v3292_v32 = vmax.f32 %v3190_v7, 0.0  ;;  %v3205_v5 = vadd.f32 %v4643_v36, %v6346_v37  ;;  %v3372_v9 = vsel %vm1700_vm2, %v3293_v63, 0.0 }
 0x53a   :  { %v3199_v6 = vpop.f32.mrf.mxu1  ;;  %v3364_v55 = vadd.f32 %v3363_v24, %v3362_v48 }
 0x53b   :  { %v3371_v40 = vsel %vm1700_vm2, %v3292_v32, 0.0  ;;  %v3200_v45 = vadd.f32 %v6346_v37, %v3199_v6  ;;  %v3295_v53 = vmax.f32 %v3205_v5, 0.0  ;;  %v3344_v6 = vrot.slane %v3343_v30, 4 }
 0x53c   :  { %v4646_v25 = vpop.f32.mrf.mxu1  ;;  %v3373_v17 = vadd.f32 %v3372_v9, %v3371_v40  ;;  %v3365_v22 = vrot.slane %v3364_v55, 4 }
 0x53d   :  { %v3294_v27 = vmax.f32 %v3200_v45, 0.0  ;;  %v3215_v13 = vadd.f32 %v4646_v25, %v6346_v37  ;;  %v3376_v51 = vsel %vm1700_vm2, %v3295_v53, 0.0  ;;  %v3323_v45 = vrot.slane %v6364_v1, 4 }
 0x53e   :  { %v3209_v16 = vpop.f32.mrf.mxu1  ;;  %v3345_v15 = vadd.f32 %v3344_v6, %v3343_v30  ;;  %v3366_v12 = vadd.f32 %v3365_v22, %v3364_v55 }
 0x53f   :  { %v3374_v19 = vsel %vm1700_vm2, %v3294_v27, 0.0  ;;  %v3210_v20 = vadd.f32 %v6346_v37, %v3209_v16  ;;  %v3297_v4 = vmax.f32 %v3215_v13, 0.0  ;;  %v3324_v16 = vadd.f32 %v3323_v45, %v6364_v1 }
 0x540   :  { %v3375_v41 = vadd.f32 %v3374_v19, %v3373_v17  ;;  %v4649_v52 = vpop.f32.mrf.mxu1 }
 0x541   :  { %v3296_v46 = vmax.f32 %v3210_v20, 0.0  ;;  %v3225_v44 = vadd.f32 %v4649_v52, %v6346_v37  ;;  %v3380_v59 = vsel %vm1700_vm2, %v3297_v4, 0.0  ;;  %v3346_v4 = vrot.slane %v3345_v15, 2 }
 0x542   :  { %v3377_v50 = vadd.f32 %v3376_v51, %v3375_v41  ;;  %v3219_v0 = vpop.f32.mrf.mxu1  ;;  %v3325_v38 = vrot.slane %v3324_v16, 2 }
 0x543   :  { %v3378_v31 = vsel %vm1700_vm2, %v3296_v46, 0.0  ;;  %v3220_v18 = vadd.f32 %v6346_v37, %v3219_v0  ;;  %v3299_v39 = vmax.f32 %v3225_v44, 0.0  ;;  %v3347_v48 = vadd.f32 %v3346_v4, %v3345_v15  ;;  %v3518_v15 = vld [vmem:[%s6532_s2 + $0x140] sm:$0xff] }
 0x544   :  { %v3379_v57 = vadd.f32 %v3378_v31, %v3377_v50  ;;  %v4652_v47 = vpop.f32.mrf.mxu1  ;;  %v3367_v50 = vrot.slane %v3366_v12, 2 }
 0x545   :  { %v3298_v34 = vmax.f32 %v3220_v18, 0.0  ;;  %v3235_v33 = vadd.f32 %v4652_v47, %v6346_v37  ;;  %v3384_v36 = vsel %vm1700_vm2, %v3299_v39, 0.0  ;;  %v3326_v39 = vadd.f32 %v3325_v38, %v3324_v16  ;;  %v3601_v38 = vld [vmem:[%s6532_s2 + $0x188] sm:$0xff] }
 0x546   :  { %v3381_v8 = vadd.f32 %v3380_v59, %v3379_v57  ;;  %v3229_v35 = vpop.f32.mrf.mxu1  ;;  %v3368_v47 = vadd.f32 %v3367_v50, %v3366_v12  ;;  %v3600_v50 = vld [vmem:[%s6532_s2 + $0x180] sm:$0xff] }
 0x547   :  { %v3382_v7 = vsel %vm1700_vm2, %v3298_v34, 0.0  ;;  %v3230_v54 = vadd.f32 %v6346_v37, %v3229_v35  ;;  %v3301_v10 = vmax.f32 %v3235_v33, 0.0  ;;  %v3327_v30 = vrot.slane %v3326_v39, 1 }
 0x548   :  { %v3383_v61 = vadd.f32 %v3382_v7, %v3381_v8  ;;  %v4655_v23 = vpop.f32.mrf.mxu1  ;;  %v3369_v8 = vrot.slane %v3368_v47, 1 }
 0x549   :  { %v3300_v63 = vmax.f32 %v3230_v54, 0.0  ;;  %v3245_v32 = vadd.f32 %v4655_v23, %v6346_v37  ;;  %v3393_v25 = vsel %vm1700_vm2, %v3301_v10, 0.0  ;;  %v3328_v23 = vadd.f32 %v3327_v30, %v3326_v39 }
 0x54a   :  { %v3385_v5 = vadd.f32 %v3384_v36, %v3383_v61  ;;  %v3239_v58 = vpop.f32.mrf.mxu1  ;;  %v3370_v55 = vadd.f32 %v3369_v8, %v3368_v47 }
 0x54b   :  { %v3392_v11 = vsel %vm1700_vm2, %v3300_v63, 0.0  ;;  %v3240_v40 = vadd.f32 %v6346_v37, %v3239_v58  ;;  %v3303_v62 = vmax.f32 %v3245_v32, 0.0  ;;  %v3413_v58 = vmul.f32 0.015625, %v3328_v23 }
 0x54c   :  { %v4658_v3 = vpop.f32.mrf.mxu1  ;;  %v3386_v14 = vrot.slane %v3385_v5, 4  ;;  %v3394_v27 = vadd.f32 %v3393_v25, %v3392_v11  ;;  %v3415_v32 = vmul.f32 0.015625, %v3370_v55  ;;  %v3523_v25 = vld [vmem:[%s6532_s2 + $0x168] sm:$0xff] }
 0x54d   :  { %v3302_v9 = vmax.f32 %v3240_v40, 0.0  ;;  %v3255_v53 = vadd.f32 %v4658_v3, %v6346_v37  ;;  %v3397_v28 = vsel %vm1700_vm2, %v3303_v62, 0.0 }
 0x54e   :  { %v3249_v13 = vpop.f32.mrf.mxu1  ;;  %v3387_v42 = vadd.f32 %v3386_v14, %v3385_v5  ;;  %v3524_v14 = vld [vmem:[%s6532_s2 + $0x170] sm:$0xff] }
 0x54f   :  { %v3395_v60 = vsel %vm1700_vm2, %v3302_v9, 0.0  ;;  %v3250_v17 = vadd.f32 %v6346_v37, %v3249_v13  ;;  %v3305_v26 = vmax.f32 %v3255_v53, 0.0  ;;  %v3522_v9 = vld [vmem:[%s6532_s2 + $0x160] sm:$0xff]  ;;  %v3521_v53 = vld [vmem:[%s6532_s2 + $0x158] sm:$0xff]  ;;  %v3519_v13 = vld [vmem:[%s6532_s2 + $0x148] sm:$0xff] }
 0x550   :  { %v3396_v19 = vadd.f32 %v3395_v60, %v3394_v27  ;;  %v4661_v20 = vpop.f32.mrf.mxu1  ;;  %v3388_v0 = vrot.slane %v3387_v42, 2  ;;  %v3520_v27 = vld [vmem:[%s6532_s2 + $0x150] sm:$0xff]  ;;  %v3517_v60 = vld [vmem:[%s6532_s2 + $0x138] sm:$0xff] }
 0x551   :  { %v3304_v56 = vmax.f32 %v3250_v17, 0.0  ;;  %v3265_v41 = vadd.f32 %v4661_v20, %v6346_v37  ;;  %v3401_v29 = vsel %vm1700_vm2, %v3305_v26, 0.0  ;;  %v4001_v17 = vld [vmem:[%s6532_s2 + $0x130] ss:$0 sm:$0xff] }
 0x552   :  { %v3398_v52 = vadd.f32 %v3397_v28, %v3396_v19  ;;  %v3259_v51 = vpop.f32.mrf.mxu1  ;;  %v3389_v34 = vadd.f32 %v3388_v0, %v3387_v42  ;;  %v3525_v0 = vld [vmem:[%s6532_s2 + $0x178] sm:$0x1] }
 0x553   :  { %v3399_v46 = vsel %vm1700_vm2, %v3304_v56, 0.0  ;;  %v3260_v44 = vadd.f32 %v6346_v37, %v3259_v51  ;;  %v3307_v2 = vmax.f32 %v3265_v41, 0.0  ;;  %v3348_v37 = vrot.slane %v3347_v48, 1 }
 0x554   :  { %v3400_v1 = vadd.f32 %v3399_v46, %v3398_v52  ;;  %v3390_v24 = vrot.slane %v3389_v34, 1  ;;  %v3603_v46 = vld [vmem:[%s6532_s2 + $0x198] sm:$0xff] }
 0x555   :  { %v3306_v31 = vmax.f32 %v3260_v44, 0.0  ;;  %v3405_v33 = vsel %vm1700_vm2, %v3307_v2, 0.0  ;;  %v3349_v54 = vadd.f32 %v3348_v37, %v3347_v48  ;;  %v3602_v44 = vld [vmem:[%s6532_s2 + $0x190] sm:$0xff]  ;;  %v3604_v48 = vld [vmem:[%s6532_s2 + $0x1a0] sm:$0x1] }
 0x556   :  { %v3402_v18 = vadd.f32 %v3401_v29, %v3400_v1  ;;  %v3391_v36 = vadd.f32 %v3390_v24, %v3389_v34  ;;  %v3692_v1 = vld [vmem:[%s6535_s3] sm:$0xff] }
 0x557   :  { %v3403_v57 = vsel %vm1700_vm2, %v3306_v31, 0.0  ;;  %v3414_v63 = vmul.f32 0.015625, %v3349_v54  ;;  %3774 = vst.msk [vmem:[%s6534_s4 + $0x28] sm:$0xff] %vm2757_vm7, %v3692_v1 }
 0x558   :  { %v3404_v59 = vadd.f32 %v3403_v57, %v3402_v18  ;;  %v3416_v6 = vmul.f32 0.015625, %v3391_v36 }
 0x559   :  { %v3432_v40 = vsel %vm2156_vm3, %v3414_v63, %v3413_v58 }
 0x55a   :  { %v3406_v43 = vadd.f32 %v3405_v33, %v3404_v59  ;;  %v3433_v22 = vsel %vm2158_vm4, %v3415_v32, %v3432_v40 }
 0x55b   :  { %v3434_v62 = vsel %vm2160_vm5, %v3416_v6, %v3433_v22 }
 0x55c   :  { %v3407_v35 = vrot.slane %v3406_v43, 4 }
 0x55e   :  { %v3408_v7 = vadd.f32 %v3407_v35, %v3406_v43 }
 0x560   :  { %v3409_v61 = vrot.slane %v3408_v7, 2 }
 0x562   :  { %v3410_v10 = vadd.f32 %v3409_v61, %v3408_v7 }
 0x564   :  { %v3411_v5 = vrot.slane %v3410_v10, 1 }
 0x566   :  { %v3412_v11 = vadd.f32 %v3411_v5, %v3410_v10 }
 0x568   :  { %v3417_v45 = vmul.f32 0.015625, %v3412_v11 }
 0x56a   :  { %v3435_v3 = vsel %vm2162_vm6, %v3417_v45, %v3434_v62 }
 0x56b   :  { %4671 = vmatmul.mubr.msk.f32.vlgmr.msra.gmra.mxu1 %vm1700_vm2, %v3435_v3 }
 0x56c   :  { %4689 = vmatprep.mubr.msk.f32.mxu1 %vm4738_vm1, %v4737_v21  ;;  %4674 = vmatpush3.msra.mxu1 %v3524_v14 }
 0x56d   :  { %4675 = vmatprep.subr.mxu1 %v4737_v21 }
 0x56e   :  { %4676 = vmatpush3.msra.mxu1 %v3523_v25 }
 0x56f   :  { %4677 = vmatprep.subr.mxu1 %v4737_v21 }
 0x570   :  { %4678 = vmatpush3.msra.mxu1 %v3522_v9 }
 0x571   :  { %4679 = vmatprep.subr.mxu1 %v4737_v21 }
 0x572   :  { %4680 = vmatpush3.msra.mxu1 %v3521_v53 }
 0x573   :  { %4681 = vmatprep.subr.mxu1 %v4737_v21 }
 0x574   :  { %4682 = vmatpush3.msra.mxu1 %v3520_v27 }
 0x575   :  { %4683 = vmatprep.subr.mxu1 %v4737_v21 }
 0x576   :  { %4684 = vmatpush3.msra.mxu1 %v3519_v13 }
 0x577   :  { %4685 = vmatprep.subr.mxu1 %v4737_v21 }
 0x578   :  { %4686 = vmatpush3.msra.mxu1 %v3518_v15 }
 0x579   :  { %4687 = vmatprep.subr.mxu1 %v4737_v21 }
 0x57a   :  { %4688 = vmatpush3.msra.mxu1 %v3517_v60 }
 0x57b   :  { %4692 = vmatprep.subr.mxu1 %v4737_v21 }
 0x62b   :  { %v3504_v16 = vpop.f32.mrf.mxu1 }
 0x62c   :  { %v3505_v12 = vadd.f32 %v4001_v17, %v3504_v16 }
 0x62d   :  { %v4672_v28 = vpop.f32.mrf.mxu1 }
 0x62e   :  { %4731 = vtanh.f32 %v3505_v12 }
 0x63b   :  { %v4732_v19 = vpop.eup %4731 }
 0x63c   :  { %v3509_v20 = vsel %vm2237_vm10, %v4732_v19, 0.0 }
 0x63d   :  { %v3510_v42 = vrot.slane %v3509_v20, 4 }
 0x63f   :  { %v3511_v26 = vadd.f32 %v3510_v42, %v3509_v20 }
 0x641   :  { %v3512_v56 = vrot.slane %v3511_v26, 2 }
 0x643   :  { %v3513_v41 = vadd.f32 %v3512_v56, %v3511_v26 }
 0x645   :  { %v3514_v52 = vrot.slane %v3513_v41, 1 }
 0x647   :  { %v3515_v51 = vadd.f32 %v3514_v52, %v3513_v41 }
 0x649   :  { %v3516_v4 = vmul.f32 0.2, %v3515_v51 }
 0x64b   :  { %4690 = vmatmul.mubr.msk.f32.vlgmr.msra.gmra.mxu1 %vm2256_vm11, %v3516_v4 }
 0x64c   :  { %4693 = vmatpush3.msra.mxu1 %v3603_v46  ;;  %4700 = vmatprep.mubr.msk.f32.mxu1 %vm4738_vm1, %v4737_v21 }
 0x64d   :  { %4694 = vmatprep.subr.mxu1 %v4737_v21 }
 0x64e   :  { %4695 = vmatpush3.msra.mxu1 %v3602_v44 }
 0x64f   :  { %4696 = vmatprep.subr.mxu1 %v4737_v21 }
 0x650   :  { %4697 = vmatpush3.msra.mxu1 %v3601_v38 }
 0x651   :  { %4698 = vmatprep.subr.mxu1 %v4737_v21 }
 0x652   :  { %4699 = vmatpush3.msra.mxu1 %v3600_v50 }
 0x653   :  { %4703 = vmatprep.subr.mxu1 %v4737_v21 }
 0x70b   :  { %v3595_v29 = vpop.f32.mrf.mxu1 }
 0x70c   :  { %v3596_v2 = vadd.f32 %v3595_v29, %v3525_v0 }
 0x70d   :  { %v4691_v31 = vpop.f32.mrf.mxu1 }
 0x70e   :  { %v3599_v18 = vmax.f32 %v3596_v2, 0.0 }
 0x710   :  { %4701 = vmatmul.mubr.msk.f32.vlgmr.msra.gmra.mxu1 %vm1700_vm2, %v3599_v18  ;;  %vm3771_vm2 = vcmask 65544  }
 0x711   :  { %4704 = vmatpush3.xpose.msk.msra.mxu1 %vm2757_vm7, %v3692_v1  ;;  %4705 = vmatprep.mubr.msk.f32.mxu1 %vm4738_vm1, %v4737_v21  ;;  %vm3690_vm1 = vcmask 0  }
 0x714   :  { %4706 = vmatmul.mubr.msk.f32.vlgmr.msra.gmra.mxu1 %vm2757_vm7, %v6134_v49 }
 0x7d0   :  { %v3674_v57 = vpop.f32.mrf.mxu1 }
 0x7d1   :  { %v3675_v47 = vadd.f32 %v3674_v57, %v3604_v48 }
 0x7d2   :  { %v4702_v59 = vpop.f32.mrf.mxu1 }
 0x7d3   :  { %v3678_v39 = vmul.f32 %v3675_v47, %v3675_v47 }
 0x7d4   :  { %v3762_v34 = vpop.f32.mrf.mxu1 }
 0x7d5   :  { %v3766_v33 = vmul.f32 14.285714, %v3762_v34  ;;  %v3679_v43 = vsel %vm2410_vm14, %v3678_v39, 0.0 }
 0x7d6   :  { %3680 = vadd.xlane.f32.xlu1 %v3679_v43  ;;  %v4707_v37 = vpop.f32.mrf.mxu1 }
 0x7d7   :  { %3768 = vrot.lane.b32.xlu0 %v3766_v33, %s4739_s10 }
 0x849   :  { %v3769_v61 = vpop.permute.xlu0 %3768 }
 0x85f   :  { %v3681_v21 = vpop.xlane.xlu1 %3680 }
 0x860   :  { %v3682_v8 = vmax.f32 %v3681_v21, 1e-24 }
 0x862   :  { %4733 = vrsqrt.f32 %v3682_v8 }
 0x86f   :  { %v4734_v35 = vpop.eup %4733 }
 0x870   :  { %v3684_v30 = vmul.f32 %v4734_v35, %v3675_v47 }
 0x872   :  { %v3685_v24 = vmul.f32 %v3684_v30, %v6134_v49 }
 0x874   :  { %v3686_v7 = vsel %vm2410_vm14, %v3685_v24, 0.0 }
 0x875   :  { %3687 = vadd.xlane.f32.xlu1 %v3686_v7 }
 0x8fe   :  { %v3688_v54 = vpop.xlane.xlu1 %3687 }
 0x8ff   :  { %v3689_v55 = vmul.f32 14.285714, %v3688_v54 }
 0x901   :  { %3691 = vst.msk [vmem:[%s6534_s4 + $0x21] sm:$0x1] %vm3690_vm1, %v3689_v55 }
 0x902   :  { %3772 = vst.msk [vmem:[%s6534_s4 + $0x21] sm:$0x1] %vm3771_vm2, %v3769_v61 }
 0x903   :  { %4007 = vst.msk [vmem:[%s3783_s14 + $0x28] sm:$0x1] %vm2410_vm14, %v3684_v30 }

</bundles_post_ra>
